<compile_context>
chip_gen: v7x
topology: tpu7x:2x2x1
jax: 0.10.0
libtpu: 0.0.40
codegen_flags: <defaults>
</compile_context>

<pallas_src>
from functools import partial

import jax
import jax.numpy as jnp
from jax import lax
from jax.experimental import pallas as pl
from jax.experimental.pallas import tpu as pltpu

EPS = 1e-5                    # nn.BatchNorm2d default
LANE = 128                    # TPU lane width: keep channel dims lane-dense
MATMUL_DTYPE = jnp.float32    # set to jnp.bfloat16 for ~2x MXU throughput


def _round_up(x, m):
    return (x + m - 1) // m * m


def _pad_to(a, shape):
    return jnp.pad(a, [(0, s - d) for d, s in zip(a.shape, shape)])


def _mosaic_params():
    # Every grid axis here is independent (per-tile partial BN stats, no
    # cross-iteration accumulator) -> safe to shard across v7x's 2 TCs.
    return pltpu.CompilerParams(dimension_semantics=("parallel",))


# ------------------------------ stage kernels ------------------------------ #

def _stats_rows(y):
    """(8, C) block: row 0 = sum(y) over rows, row 1 = sum(y*y), rest zeros."""
    s = jnp.sum(y, axis=0, keepdims=True)
    ss = jnp.sum(y * y, axis=0, keepdims=True)
    return jnp.concatenate([s, ss, jnp.zeros((6, y.shape[1]), jnp.float32)],
                           axis=0)


def _conv1x1_stats_kernel(x_ref, w_ref, y_ref, st_ref):
    # stage 1: y1 = x @ w1 (MXU), plus BN1 partial sums (pass 1 of BN1).
    y = jnp.dot(x_ref[...].astype(MATMUL_DTYPE),
                w_ref[...].astype(MATMUL_DTYPE),
                preferred_element_type=jnp.float32)
    y_ref[...] = y
    st_ref[0] = _stats_rows(y)


def _conv1x1_stats(x2d, w, tm):
    mp, cin = x2d.shape
    cout = w.shape[1]
    gm = mp // tm
    return pl.pallas_call(
        _conv1x1_stats_kernel,
        out_shape=(jax.ShapeDtypeStruct((mp, cout), jnp.float32),
                   jax.ShapeDtypeStruct((gm, 8, cout), jnp.float32)),
        grid=(gm,),
        in_specs=[pl.BlockSpec((tm, cin), lambda i: (i, 0)),
                  pl.BlockSpec((cin, cout), lambda i: (0, 0))],
        out_specs=(pl.BlockSpec((tm, cout), lambda i: (i, 0)),
                   pl.BlockSpec((1, 8, cout), lambda i: (i, 0, 0))),
        compiler_params=_mosaic_params(),
    )(x2d, w)


def _conv3x3_stats_kernel(y1p_ref, w_ref, s_ref, t_ref, y2_ref, st_ref):
    # stage 2 (one image per grid step):
    #   z1 = relu(bn1(y1))            -- bn1 normalize fused here (pass 2 BN1)
    #   y2 = conv3x3(z1)              -- 9 accumulating matmuls, no im2col
    #   + BN2 partial sums            -- pass 1 of BN2
    _, hp2, wp2, c = y1p_ref.shape
    h, w = hp2 - 2, wp2 - 2
    co = w_ref.shape[2]
    scale = s_ref[...].reshape(1, 1, c)
    shift = t_ref[...].reshape(1, 1, c)
    z = jnp.maximum(y1p_ref[0] * scale + shift, 0.0)
    # conv2's zero padding applies to z1 (post bn+relu): re-zero the halo ring.
    hi = lax.broadcasted_iota(jnp.int32, (hp2, wp2, 1), 0)
    wi = lax.broadcasted_iota(jnp.int32, (hp2, wp2, 1), 1)
    interior = (hi >= 1) & (hi <= h) & (wi >= 1) & (wi <= w)
    z = jnp.where(interior, z, 0.0).astype(MATMUL_DTYPE)
    acc = jnp.zeros((h * w, co), jnp.float32)
    for kh in range(3):
        for kw in range(3):
            patch = z[kh:kh + h, kw:kw + w, :].reshape(h * w, c)
            acc = acc + jnp.dot(patch, w_ref[3 * kh + kw].astype(MATMUL_DTYPE),
                                preferred_element_type=jnp.float32)
    y2_ref[0] = acc
    st_ref[0] = _stats_rows(acc)


def _conv3x3_stats(y1_halo, w2_9, scale1, shift1):
    n, hp2, wp2, c = y1_halo.shape
    h, w = hp2 - 2, wp2 - 2
    co = w2_9.shape[2]
    return pl.pallas_call(
        _conv3x3_stats_kernel,
        out_shape=(jax.ShapeDtypeStruct((n, h * w, co), jnp.float32),
                   jax.ShapeDtypeStruct((n, 8, co), jnp.float32)),
        grid=(n,),
        in_specs=[pl.BlockSpec((1, hp2, wp2, c), lambda i: (i, 0, 0, 0)),
                  pl.BlockSpec((9, c, co), lambda i: (0, 0, 0)),
                  pl.BlockSpec((1, c), lambda i: (0, 0)),
                  pl.BlockSpec((1, c), lambda i: (0, 0))],
        out_specs=(pl.BlockSpec((1, h * w, co), lambda i: (i, 0, 0)),
                   pl.BlockSpec((1, 8, co), lambda i: (i, 0, 0))),
        compiler_params=_mosaic_params(),
    )(y1_halo, w2_9, scale1, shift1)


def _bn_relu_conv1x1_stats(y2d, scale, shift, w, tm, m_valid):
    # stage 3: z2 = relu(bn2(y2)) fused with y3 = z2 @ w3 + BN3 partial sums.
    mp, cin = y2d.shape
    cout = w.shape[1]
    gm = mp // tm
    needs_row_mask = mp != m_valid   # padded rows would become relu(shift2)!=0

    def kernel(x_ref, s_ref, t_ref, w_ref, y_ref, st_ref):
        z = jnp.maximum(x_ref[...] * s_ref[...] + t_ref[...], 0.0)
        if needs_row_mask:
            row = (pl.program_id(0) * tm
                   + lax.broadcasted_iota(jnp.int32, (tm, 1), 0))
            z = jnp.where(row < m_valid, z, 0.0)
        y = jnp.dot(z.astype(MATMUL_DTYPE), w_ref[...].astype(MATMUL_DTYPE),
                    preferred_element_type=jnp.float32)
        y_ref[...] = y
        st_ref[0] = _stats_rows(y)

    return pl.pallas_call(
        kernel,
        out_shape=(jax.ShapeDtypeStruct((mp, cout), jnp.float32),
                   jax.ShapeDtypeStruct((gm, 8, cout), jnp.float32)),
        grid=(gm,),
        in_specs=[pl.BlockSpec((tm, cin), lambda i: (i, 0)),
                  pl.BlockSpec((1, cin), lambda i: (0, 0)),
                  pl.BlockSpec((1, cin), lambda i: (0, 0)),
                  pl.BlockSpec((cin, cout), lambda i: (0, 0))],
        out_specs=(pl.BlockSpec((tm, cout), lambda i: (i, 0)),
                   pl.BlockSpec((1, 8, cout), lambda i: (i, 0, 0))),
        compiler_params=_mosaic_params(),
    )(y2d, scale, shift, w)


def _bn_add_relu_kernel(y_ref, s_ref, t_ref, id_ref, o_ref):
    # stage 4: out = relu(bn3(y3) + identity)   (pass 2 of BN3)
    o_ref[...] = jnp.maximum(
        y_ref[...] * s_ref[...] + t_ref[...] + id_ref[...], 0.0)


def _bn_add_relu(y3, scale, shift, identity, tm):
    mp, c = y3.shape
    gm = mp // tm
    return pl.pallas_call(
        _bn_add_relu_kernel,
        out_shape=jax.ShapeDtypeStruct((mp, c), jnp.float32),
        grid=(gm,),
        in_specs=[pl.BlockSpec((tm, c), lambda i: (i, 0)),
                  pl.BlockSpec((1, c), lambda i: (0, 0)),
                  pl.BlockSpec((1, c), lambda i: (0, 0)),
                  pl.BlockSpec((tm, c), lambda i: (i, 0))],
        out_specs=pl.BlockSpec((tm, c), lambda i: (i, 0)),
        input_output_aliases={0: 0},     # write the result over the y3 buffer
        compiler_params=_mosaic_params(),
    )(y3, scale, shift, identity)


def _bn_scale_shift(stats, gamma, beta, m):
    """Fold per-tile partial sums into per-channel affine scale/shift (f32)."""
    s = jnp.sum(stats[:, 0, :], axis=0)
    ss = jnp.sum(stats[:, 1, :], axis=0)
    mean = s / m                                    # m = global N*H*W
    var = jnp.maximum(ss / m - mean * mean, 0.0)    # guard fp cancellation
    inv = lax.rsqrt(var + EPS)
    scale = gamma * inv[None, :]
    shift = beta - mean[None, :] * scale
    return scale, shift


# -------------------------------- forward ---------------------------------- #

@partial(jax.jit, static_argnames=("tm",))
def bottleneck_forward(x_nchw, params, tm=512):
    """Bottleneck forward (stride=1, downsample=None, training-mode BN).

    tm: rows (of N*H*W) per tile for the row-tiled stages.  512 rows x up to
    ~1024 padded channels, double-buffered, stays well under v7x's 64 MiB VMEM
    while being large enough for the >=85%-of-HBM-roofline regime on v5e/v6e.
    """
    w1, g1, b1 = params["w1"], params["g1"], params["b1"]
    w2, g2, b2 = params["w2"], params["g2"], params["b2"]
    w3, g3, b3 = params["w3"], params["g3"], params["b3"]

    # Single NCHW->NHWC transpose in / out (PyTorch boundary); all kernels are
    # channels-last so channels land on the 128-lane axis.
    x = jnp.transpose(x_nchw, (0, 2, 3, 1)).astype(jnp.float32)
    n, h, w, cin = x.shape
    cmid, cout = w1.shape[1], w3.shape[1]
    if cin != cout:
        raise ValueError("identity residual requires in_channels == out_channels*4")
    # TODO(synk): stride>1 / downsample branch not implemented.

    cin_p = _round_up(cin, LANE)
    cmid_p = _round_up(cmid, LANE)
    cout_p = _round_up(cout, LANE)

    m = n * h * w
    tm = _round_up(min(tm, _round_up(m, 8)), 8)
    mp = _round_up(m, tm)

    # Zero-pad channel dims to lane-dense widths.  Zero-padded weights and
    # gamma/beta keep the padded channels exactly zero through every stage.
    w1p = _pad_to(w1, (cin_p, cmid_p))
    w2p = _pad_to(w2, (3, 3, cmid_p, cmid_p)).reshape(9, cmid_p, cmid_p)
    w3p = _pad_to(w3, (cmid_p, cout_p))
    g1p, b1p = _pad_to(g1, (1, cmid_p)), _pad_to(b1, (1, cmid_p))
    g2p, b2p = _pad_to(g2, (1, cmid_p)), _pad_to(b2, (1, cmid_p))
    g3p, b3p = _pad_to(g3, (1, cout_p)), _pad_to(b3, (1, cout_p))

    x2d = _pad_to(x.reshape(m, cin), (mp, cin_p))

    # stage 1: conv1 (1x1) + BN1 partial stats, tiled over rows.
    y1, st1 = _conv1x1_stats(x2d, w1p, tm)
    scale1, shift1 = _bn_scale_shift(st1, g1p, b1p, m)

    # stage 2: bn1+relu fused into the 3x3 conv (9 shifted matmuls), per image.
    y1_sp = y1[:m].reshape(n, h, w, cmid_p)
    y1_halo = jnp.pad(y1_sp, ((0, 0), (1, 1), (1, 1), (0, 0)))  # spatial halo
    y2, st2 = _conv3x3_stats(y1_halo, w2p, scale1, shift1)
    scale2, shift2 = _bn_scale_shift(st2, g2p, b2p, m)

    # stage 3: bn2+relu fused into conv3 (1x1) + BN3 partial stats.
    y2_flat = _pad_to(y2.reshape(m, cmid_p), (mp, cmid_p))
    y3, st3 = _bn_relu_conv1x1_stats(y2_flat, scale2, shift2, w3p, tm, m)
    scale3, shift3 = _bn_scale_shift(st3, g3p, b3p, m)

    # stage 4: bn3 + identity residual + relu, identity tiled like y3.
    out = _bn_add_relu(y3, scale3, shift3, x2d, tm)

    out = out[:m, :cout].reshape(n, h, w, cout)
    return jnp.transpose(out, (0, 3, 1, 2))


# --------------------------- pure-JAX reference ----------------------------- #

def _ref_conv(x, w_oihw, pad):
    return lax.conv_general_dilated(
        x, w_oihw, window_strides=(1, 1), padding=pad,
        dimension_numbers=("NCHW", "OIHW", "NCHW"),
        precision=lax.Precision.HIGHEST)


def _ref_bn(y, g, b):
    mean = jnp.mean(y, axis=(0, 2, 3), keepdims=True)
    var = jnp.var(y, axis=(0, 2, 3), keepdims=True)  # biased
    g = g.reshape(1, -1, 1, 1)
    b = b.reshape(1, -1, 1, 1)
    return (y - mean) / jnp.sqrt(var + EPS) * g + b


def bottleneck_reference(x, params):
    w1 = jnp.transpose(params["w1"], (1, 0)).reshape(params["w1"].shape[1],
                                                     params["w1"].shape[0], 1, 1)
    w2 = jnp.transpose(params["w2"], (3, 2, 0, 1))            # (O, I, kh, kw)
    w3 = jnp.transpose(params["w3"], (1, 0)).reshape(params["w3"].shape[1],
                                                     params["w3"].shape[0], 1, 1)
    out = jnp.maximum(_ref_bn(_ref_conv(x, w1, "VALID"), params["g1"], params["b1"]), 0.0)
    out = jnp.maximum(_ref_bn(_ref_conv(out, w2, "SAME"), params["g2"], params["b2"]), 0.0)
    out = _ref_bn(_ref_conv(out, w3, "VALID"), params["g3"], params["b3"])
    return jnp.maximum(out + x, 0.0)


# ---------------------------------- main ------------------------------------ #

if __name__ == "__main__":
    key = jax.random.PRNGKey(0)
    N, H, W = 2, 16, 16
    Cmid = 4                 # out_channels
    Cin = 4 * Cmid           # in_channels == out_channels * 4 (identity residual)
    Cout = 4 * Cmid

    ks = jax.random.split(key, 10)
    x = jax.random.normal(ks[0], (N, Cin, H, W), jnp.float32)

    params = dict(
        # conv weights stored in kernel-friendly layouts:
        # w1: (Cin, Cmid), w2: (kh, kw, Cin, Cout) = (3,3,Cmid,Cmid), w3: (Cmid, Cout)
        w1=0.1 * jax.random.normal(ks[1], (Cin, Cmid), jnp.float32),
        g1=1.0 + 0.1 * jax.random.normal(ks[2], (1, Cmid), jnp.float32),
        b1=0.1 * jax.random.normal(ks[3], (1, Cmid), jnp.float32),
        w2=0.1 * jax.random.normal(ks[4], (3, 3, Cmid, Cmid), jnp.float32),
        g2=1.0 + 0.1 * jax.random.normal(ks[5], (1, Cmid), jnp.float32),
        b2=0.1 * jax.random.normal(ks[6], (1, Cmid), jnp.float32),
        w3=0.1 * jax.random.normal(ks[7], (Cmid, Cout), jnp.float32),
        g3=1.0 + 0.1 * jax.random.normal(ks[8], (1, Cout), jnp.float32),
        b3=0.1 * jax.random.normal(ks[9], (1, Cout), jnp.float32),
    )

    # tm=128 exercises the multi-tile row grid (M = 2*16*16 = 512 -> 4 tiles).
    out = bottleneck_forward(x, params, tm=128)
    out = jax.block_until_ready(out)

    assert out.shape == (N, Cout, H, W), out.shape
    ref = bottleneck_reference(x, params)
    max_err = float(jnp.max(jnp.abs(out - ref)))
    assert max_err < 1e-2, f"mismatch vs reference, max abs err = {max_err}"

    print("KERNEL_OK")
</pallas_src>

<mosaic_0001>
module attributes {stable_mosaic.version = 11 : i64} {
  func.func @_conv1x1_stats_kernel(%arg0: i32, %arg1: memref<128x128xf32, #tpu.memory_space<vmem>>, %arg2: memref<128x128xf32, #tpu.memory_space<vmem>>, %arg3: memref<128x128xf32, #tpu.memory_space<vmem>>, %arg4: memref<1x8x128xf32, #tpu.memory_space<vmem>>) attributes {dimension_semantics = [#tpu.dimension_semantics<parallel>], iteration_bounds = array<i64: 4>, scalar_prefetch = 0 : i64, scratch_operands = 0 : i64, tpu.core_type = #tpu.core_type<tc>, window_params = [{transform_indices = @transform_0, window_bounds = array<i64: 128, 128>}, {pipeline_mode = #tpu.pipeline_mode<synchronous>, transform_indices = @transform_1, window_bounds = array<i64: 128, 128>}, {transform_indices = @transform_2, window_bounds = array<i64: 128, 128>}, {transform_indices = @transform_3, window_bounds = array<i64: 1, 8, 128>}]} {
    %c0 = arith.constant 0 : index
    %c0_0 = arith.constant 0 : index
    %0 = vector.load %arg1[%c0, %c0_0] : memref<128x128xf32, #tpu.memory_space<vmem>>, vector<128x128xf32>
    %c0_1 = arith.constant 0 : index
    %c0_2 = arith.constant 0 : index
    %1 = vector.load %arg2[%c0_1, %c0_2] : memref<128x128xf32, #tpu.memory_space<vmem>>, vector<128x128xf32>
    %cst = arith.constant dense<0.000000e+00> : vector<128x128xf32>
    %2 = tpu.matmul %0, %1, %cst {dimension_numbers = #tpu.dot_dimension_numbers<[1], [0], [0], [1], [0, 0, 1, 1], [], []>} : vector<128x128xf32>, vector<128x128xf32>, vector<128x128xf32> -> vector<128x128xf32>
    %c0_3 = arith.constant 0 : index
    %c0_4 = arith.constant 0 : index
    %3 = vector.load %arg3[%c0_3, %c0_4] : memref<128x128xf32, #tpu.memory_space<vmem>>, vector<128x128xf32>
    tpu.vector_store %arg3[%c0_3, %c0_4], %2 {strides = array<i32>} : memref<128x128xf32, #tpu.memory_space<vmem>>, vector<128x128xf32>,
    %cst_5 = arith.constant dense<0.000000e+00> : vector<128xf32>
    %4 = vector.multi_reduction <add>, %2, %cst_5 [0] : vector<128x128xf32> to vector<128xf32>
    %5 = vector.shape_cast %4 : vector<128xf32> to vector<1x128xf32>
    %6 = arith.mulf %2, %2 : vector<128x128xf32>
    %cst_6 = arith.constant dense<0.000000e+00> : vector<128xf32>
    %7 = vector.multi_reduction <add>, %6, %cst_6 [0] : vector<128x128xf32> to vector<128xf32>
    %8 = vector.shape_cast %7 : vector<128xf32> to vector<1x128xf32>
    %cst_7 = arith.constant 0.000000e+00 : f32
    %9 = vector.broadcast %cst_7 : f32 to vector<6x128xf32>
    %10 = tpu.concatenate %5, %8, %9 in 0 : vector<1x128xf32>, vector<1x128xf32>, vector<6x128xf32> -> vector<8x128xf32>
    %c0_8 = arith.constant 0 : index
    %c0_9 = arith.constant 0 : index
    %c0_10 = arith.constant 0 : index
    %11 = vector.load %arg4[%c0_8, %c0_9, %c0_10] : memref<1x8x128xf32, #tpu.memory_space<vmem>>, vector<1x8x128xf32>
    %12 = vector.shape_cast %11 : vector<1x8x128xf32> to vector<8x128xf32>
    %13 = vector.shape_cast %10 : vector<8x128xf32> to vector<1x8x128xf32>
    tpu.vector_store %arg4[%c0_8, %c0_9, %c0_10], %13 {strides = array<i32>} : memref<1x8x128xf32, #tpu.memory_space<vmem>>, vector<1x8x128xf32>,
    return
  }
  func.func @transform_0(%arg0: i32) -> (i32, i32) {
    %c0_i32 = arith.constant 0 : i32
    %c0_i32_0 = arith.constant 0 : i32
    return %arg0, %c0_i32 : i32, i32
  }
  func.func @transform_1(%arg0: i32) -> (i32, i32) {
    %c0_i32 = arith.constant 0 : i32
    %c0_i32_0 = arith.constant 0 : i32
    %c0_i32_1 = arith.constant 0 : i32
    return %c0_i32, %c0_i32_0 : i32, i32
  }
  func.func @transform_2(%arg0: i32) -> (i32, i32) {
    %c0_i32 = arith.constant 0 : i32
    %c0_i32_0 = arith.constant 0 : i32
    return %arg0, %c0_i32 : i32, i32
  }
  func.func @transform_3(%arg0: i32) -> (i32, i32, i32) {
    %c0_i32 = arith.constant 0 : i32
    %c0_i32_0 = arith.constant 0 : i32
    %c0_i32_1 = arith.constant 0 : i32
    return %arg0, %c0_i32, %c0_i32_0 : i32, i32, i32
  }
}

module attributes {stable_mosaic.version = 11 : i64} {
  func.func @_conv3x3_stats_kernel(%arg0: i32, %arg1: memref<1x18x18x128xf32, #tpu.memory_space<vmem>>, %arg2: memref<9x128x128xf32, #tpu.memory_space<vmem>>, %arg3: memref<1x128xf32, #tpu.memory_space<vmem>>, %arg4: memref<1x128xf32, #tpu.memory_space<vmem>>, %arg5: memref<1x256x128xf32, #tpu.memory_space<vmem>>, %arg6: memref<1x8x128xf32, #tpu.memory_space<vmem>>) attributes {dimension_semantics = [#tpu.dimension_semantics<parallel>], iteration_bounds = array<i64: 2>, scalar_prefetch = 0 : i64, scratch_operands = 0 : i64, tpu.core_type = #tpu.core_type<tc>, window_params = [{transform_indices = @transform_0, window_bounds = array<i64: 1, 18, 18, 128>}, {pipeline_mode = #tpu.pipeline_mode<synchronous>, transform_indices = @transform_1, window_bounds = array<i64: 9, 128, 128>}, {pipeline_mode = #tpu.pipeline_mode<synchronous>, transform_indices = @transform_2, window_bounds = array<i64: 1, 128>}, {pipeline_mode = #tpu.pipeline_mode<synchronous>, transform_indices = @transform_3, window_bounds = array<i64: 1, 128>}, {transform_indices = @transform_4, window_bounds = array<i64: 1, 256, 128>}, {transform_indices = @transform_5, window_bounds = array<i64: 1, 8, 128>}]} {
    %c0 = arith.constant 0 : index
    %c0_0 = arith.constant 0 : index
    %0 = vector.load %arg3[%c0, %c0_0] : memref<1x128xf32, #tpu.memory_space<vmem>>, vector<1x128xf32>
    %1 = vector.shape_cast %0 : vector<1x128xf32> to vector<1x1x128xf32>
    %c0_1 = arith.constant 0 : index
    %c0_2 = arith.constant 0 : index
    %2 = vector.load %arg4[%c0_1, %c0_2] : memref<1x128xf32, #tpu.memory_space<vmem>>, vector<1x128xf32>
    %3 = vector.shape_cast %2 : vector<1x128xf32> to vector<1x1x128xf32>
    %c0_3 = arith.constant 0 : index
    %c0_4 = arith.constant 0 : index
    %c0_5 = arith.constant 0 : index
    %c0_6 = arith.constant 0 : index
    %4 = vector.load %arg1[%c0_3, %c0_4, %c0_5, %c0_6] : memref<1x18x18x128xf32, #tpu.memory_space<vmem>>, vector<1x18x18x128xf32>
    %5 = vector.shape_cast %4 : vector<1x18x18x128xf32> to vector<18x18x128xf32>
    %6 = vector.broadcast %1 : vector<1x1x128xf32> to vector<18x18x128xf32>
    %7 = arith.mulf %5, %6 : vector<18x18x128xf32>
    %8 = vector.broadcast %3 : vector<1x1x128xf32> to vector<18x18x128xf32>
    %9 = arith.addf %7, %8 : vector<18x18x128xf32>
    %cst = arith.constant 0.000000e+00 : f32
    %10 = vector.broadcast %cst : f32 to vector<18x18x128xf32>
    %11 = arith.maximumf %9, %10 : vector<18x18x128xf32>
    %12 = tpu.iota {dimensions = array<i32: 0>} : vector<18x18x1xi32>
    %13 = tpu.iota {dimensions = array<i32: 1>} : vector<18x18x1xi32>
    %c1_i32 = arith.constant 1 : i32
    %14 = vector.broadcast %c1_i32 : i32 to vector<18x18x1xi32>
    %15 = arith.cmpi sge, %12, %14 : vector<18x18x1xi32>
    %c16_i32 = arith.constant 16 : i32
    %16 = vector.broadcast %c16_i32 : i32 to vector<18x18x1xi32>
    %17 = arith.cmpi sle, %12, %16 : vector<18x18x1xi32>
    %18 = arith.andi %15, %17 : vector<18x18x1xi1>
    %c1_i32_7 = arith.constant 1 : i32
    %19 = vector.broadcast %c1_i32_7 : i32 to vector<18x18x1xi32>
    %20 = arith.cmpi sge, %13, %19 : vector<18x18x1xi32>
    %21 = arith.andi %18, %20 : vector<18x18x1xi1>
    %c16_i32_8 = arith.constant 16 : i32
    %22 = vector.broadcast %c16_i32_8 : i32 to vector<18x18x1xi32>
    %23 = arith.cmpi sle, %13, %22 : vector<18x18x1xi32>
    %24 = arith.andi %21, %23 : vector<18x18x1xi1>
    %cst_9 = arith.constant 0.000000e+00 : f32
    %25 = vector.shape_cast %24 : vector<18x18x1xi1> to vector<18x18x1xi1>
    %26 = vector.broadcast %25 : vector<18x18x1xi1> to vector<18x18x128xi1>
    %27 = vector.broadcast %cst_9 : f32 to vector<18x18x128xf32>
    %28 = arith.select %26, %11, %27 : vector<18x18x128xi1>, vector<18x18x128xf32>
    %cst_10 = arith.constant 0.000000e+00 : f32
    %29 = vector.broadcast %cst_10 : f32 to vector<256x128xf32>
    %30 = vector.extract_strided_slice %28 {offsets = [0, 0, 0], sizes = [16, 16, 128], strides = [1, 1, 1]} : vector<18x18x128xf32> to vector<16x16x128xf32>
    %31 = vector.shape_cast %30 : vector<16x16x128xf32> to vector<256x128xf32>
    %c0_11 = arith.constant 0 : index
    %c0_12 = arith.constant 0 : index
    %c0_13 = arith.constant 0 : index
    %32 = vector.load %arg2[%c0_11, %c0_12, %c0_13] : memref<9x128x128xf32, #tpu.memory_space<vmem>>, vector<1x128x128xf32>
    %33 = vector.shape_cast %32 : vector<1x128x128xf32> to vector<128x128xf32>
    %cst_14 = arith.constant dense<0.000000e+00> : vector<256x128xf32>
    %34 = tpu.matmul %31, %33, %cst_14 {dimension_numbers = #tpu.dot_dimension_numbers<[1], [0], [0], [1], [0, 0, 1, 1], [], []>} : vector<256x128xf32>, vector<128x128xf32>, vector<256x128xf32> -> vector<256x128xf32>
    %35 = arith.addf %29, %34 : vector<256x128xf32>
    %36 = vector.extract_strided_slice %28 {offsets = [0, 1, 0], sizes = [16, 16, 128], strides = [1, 1, 1]} : vector<18x18x128xf32> to vector<16x16x128xf32>
    %37 = vector.shape_cast %36 : vector<16x16x128xf32> to vector<256x128xf32>
    %c1 = arith.constant 1 : index
    %c0_15 = arith.constant 0 : index
    %c0_16 = arith.constant 0 : index
    %38 = vector.load %arg2[%c1, %c0_15, %c0_16] : memref<9x128x128xf32, #tpu.memory_space<vmem>>, vector<1x128x128xf32>
    %39 = vector.shape_cast %38 : vector<1x128x128xf32> to vector<128x128xf32>
    %cst_17 = arith.constant dense<0.000000e+00> : vector<256x128xf32>
    %40 = tpu.matmul %37, %39, %cst_17 {dimension_numbers = #tpu.dot_dimension_numbers<[1], [0], [0], [1], [0, 0, 1, 1], [], []>} : vector<256x128xf32>, vector<128x128xf32>, vector<256x128xf32> -> vector<256x128xf32>
    %41 = arith.addf %35, %40 : vector<256x128xf32>
    %42 = vector.extract_strided_slice %28 {offsets = [0, 2, 0], sizes = [16, 16, 128], strides = [1, 1, 1]} : vector<18x18x128xf32> to vector<16x16x128xf32>
    %43 = vector.shape_cast %42 : vector<16x16x128xf32> to vector<256x128xf32>
    %c2 = arith.constant 2 : index
    %c0_18 = arith.constant 0 : index
    %c0_19 = arith.constant 0 : index
    %44 = vector.load %arg2[%c2, %c0_18, %c0_19] : memref<9x128x128xf32, #tpu.memory_space<vmem>>, vector<1x128x128xf32>
    %45 = vector.shape_cast %44 : vector<1x128x128xf32> to vector<128x128xf32>
    %cst_20 = arith.constant dense<0.000000e+00> : vector<256x128xf32>
    %46 = tpu.matmul %43, %45, %cst_20 {dimension_numbers = #tpu.dot_dimension_numbers<[1], [0], [0], [1], [0, 0, 1, 1], [], []>} : vector<256x128xf32>, vector<128x128xf32>, vector<256x128xf32> -> vector<256x128xf32>
    %47 = arith.addf %41, %46 : vector<256x128xf32>
    %48 = vector.extract_strided_slice %28 {offsets = [1, 0, 0], sizes = [16, 16, 128], strides = [1, 1, 1]} : vector<18x18x128xf32> to vector<16x16x128xf32>
    %49 = vector.shape_cast %48 : vector<16x16x128xf32> to vector<256x128xf32>
    %c3 = arith.constant 3 : index
    %c0_21 = arith.constant 0 : index
    %c0_22 = arith.constant 0 : index
    %50 = vector.load %arg2[%c3, %c0_21, %c0_22] : memref<9x128x128xf32, #tpu.memory_space<vmem>>, vector<1x128x128xf32>
    %51 = vector.shape_cast %50 : vector<1x128x128xf32> to vector<128x128xf32>
    %cst_23 = arith.constant dense<0.000000e+00> : vector<256x128xf32>
    %52 = tpu.matmul %49, %51, %cst_23 {dimension_numbers = #tpu.dot_dimension_numbers<[1], [0], [0], [1], [0, 0, 1, 1], [], []>} : vector<256x128xf32>, vector<128x128xf32>, vector<256x128xf32> -> vector<256x128xf32>
    %53 = arith.addf %47, %52 : vector<256x128xf32>
    %54 = vector.extract_strided_slice %28 {offsets = [1, 1, 0], sizes = [16, 16, 128], strides = [1, 1, 1]} : vector<18x18x128xf32> to vector<16x16x128xf32>
    %55 = vector.shape_cast %54 : vector<16x16x128xf32> to vector<256x128xf32>
    %c4 = arith.constant 4 : index
    %c0_24 = arith.constant 0 : index
    %c0_25 = arith.constant 0 : index
    %56 = vector.load %arg2[%c4, %c0_24, %c0_25] : memref<9x128x128xf32, #tpu.memory_space<vmem>>, vector<1x128x128xf32>
    %57 = vector.shape_cast %56 : vector<1x128x128xf32> to vector<128x128xf32>
    %cst_26 = arith.constant dense<0.000000e+00> : vector<256x128xf32>
    %58 = tpu.matmul %55, %57, %cst_26 {dimension_numbers = #tpu.dot_dimension_numbers<[1], [0], [0], [1], [0, 0, 1, 1], [], []>} : vector<256x128xf32>, vector<128x128xf32>, vector<256x128xf32> -> vector<256x128xf32>
    %59 = arith.addf %53, %58 : vector<256x128xf32>
    %60 = vector.extract_strided_slice %28 {offsets = [1, 2, 0], sizes = [16, 16, 128], strides = [1, 1, 1]} : vector<18x18x128xf32> to vector<16x16x128xf32>
    %61 = vector.shape_cast %60 : vector<16x16x128xf32> to vector<256x128xf32>
    %c5 = arith.constant 5 : index
    %c0_27 = arith.constant 0 : index
    %c0_28 = arith.constant 0 : index
    %62 = vector.load %arg2[%c5, %c0_27, %c0_28] : memref<9x128x128xf32, #tpu.memory_space<vmem>>, vector<1x128x128xf32>
    %63 = vector.shape_cast %62 : vector<1x128x128xf32> to vector<128x128xf32>
    %cst_29 = arith.constant dense<0.000000e+00> : vector<256x128xf32>
    %64 = tpu.matmul %61, %63, %cst_29 {dimension_numbers = #tpu.dot_dimension_numbers<[1], [0], [0], [1], [0, 0, 1, 1], [], []>} : vector<256x128xf32>, vector<128x128xf32>, vector<256x128xf32> -> vector<256x128xf32>
    %65 = arith.addf %59, %64 : vector<256x128xf32>
    %66 = vector.extract_strided_slice %28 {offsets = [2, 0, 0], sizes = [16, 16, 128], strides = [1, 1, 1]} : vector<18x18x128xf32> to vector<16x16x128xf32>
    %67 = vector.shape_cast %66 : vector<16x16x128xf32> to vector<256x128xf32>
    %c6 = arith.constant 6 : index
    %c0_30 = arith.constant 0 : index
    %c0_31 = arith.constant 0 : index
    %68 = vector.load %arg2[%c6, %c0_30, %c0_31] : memref<9x128x128xf32, #tpu.memory_space<vmem>>, vector<1x128x128xf32>
    %69 = vector.shape_cast %68 : vector<1x128x128xf32> to vector<128x128xf32>
    %cst_32 = arith.constant dense<0.000000e+00> : vector<256x128xf32>
    %70 = tpu.matmul %67, %69, %cst_32 {dimension_numbers = #tpu.dot_dimension_numbers<[1], [0], [0], [1], [0, 0, 1, 1], [], []>} : vector<256x128xf32>, vector<128x128xf32>, vector<256x128xf32> -> vector<256x128xf32>
    %71 = arith.addf %65, %70 : vector<256x128xf32>
    %72 = vector.extract_strided_slice %28 {offsets = [2, 1, 0], sizes = [16, 16, 128], strides = [1, 1, 1]} : vector<18x18x128xf32> to vector<16x16x128xf32>
    %73 = vector.shape_cast %72 : vector<16x16x128xf32> to vector<256x128xf32>
    %c7 = arith.constant 7 : index
    %c0_33 = arith.constant 0 : index
    %c0_34 = arith.constant 0 : index
    %74 = vector.load %arg2[%c7, %c0_33, %c0_34] : memref<9x128x128xf32, #tpu.memory_space<vmem>>, vector<1x128x128xf32>
    %75 = vector.shape_cast %74 : vector<1x128x128xf32> to vector<128x128xf32>
    %cst_35 = arith.constant dense<0.000000e+00> : vector<256x128xf32>
    %76 = tpu.matmul %73, %75, %cst_35 {dimension_numbers = #tpu.dot_dimension_numbers<[1], [0], [0], [1], [0, 0, 1, 1], [], []>} : vector<256x128xf32>, vector<128x128xf32>, vector<256x128xf32> -> vector<256x128xf32>
    %77 = arith.addf %71, %76 : vector<256x128xf32>
    %78 = vector.extract_strided_slice %28 {offsets = [2, 2, 0], sizes = [16, 16, 128], strides = [1, 1, 1]} : vector<18x18x128xf32> to vector<16x16x128xf32>
    %79 = vector.shape_cast %78 : vector<16x16x128xf32> to vector<256x128xf32>
    %c8 = arith.constant 8 : index
    %c0_36 = arith.constant 0 : index
    %c0_37 = arith.constant 0 : index
    %80 = vector.load %arg2[%c8, %c0_36, %c0_37] : memref<9x128x128xf32, #tpu.memory_space<vmem>>, vector<1x128x128xf32>
    %81 = vector.shape_cast %80 : vector<1x128x128xf32> to vector<128x128xf32>
    %cst_38 = arith.constant dense<0.000000e+00> : vector<256x128xf32>
    %82 = tpu.matmul %79, %81, %cst_38 {dimension_numbers = #tpu.dot_dimension_numbers<[1], [0], [0], [1], [0, 0, 1, 1], [], []>} : vector<256x128xf32>, vector<128x128xf32>, vector<256x128xf32> -> vector<256x128xf32>
    %83 = arith.addf %77, %82 : vector<256x128xf32>
    %c0_39 = arith.constant 0 : index
    %c0_40 = arith.constant 0 : index
    %c0_41 = arith.constant 0 : index
    %84 = vector.load %arg5[%c0_39, %c0_40, %c0_41] : memref<1x256x128xf32, #tpu.memory_space<vmem>>, vector<1x256x128xf32>
    %85 = vector.shape_cast %84 : vector<1x256x128xf32> to vector<256x128xf32>
    %86 = vector.shape_cast %83 : vector<256x128xf32> to vector<1x256x128xf32>
    tpu.vector_store %arg5[%c0_39, %c0_40, %c0_41], %86 {strides = array<i32>} : memref<1x256x128xf32, #tpu.memory_space<vmem>>, vector<1x256x128xf32>,
    %cst_42 = arith.constant dense<0.000000e+00> : vector<128xf32>
    %87 = vector.multi_reduction <add>, %83, %cst_42 [0] : vector<256x128xf32> to vector<128xf32>
    %88 = vector.shape_cast %87 : vector<128xf32> to vector<1x128xf32>
    %89 = arith.mulf %83, %83 : vector<256x128xf32>
    %cst_43 = arith.constant dense<0.000000e+00> : vector<128xf32>
    %90 = vector.multi_reduction <add>, %89, %cst_43 [0] : vector<256x128xf32> to vector<128xf32>
    %91 = vector.shape_cast %90 : vector<128xf32> to vector<1x128xf32>
    %cst_44 = arith.constant 0.000000e+00 : f32
    %92 = vector.broadcast %cst_44 : f32 to vector<6x128xf32>
    %93 = tpu.concatenate %88, %91, %92 in 0 : vector<1x128xf32>, vector<1x128xf32>, vector<6x128xf32> -> vector<8x128xf32>
    %c0_45 = arith.constant 0 : index
    %c0_46 = arith.constant 0 : index
    %c0_47 = arith.constant 0 : index
    %94 = vector.load %arg6[%c0_45, %c0_46, %c0_47] : memref<1x8x128xf32, #tpu.memory_space<vmem>>, vector<1x8x128xf32>
    %95 = vector.shape_cast %94 : vector<1x8x128xf32> to vector<8x128xf32>
    %96 = vector.shape_cast %93 : vector<8x128xf32> to vector<1x8x128xf32>
    tpu.vector_store %arg6[%c0_45, %c0_46, %c0_47], %96 {strides = array<i32>} : memref<1x8x128xf32, #tpu.memory_space<vmem>>, vector<1x8x128xf32>,
    return
  }
  func.func @transform_0(%arg0: i32) -> (i32, i32, i32, i32) {
    %c0_i32 = arith.constant 0 : i32
    %c0_i32_0 = arith.constant 0 : i32
    %c0_i32_1 = arith.constant 0 : i32
    %c0_i32_2 = arith.constant 0 : i32
    return %arg0, %c0_i32, %c0_i32_0, %c0_i32_1 : i32, i32, i32, i32
  }
  func.func @transform_1(%arg0: i32) -> (i32, i32, i32) {
    %c0_i32 = arith.constant 0 : i32
    %c0_i32_0 = arith.constant 0 : i32
    %c0_i32_1 = arith.constant 0 : i32
    %c0_i32_2 = arith.constant 0 : i32
    return %c0_i32, %c0_i32_0, %c0_i32_1 : i32, i32, i32
  }
  func.func @transform_2(%arg0: i32) -> (i32, i32) {
    %c0_i32 = arith.constant 0 : i32
    %c0_i32_0 = arith.constant 0 : i32
    %c0_i32_1 = arith.constant 0 : i32
    return %c0_i32, %c0_i32_0 : i32, i32
  }
  func.func @transform_3(%arg0: i32) -> (i32, i32) {
    %c0_i32 = arith.constant 0 : i32
    %c0_i32_0 = arith.constant 0 : i32
    %c0_i32_1 = arith.constant 0 : i32
    return %c0_i32, %c0_i32_0 : i32, i32
  }
  func.func @transform_4(%arg0: i32) -> (i32, i32, i32) {
    %c0_i32 = arith.constant 0 : i32
    %c0_i32_0 = arith.constant 0 : i32
    %c0_i32_1 = arith.constant 0 : i32
    return %arg0, %c0_i32, %c0_i32_0 : i32, i32, i32
  }
  func.func @transform_5(%arg0: i32) -> (i32, i32, i32) {
    %c0_i32 = arith.constant 0 : i32
    %c0_i32_0 = arith.constant 0 : i32
    %c0_i32_1 = arith.constant 0 : i32
    return %arg0, %c0_i32, %c0_i32_0 : i32, i32, i32
  }
}

module attributes {stable_mosaic.version = 11 : i64} {
  func.func @kernel(%arg0: i32, %arg1: memref<128x128xf32, #tpu.memory_space<vmem>>, %arg2: memref<1x128xf32, #tpu.memory_space<vmem>>, %arg3: memref<1x128xf32, #tpu.memory_space<vmem>>, %arg4: memref<128x128xf32, #tpu.memory_space<vmem>>, %arg5: memref<128x128xf32, #tpu.memory_space<vmem>>, %arg6: memref<1x8x128xf32, #tpu.memory_space<vmem>>) attributes {dimension_semantics = [#tpu.dimension_semantics<parallel>], iteration_bounds = array<i64: 4>, scalar_prefetch = 0 : i64, scratch_operands = 0 : i64, tpu.core_type = #tpu.core_type<tc>, window_params = [{transform_indices = @transform_0, window_bounds = array<i64: 128, 128>}, {pipeline_mode = #tpu.pipeline_mode<synchronous>, transform_indices = @transform_1, window_bounds = array<i64: 1, 128>}, {pipeline_mode = #tpu.pipeline_mode<synchronous>, transform_indices = @transform_2, window_bounds = array<i64: 1, 128>}, {pipeline_mode = #tpu.pipeline_mode<synchronous>, transform_indices = @transform_3, window_bounds = array<i64: 128, 128>}, {transform_indices = @transform_4, window_bounds = array<i64: 128, 128>}, {transform_indices = @transform_5, window_bounds = array<i64: 1, 8, 128>}]} {
    %c0 = arith.constant 0 : index
    %c0_0 = arith.constant 0 : index
    %0 = vector.load %arg1[%c0, %c0_0] : memref<128x128xf32, #tpu.memory_space<vmem>>, vector<128x128xf32>
    %c0_1 = arith.constant 0 : index
    %c0_2 = arith.constant 0 : index
    %1 = vector.load %arg2[%c0_1, %c0_2] : memref<1x128xf32, #tpu.memory_space<vmem>>, vector<1x128xf32>
    %2 = vector.broadcast %1 : vector<1x128xf32> to vector<128x128xf32>
    %3 = arith.mulf %0, %2 : vector<128x128xf32>
    %c0_3 = arith.constant 0 : index
    %c0_4 = arith.constant 0 : index
    %4 = vector.load %arg3[%c0_3, %c0_4] : memref<1x128xf32, #tpu.memory_space<vmem>>, vector<1x128xf32>
    %5 = vector.broadcast %4 : vector<1x128xf32> to vector<128x128xf32>
    %6 = arith.addf %3, %5 : vector<128x128xf32>
    %cst = arith.constant 0.000000e+00 : f32
    %7 = vector.broadcast %cst : f32 to vector<128x128xf32>
    %8 = arith.maximumf %6, %7 : vector<128x128xf32>
    %c0_5 = arith.constant 0 : index
    %c0_6 = arith.constant 0 : index
    %9 = vector.load %arg4[%c0_5, %c0_6] : memref<128x128xf32, #tpu.memory_space<vmem>>, vector<128x128xf32>
    %cst_7 = arith.constant dense<0.000000e+00> : vector<128x128xf32>
    %10 = tpu.matmul %8, %9, %cst_7 {dimension_numbers = #tpu.dot_dimension_numbers<[1], [0], [0], [1], [0, 0, 1, 1], [], []>} : vector<128x128xf32>, vector<128x128xf32>, vector<128x128xf32> -> vector<128x128xf32>
    %c0_8 = arith.constant 0 : index
    %c0_9 = arith.constant 0 : index
    %11 = vector.load %arg5[%c0_8, %c0_9] : memref<128x128xf32, #tpu.memory_space<vmem>>, vector<128x128xf32>
    tpu.vector_store %arg5[%c0_8, %c0_9], %10 {strides = array<i32>} : memref<128x128xf32, #tpu.memory_space<vmem>>, vector<128x128xf32>,
    %cst_10 = arith.constant dense<0.000000e+00> : vector<128xf32>
    %12 = vector.multi_reduction <add>, %10, %cst_10 [0] : vector<128x128xf32> to vector<128xf32>
    %13 = vector.shape_cast %12 : vector<128xf32> to vector<1x128xf32>
    %14 = arith.mulf %10, %10 : vector<128x128xf32>
    %cst_11 = arith.constant dense<0.000000e+00> : vector<128xf32>
    %15 = vector.multi_reduction <add>, %14, %cst_11 [0] : vector<128x128xf32> to vector<128xf32>
    %16 = vector.shape_cast %15 : vector<128xf32> to vector<1x128xf32>
    %cst_12 = arith.constant 0.000000e+00 : f32
    %17 = vector.broadcast %cst_12 : f32 to vector<6x128xf32>
    %18 = tpu.concatenate %13, %16, %17 in 0 : vector<1x128xf32>, vector<1x128xf32>, vector<6x128xf32> -> vector<8x128xf32>
    %c0_13 = arith.constant 0 : index
    %c0_14 = arith.constant 0 : index
    %c0_15 = arith.constant 0 : index
    %19 = vector.load %arg6[%c0_13, %c0_14, %c0_15] : memref<1x8x128xf32, #tpu.memory_space<vmem>>, vector<1x8x128xf32>
    %20 = vector.shape_cast %19 : vector<1x8x128xf32> to vector<8x128xf32>
    %21 = vector.shape_cast %18 : vector<8x128xf32> to vector<1x8x128xf32>
    tpu.vector_store %arg6[%c0_13, %c0_14, %c0_15], %21 {strides = array<i32>} : memref<1x8x128xf32, #tpu.memory_space<vmem>>, vector<1x8x128xf32>,
    return
  }
  func.func @transform_0(%arg0: i32) -> (i32, i32) {
    %c0_i32 = arith.constant 0 : i32
    %c0_i32_0 = arith.constant 0 : i32
    return %arg0, %c0_i32 : i32, i32
  }
  func.func @transform_1(%arg0: i32) -> (i32, i32) {
    %c0_i32 = arith.constant 0 : i32
    %c0_i32_0 = arith.constant 0 : i32
    %c0_i32_1 = arith.constant 0 : i32
    return %c0_i32, %c0_i32_0 : i32, i32
  }
  func.func @transform_2(%arg0: i32) -> (i32, i32) {
    %c0_i32 = arith.constant 0 : i32
    %c0_i32_0 = arith.constant 0 : i32
    %c0_i32_1 = arith.constant 0 : i32
    return %c0_i32, %c0_i32_0 : i32, i32
  }
  func.func @transform_3(%arg0: i32) -> (i32, i32) {
    %c0_i32 = arith.constant 0 : i32
    %c0_i32_0 = arith.constant 0 : i32
    %c0_i32_1 = arith.constant 0 : i32
    return %c0_i32, %c0_i32_0 : i32, i32
  }
  func.func @transform_4(%arg0: i32) -> (i32, i32) {
    %c0_i32 = arith.constant 0 : i32
    %c0_i32_0 = arith.constant 0 : i32
    return %arg0, %c0_i32 : i32, i32
  }
  func.func @transform_5(%arg0: i32) -> (i32, i32, i32) {
    %c0_i32 = arith.constant 0 : i32
    %c0_i32_0 = arith.constant 0 : i32
    %c0_i32_1 = arith.constant 0 : i32
    return %arg0, %c0_i32, %c0_i32_0 : i32, i32, i32
  }
}

module attributes {stable_mosaic.version = 11 : i64} {
  func.func @_bn_add_relu_kernel(%arg0: i32, %arg1: memref<128x128xf32, #tpu.memory_space<vmem>>, %arg2: memref<1x128xf32, #tpu.memory_space<vmem>>, %arg3: memref<1x128xf32, #tpu.memory_space<vmem>>, %arg4: memref<128x128xf32, #tpu.memory_space<vmem>>, %arg5: memref<128x128xf32, #tpu.memory_space<vmem>>) attributes {dimension_semantics = [#tpu.dimension_semantics<parallel>], iteration_bounds = array<i64: 4>, scalar_prefetch = 0 : i64, scratch_operands = 0 : i64, tpu.core_type = #tpu.core_type<tc>, window_params = [{transform_indices = @transform_0, window_bounds = array<i64: 128, 128>}, {pipeline_mode = #tpu.pipeline_mode<synchronous>, transform_indices = @transform_1, window_bounds = array<i64: 1, 128>}, {pipeline_mode = #tpu.pipeline_mode<synchronous>, transform_indices = @transform_2, window_bounds = array<i64: 1, 128>}, {transform_indices = @transform_3, window_bounds = array<i64: 128, 128>}, {transform_indices = @transform_4, window_bounds = array<i64: 128, 128>}]} {
    %c0 = arith.constant 0 : index
    %c0_0 = arith.constant 0 : index
    %0 = vector.load %arg1[%c0, %c0_0] : memref<128x128xf32, #tpu.memory_space<vmem>>, vector<128x128xf32>
    %c0_1 = arith.constant 0 : index
    %c0_2 = arith.constant 0 : index
    %1 = vector.load %arg2[%c0_1, %c0_2] : memref<1x128xf32, #tpu.memory_space<vmem>>, vector<1x128xf32>
    %2 = vector.broadcast %1 : vector<1x128xf32> to vector<128x128xf32>
    %3 = arith.mulf %0, %2 : vector<128x128xf32>
    %c0_3 = arith.constant 0 : index
    %c0_4 = arith.constant 0 : index
    %4 = vector.load %arg3[%c0_3, %c0_4] : memref<1x128xf32, #tpu.memory_space<vmem>>, vector<1x128xf32>
    %5 = vector.broadcast %4 : vector<1x128xf32> to vector<128x128xf32>
    %6 = arith.addf %3, %5 : vector<128x128xf32>
    %c0_5 = arith.constant 0 : index
    %c0_6 = arith.constant 0 : index
    %7 = vector.load %arg4[%c0_5, %c0_6] : memref<128x128xf32, #tpu.memory_space<vmem>>, vector<128x128xf32>
    %8 = arith.addf %6, %7 : vector<128x128xf32>
    %cst = arith.constant 0.000000e+00 : f32
    %9 = vector.broadcast %cst : f32 to vector<128x128xf32>
    %10 = arith.maximumf %8, %9 : vector<128x128xf32>
    %c0_7 = arith.constant 0 : index
    %c0_8 = arith.constant 0 : index
    %11 = vector.load %arg5[%c0_7, %c0_8] : memref<128x128xf32, #tpu.memory_space<vmem>>, vector<128x128xf32>
    tpu.vector_store %arg5[%c0_7, %c0_8], %10 {strides = array<i32>} : memref<128x128xf32, #tpu.memory_space<vmem>>, vector<128x128xf32>,
    return
  }
  func.func @transform_0(%arg0: i32) -> (i32, i32) {
    %c0_i32 = arith.constant 0 : i32
    %c0_i32_0 = arith.constant 0 : i32
    return %arg0, %c0_i32 : i32, i32
  }
  func.func @transform_1(%arg0: i32) -> (i32, i32) {
    %c0_i32 = arith.constant 0 : i32
    %c0_i32_0 = arith.constant 0 : i32
    %c0_i32_1 = arith.constant 0 : i32
    return %c0_i32, %c0_i32_0 : i32, i32
  }
  func.func @transform_2(%arg0: i32) -> (i32, i32) {
    %c0_i32 = arith.constant 0 : i32
    %c0_i32_0 = arith.constant 0 : i32
    %c0_i32_1 = arith.constant 0 : i32
    return %c0_i32, %c0_i32_0 : i32, i32
  }
  func.func @transform_3(%arg0: i32) -> (i32, i32) {
    %c0_i32 = arith.constant 0 : i32
    %c0_i32_0 = arith.constant 0 : i32
    return %arg0, %c0_i32 : i32, i32
  }
  func.func @transform_4(%arg0: i32) -> (i32, i32) {
    %c0_i32 = arith.constant 0 : i32
    %c0_i32_0 = arith.constant 0 : i32
    return %arg0, %c0_i32 : i32, i32
  }
}

</mosaic_0001>

<bundles_post_ra>
// kernel: bottleneck_forward.4
= control target key start
LH: loop header
LB: loop body
LE: loop exit
PB: predicated region body
PF: predicated region fallthrough
CT: control target
= control target key end

     0   :  { %s712_s12 = smov 0   ;;  %s828_s0 = inlined_call_operand.vmem [shape: f32[512,128], index: 0, kind: input, shape index: {}]   ;;  %s829_s1 = inlined_call_operand.vmem [shape: f32[128,128], index: 1, kind: input, shape index: {}]   ;;  %s830_s2 = inlined_call_operand.vmem [shape: f32[512,128], index: 2, kind: output, shape index: {0}]   ;;  %s831_s3 = inlined_call_operand.vmem [shape: f32[4,8,128], index: 3, kind: output, shape index: {1}]  }
   0x1 LB: > { %s718_s13 = sadd.s32 4294967295, %s690_s12   ;;  %p532_p0 = scmp.ge.s32.totalorder %s690_s12, 1  ;;  %s690_s12 = sphi %s712_s12, %s14_s12  }
   0x2   : > { %p141_p1 = scmp.lt.s32.totalorder %s690_s12, 5 }
   0x4   : > { %p142_p2 = pnand %p532_p0, %p141_p1 }
   0x5   : > { %v201_v0 = vld [vmem:[%s829_s1] sm:$0xff] (!%p142_p2)  ;;  %v202_v1 = vld [vmem:[%s829_s1 + $0x8] sm:$0xff] (!%p142_p2)  ;;  %v203_v2 = vld [vmem:[%s829_s1 + $0x10] sm:$0xff] (!%p142_p2)  ;;  %s533_s20 = sshll.u32 (!%p142_p2), %s718_s13, 4  ;;  %p181_p4 = scmp.lt.s32.totalorder (!%p142_p2), %s718_s13, 3  ;;  %vm436_vm0 = vcmask (!%p142_p2), 1040384  }
   0x6   : > { %145 = sbr.rel (%p142_p2) target bundleno = 302 (0x12e), region = 28  ;;  %v628_v3 = vpack.c.bf16 (!%p142_p2), %v202_v1, %v201_v0  ;;  %v204_v4 = vld [vmem:[%s829_s1 + $0x18] sm:$0xff] (!%p142_p2)  ;;  %p170_p3 = scmp.lt.s32.totalorder (!%p142_p2), %s533_s20, 63  ;;  %v205_v6 = vld [vmem:[%s829_s1 + $0x20] sm:$0xff] (!%p142_p2)  ;;  %v206_v7 = vld [vmem:[%s829_s1 + $0x28] sm:$0xff] (!%p142_p2)  ;;  %vm438_vm1 = vcmask (!%p142_p2), 1041408  }
   0x7   : > { %v632_v5 = vpack.c.bf16 (!%p142_p2), %v204_v4, %v203_v2  ;;  %v636_v8 = vpack.c.bf16 (!%p142_p2), %v206_v7, %v205_v6  ;;  %v207_v9 = vld [vmem:[%s829_s1 + $0x30] sm:$0xff] (!%p142_p2)  ;;  %v208_v10 = vld [vmem:[%s829_s1 + $0x38] sm:$0xff] (!%p142_p2)  ;;  %v209_v14 = vld [vmem:[%s829_s1 + $0x40] sm:$0xff] (!%p142_p2) }
   0x8   : > { %629 = vmatprep.subr.bf16.mxu0 (!%p142_p2), %v628_v3  ;;  %660 = vmatprep.subr.bf16.mxu1 (!%p142_p2), %v628_v3  ;;  %v640_v12 = vpack.c.bf16 (!%p142_p2), %v208_v10, %v207_v9  ;;  %v210_v15 = vld [vmem:[%s829_s1 + $0x48] sm:$0xff] (!%p142_p2)  ;;  %v211_v17 = vld [vmem:[%s829_s1 + $0x50] sm:$0xff] (!%p142_p2)  ;;  %v212_v18 = vld [vmem:[%s829_s1 + $0x58] sm:$0xff] (!%p142_p2) }
   0x9   : > { %631 = vmatpush3.bf16.msra.mxu0 (!%p142_p2), %v628_v3  ;;  %668 = vmatpush3.bf16.msra.mxu1 (!%p142_p2), %v628_v3  ;;  %v644_v16 = vpack.c.bf16 (!%p142_p2), %v210_v15, %v209_v14  ;;  %v648_v19 = vpack.c.bf16 (!%p142_p2), %v212_v18, %v211_v17  ;;  %v213_v20 = vld [vmem:[%s829_s1 + $0x60] sm:$0xff] (!%p142_p2)  ;;  %v214_v21 = vld [vmem:[%s829_s1 + $0x68] sm:$0xff] (!%p142_p2)  ;;  %v215_v23 = vld [vmem:[%s829_s1 + $0x70] sm:$0xff] (!%p142_p2) }
   0xa   : > { %633 = vmatprep.subr.bf16.mxu0 (!%p142_p2), %v632_v5  ;;  %661 = vmatprep.subr.bf16.mxu1 (!%p142_p2), %v632_v5  ;;  %v652_v22 = vpack.c.bf16 (!%p142_p2), %v214_v21, %v213_v20  ;;  %v216_v24 = vld [vmem:[%s829_s1 + $0x78] sm:$0xff] (!%p142_p2) }
   0xb   : > { %v656_v25 = vpack.c.bf16 (!%p142_p2), %v216_v24, %v215_v23 }
   0xd   : > { %s833_s20 = smov (!%p170_p3, %s533_s20), 63  ;;  %635 = vmatpush3.bf16.msra.mxu0 %v632_v5  ;;  %669 = vmatpush3.bf16.msra.mxu1 %v632_v5  ;;  %s835_s13 = smov (!%p181_p4, %s718_s13), 3 }
   0xe   : > { %s534_s27 = sshll.u32 %s833_s20, 3  ;;  %637 = vmatprep.subr.bf16.mxu0 %v636_v8  ;;  %662 = vmatprep.subr.bf16.mxu1 %v636_v8  ;;  %s537_s20 = sshll.u32 %s835_s13, 3 }
   0xf   : > { %s755_s7 = scalar_lea.vmem %s828_s0, %s534_s27  ;;  %s802_s30 = scalar_lea.vmem %s830_s2, %s534_s27 }
  0x10   : > { %v185_v11 = vld [vmem:[%s755_s7] sm:$0xff]  ;;  %v186_v26 = vld [vmem:[%s755_s7 + $0x8] sm:$0xff]  ;;  %v187_v28 = vld [vmem:[%s755_s7 + $0x10] sm:$0xff]  ;;  %s184_s5 = scalar_lea.vmem %s831_s3, %s537_s20 }
  0x11   : > { %v193_v13 = vld [vmem:[%s755_s7 + $0x40] sm:$0xff]  ;;  %604 = vmatprep.mubr.f32.mxu0 %v185_v11  ;;  %639 = vmatpush3.bf16.msra.mxu0 %v636_v8  ;;  %v194_v27 = vld [vmem:[%s755_s7 + $0x48] sm:$0xff]  ;;  %v195_v29 = vld [vmem:[%s755_s7 + $0x50] sm:$0xff] }
  0x12   : > { %616 = vmatprep.mubr.f32.mxu1 %v193_v13  ;;  %670 = vmatpush3.bf16.msra.mxu1 %v636_v8  ;;  %v188_v30 = vld [vmem:[%s755_s7 + $0x18] sm:$0xff]  ;;  %v189_v32 = vld [vmem:[%s755_s7 + $0x20] sm:$0xff]  ;;  %v190_v34 = vld [vmem:[%s755_s7 + $0x28] sm:$0xff] }
  0x13   : > { %641 = vmatprep.subr.bf16.mxu0 %v640_v12  ;;  %663 = vmatprep.subr.bf16.mxu1 %v640_v12  ;;  %v196_v31 = vld [vmem:[%s755_s7 + $0x58] sm:$0xff]  ;;  %v197_v33 = vld [vmem:[%s755_s7 + $0x60] sm:$0xff]  ;;  %v198_v35 = vld [vmem:[%s755_s7 + $0x68] sm:$0xff] }
  0x14   : > { %v191_v36 = vld [vmem:[%s755_s7 + $0x30] sm:$0xff]  ;;  %v192_v38 = vld [vmem:[%s755_s7 + $0x38] sm:$0xff] }
  0x15   : > { %643 = vmatpush3.bf16.msra.mxu0 %v640_v12  ;;  %v199_v37 = vld [vmem:[%s755_s7 + $0x70] sm:$0xff]  ;;  %v200_v39 = vld [vmem:[%s755_s7 + $0x78] sm:$0xff] }
  0x16   : > { %671 = vmatpush3.bf16.msra.mxu1 %v640_v12  ;;  %645 = vmatprep.subr.bf16.mxu0 %v644_v16 }
  0x17   : > { %664 = vmatprep.subr.bf16.mxu1 %v644_v16 }
  0x19   : > { %647 = vmatpush3.bf16.msra.mxu0 %v644_v16 }
  0x1a   : > { %672 = vmatpush3.bf16.msra.mxu1 %v644_v16  ;;  %649 = vmatprep.subr.bf16.mxu0 %v648_v19 }
  0x1b   : > { %665 = vmatprep.subr.bf16.mxu1 %v648_v19 }
  0x1d   : > { %651 = vmatpush3.bf16.msra.mxu0 %v648_v19 }
  0x1e   : > { %673 = vmatpush3.bf16.msra.mxu1 %v648_v19  ;;  %653 = vmatprep.subr.bf16.mxu0 %v652_v22 }
  0x1f   : > { %666 = vmatprep.subr.bf16.mxu1 %v652_v22 }
  0x21   : > { %655 = vmatpush3.bf16.msra.mxu0 %v652_v22 }
  0x22   : > { %674 = vmatpush3.bf16.msra.mxu1 %v652_v22  ;;  %657 = vmatprep.subr.bf16.mxu0 %v656_v25 }
  0x23   : > { %667 = vmatprep.subr.bf16.mxu1 %v656_v25 }
  0x25   : > { %659 = vmatpush3.bf16.msra.mxu0 %v656_v25 }
  0x26   : > { %675 = vmatpush3.bf16.msra.mxu1 %v656_v25 }
  0x28   : > { %605 = vmatmul.mubr.f32.vlgmr.msra.gmra.mrb[0].mxu0 %v186_v26 }
  0x29   : > { %617 = vmatmul.mubr.f32.vlgmr.msra.gmra.mrb[0].mxu1 %v194_v27  ;;  %607 = vmatprep.mubr.f32.mxu0 %v187_v28 }
  0x2a   : > { %619 = vmatprep.mubr.f32.mxu1 %v195_v29 }
  0x2c   : > { %608 = vmatmul.mubr.f32.gmra.mrb[2].mxu0 %v188_v30 }
  0x2d   : > { %620 = vmatmul.mubr.f32.gmra.mrb[2].mxu1 %v196_v31  ;;  %610 = vmatprep.mubr.f32.mxu0 %v189_v32 }
  0x2e   : > { %622 = vmatprep.mubr.f32.mxu1 %v197_v33 }
  0x30   : > { %611 = vmatmul.mubr.f32.gmra.mrb[4].mxu0 %v190_v34 }
  0x31   : > { %623 = vmatmul.mubr.f32.gmra.mrb[4].mxu1 %v198_v35  ;;  %613 = vmatprep.mubr.f32.mxu0 %v191_v36 }
  0x32   : > { %625 = vmatprep.mubr.f32.mxu1 %v199_v37 }
  0x34   : > { %614 = vmatmul.mubr.f32.gmra.mrb[6].mxu0 %v192_v38 }
  0x35   : > { %626 = vmatmul.mubr.f32.gmra.mrb[6].mxu1 %v200_v39 }
  0xfb   : > { %v606_v40 = vpop.f32.mrb[0].mxu0 }
  0xfc   : > { %v618_v41 = vpop.f32.mrb[0].mxu1  ;;  %363 = vst [vmem:[%s802_s30 + $0x8] sm:$0xff] %v606_v40  ;;  %v400_v42 = vmul.f32 %v606_v40, %v606_v40  ;;  %v283_v43 = vpop.f32.mrb[1].mxu0 }
  0xfd   : > { %371 = vst [vmem:[%s802_s30 + $0x48] sm:$0xff] %v618_v41  ;;  %v323_v44 = vpop.f32.mrb[1].mxu1  ;;  %362 = vst [vmem:[%s802_s30] sm:$0xff] %v283_v43  ;;  %v378_v45 = vadd.f32 %v606_v40, %v283_v43  ;;  %v399_v46 = vmul.f32 %v283_v43, %v283_v43  ;;  %v408_v16 = vmul.f32 %v618_v41, %v618_v41 }
  0xfe   : > { %370 = vst [vmem:[%s802_s30 + $0x40] sm:$0xff] %v323_v44  ;;  %v407_v13 = vmul.f32 %v323_v44, %v323_v44 }
  0xff   : > { %v415_v47 = vadd.f32 %v400_v42, %v399_v46  ;;  %v609_v48 = vpop.f32.mrb[2].mxu0 }
 0x100   : > { %v621_v49 = vpop.f32.mrb[2].mxu1  ;;  %365 = vst [vmem:[%s802_s30 + $0x18] sm:$0xff] %v609_v48  ;;  %v293_v50 = vpop.f32.mrb[3].mxu0  ;;  %v402_v54 = vmul.f32 %v609_v48, %v609_v48 }
 0x101   : > { %373 = vst [vmem:[%s802_s30 + $0x58] sm:$0xff] %v621_v49  ;;  %v333_v51 = vpop.f32.mrb[3].mxu1  ;;  %364 = vst [vmem:[%s802_s30 + $0x10] sm:$0xff] %v293_v50  ;;  %v379_v52 = vadd.f32 %v378_v45, %v293_v50  ;;  %v401_v53 = vmul.f32 %v293_v50, %v293_v50  ;;  %v410_v22 = vmul.f32 %v621_v49, %v621_v49 }
 0x102   : > { %372 = vst [vmem:[%s802_s30 + $0x50] sm:$0xff] %v333_v51  ;;  %v409_v19 = vmul.f32 %v333_v51, %v333_v51 }
 0x103   : > { %v416_v55 = vadd.f32 %v415_v47, %v401_v53  ;;  %v612_v56 = vpop.f32.mrb[4].mxu0  ;;  %v380_v57 = vadd.f32 %v609_v48, %v379_v52 }
 0x104   : > { %v624_v58 = vpop.f32.mrb[4].mxu1  ;;  %367 = vst [vmem:[%s802_s30 + $0x28] sm:$0xff] %v612_v56  ;;  %v303_v59 = vpop.f32.mrb[5].mxu0  ;;  %v404_v0 = vmul.f32 %v612_v56, %v612_v56 }
 0x105   : > { %375 = vst [vmem:[%s802_s30 + $0x68] sm:$0xff] %v624_v58  ;;  %v343_v60 = vpop.f32.mrb[5].mxu1  ;;  %366 = vst [vmem:[%s802_s30 + $0x20] sm:$0xff] %v303_v59  ;;  %v381_v61 = vadd.f32 %v380_v57, %v303_v59  ;;  %v403_v62 = vmul.f32 %v303_v59, %v303_v59  ;;  %v417_v63 = vadd.f32 %v416_v55, %v402_v54 }
 0x106   : > { %374 = vst [vmem:[%s802_s30 + $0x60] sm:$0xff] %v343_v60  ;;  %v411_v25 = vmul.f32 %v343_v60, %v343_v60  ;;  %v412_v28 = vmul.f32 %v624_v58, %v624_v58 }
 0x107   : > { %v418_v1 = vadd.f32 %v417_v63, %v403_v62  ;;  %v615_v2 = vpop.f32.mrb[6].mxu0  ;;  %v382_v3 = vadd.f32 %v612_v56, %v381_v61 }
 0x108   : > { %v627_v4 = vpop.f32.mrb[6].mxu1  ;;  %369 = vst [vmem:[%s802_s30 + $0x38] sm:$0xff] %v615_v2  ;;  %v313_v5 = vpop.f32.mrb[7].mxu0  ;;  %v406_v10 = vmul.f32 %v615_v2, %v615_v2 }
 0x109   : > { %377 = vst [vmem:[%s802_s30 + $0x78] sm:$0xff] %v627_v4  ;;  %v353_v6 = vpop.f32.mrb[7].mxu1  ;;  %368 = vst [vmem:[%s802_s30 + $0x30] sm:$0xff] %v313_v5  ;;  %v383_v7 = vadd.f32 %v382_v3, %v313_v5  ;;  %v405_v8 = vmul.f32 %v313_v5, %v313_v5  ;;  %v419_v9 = vadd.f32 %v418_v1, %v404_v0 }
 0x10a   : > { %376 = vst [vmem:[%s802_s30 + $0x70] sm:$0xff] %v353_v6  ;;  %v413_v31 = vmul.f32 %v353_v6, %v353_v6  ;;  %v414_v34 = vmul.f32 %v627_v4, %v627_v4 }
 0x10b   : > { %v384_v11 = vadd.f32 %v615_v2, %v383_v7  ;;  %v420_v12 = vadd.f32 %v419_v9, %v405_v8 }
 0x10d   : > { %v421_v14 = vadd.f32 %v420_v12, %v406_v10  ;;  %v385_v15 = vadd.f32 %v384_v11, %v323_v44 }
 0x10f   : > { %v422_v17 = vadd.f32 %v421_v14, %v407_v13  ;;  %v386_v18 = vadd.f32 %v618_v41, %v385_v15 }
 0x111   : > { %v387_v20 = vadd.f32 %v386_v18, %v333_v51  ;;  %v423_v21 = vadd.f32 %v422_v17, %v408_v16 }
 0x113   : > { %v424_v23 = vadd.f32 %v423_v21, %v409_v19  ;;  %v388_v24 = vadd.f32 %v621_v49, %v387_v20 }
 0x115   : > { %v389_v26 = vadd.f32 %v388_v24, %v343_v60  ;;  %v425_v27 = vadd.f32 %v424_v23, %v410_v22 }
 0x117   : > { %v426_v29 = vadd.f32 %v425_v27, %v411_v25  ;;  %v390_v30 = vadd.f32 %v624_v58, %v389_v26 }
 0x119   : > { %v391_v32 = vadd.f32 %v390_v30, %v353_v6  ;;  %v427_v33 = vadd.f32 %v426_v29, %v412_v28 }
 0x11b   : > { %v392_v35 = vadd.f32 %v627_v4, %v391_v32  ;;  %v428_v36 = vadd.f32 %v427_v33, %v413_v31 }
 0x11d   : > { %v393_v37 = vrot.slane %v392_v35, 4  ;;  %v429_v38 = vadd.f32 %v428_v36, %v414_v34 }
 0x11f   : > { %v394_v39 = vadd.f32 %v393_v37, %v392_v35  ;;  %v430_v40 = vrot.slane %v429_v38, 4 }
 0x121   : > { %v395_v41 = vrot.slane %v394_v39, 2  ;;  %v431_v42 = vadd.f32 %v430_v40, %v429_v38 }
 0x123   : > { %v396_v43 = vadd.f32 %v395_v41, %v394_v39  ;;  %v432_v44 = vrot.slane %v431_v42, 2 }
 0x125   : > { %v397_v45 = vrot.slane %v396_v43, 1  ;;  %v433_v46 = vadd.f32 %v432_v44, %v431_v42 }
 0x127   : > { %v434_v47 = vrot.slane %v433_v46, 1  ;;  %v398_v48 = vadd.f32 %v397_v45, %v396_v43 }
 0x129   : > { %v435_v49 = vadd.f32 %v434_v47, %v433_v46 }
 0x12b   : > { %v437_v50 = vsel %vm436_vm0, %v398_v48, %v435_v49 }
 0x12c   : > { %v439_v51 = vsel %vm438_vm1, %v437_v50, 0.0 }
 0x12d   : > { %440 = vst [vmem:[%s184_s5] sm:$0xff] %v439_v51 }
 0x12e PF: > { %s14_s12 = sadd.s32 1, %s690_s12  }
 0x12f   : > { %p11_p5 = scmp.ge.s32.totalorder %s14_s12, 6  }
 0x131   :  { %13 = sbr.rel (!%p11_p5) target bundleno = 1 (0x1), region = 70 }

// kernel: bottleneck_forward.6
= control target key start
LH: loop header
LB: loop body
LE: loop exit
PB: predicated region body
PF: predicated region fallthrough
CT: control target
= control target key end

     0   :  { %s840_s18 = smov 0   ;;  %s998_s0 = inlined_call_operand.vmem [shape: f32[512,128], index: 0, kind: input, shape index: {}]   ;;  %s999_s1 = inlined_call_operand.vmem [shape: f32[1,128], index: 1, kind: input, shape index: {}]   ;;  %s1000_s2 = inlined_call_operand.vmem [shape: f32[1,128], index: 2, kind: input, shape index: {}]   ;;  %s1001_s3 = inlined_call_operand.vmem [shape: f32[128,128], index: 3, kind: input, shape index: {}]   ;;  %s1002_s4 = inlined_call_operand.vmem [shape: f32[512,128], index: 4, kind: output, shape index: {0}]   ;;  %s1003_s5 = inlined_call_operand.vmem [shape: f32[4,8,128], index: 5, kind: output, shape index: {1}]  }
   0x1 LB: > { %s846_s19 = sadd.s32 4294967295, %s808_s18   ;;  %p648_p0 = scmp.ge.s32.totalorder %s808_s18, 1  ;;  %s808_s18 = sphi %s840_s18, %s16_s18  }
   0x2   : > { %p191_p1 = scmp.lt.s32.totalorder %s808_s18, 5 }
   0x4   : > { %p192_p2 = pnand %p648_p0, %p191_p1 }
   0x5   : > { %v317_v0 = vld [vmem:[%s1001_s3] sm:$0xff] (!%p192_p2)  ;;  %v318_v1 = vld [vmem:[%s1001_s3 + $0x8] sm:$0xff] (!%p192_p2)  ;;  %v319_v2 = vld [vmem:[%s1001_s3 + $0x10] sm:$0xff] (!%p192_p2)  ;;  %s649_s26 = sshll.u32 (!%p192_p2), %s846_s19, 4  ;;  %p235_p4 = scmp.lt.s32.totalorder (!%p192_p2), %s846_s19, 3  ;;  %vm552_vm0 = vcmask (!%p192_p2), 1040384  }
   0x6   : > { %195 = sbr.rel (%p192_p2) target bundleno = 302 (0x12e), region = 36  ;;  %v746_v3 = vpack.c.bf16 (!%p192_p2), %v318_v1, %v317_v0  ;;  %v320_v4 = vld [vmem:[%s1001_s3 + $0x18] sm:$0xff] (!%p192_p2)  ;;  %p224_p3 = scmp.lt.s32.totalorder (!%p192_p2), %s649_s26, 63  ;;  %v321_v6 = vld [vmem:[%s1001_s3 + $0x20] sm:$0xff] (!%p192_p2)  ;;  %v322_v7 = vld [vmem:[%s1001_s3 + $0x28] sm:$0xff] (!%p192_p2)  ;;  %vm554_vm1 = vcmask (!%p192_p2), 1041408  }
   0x7   : > { %v750_v5 = vpack.c.bf16 (!%p192_p2), %v320_v4, %v319_v2  ;;  %v754_v8 = vpack.c.bf16 (!%p192_p2), %v322_v7, %v321_v6  ;;  %v875_v9 = vld [vmem:[%s999_s1] ss:$0 sm:$0xff] (!%p192_p2)  ;;  %v323_v10 = vld [vmem:[%s1001_s3 + $0x30] sm:$0xff] (!%p192_p2)  ;;  %v324_v11 = vld [vmem:[%s1001_s3 + $0x38] sm:$0xff] (!%p192_p2) }
   0x8   : > { %747 = vmatprep.subr.bf16.mxu0 (!%p192_p2), %v746_v3  ;;  %778 = vmatprep.subr.bf16.mxu1 (!%p192_p2), %v746_v3  ;;  %v894_v13 = vld [vmem:[%s1000_s2] ss:$0 sm:$0xff] (!%p192_p2)  ;;  %v758_v15 = vpack.c.bf16 (!%p192_p2), %v324_v11, %v323_v10  ;;  %v326_v17 = vld [vmem:[%s1001_s3 + $0x48] sm:$0xff] (!%p192_p2)  ;;  %v327_v22 = vld [vmem:[%s1001_s3 + $0x50] sm:$0xff] (!%p192_p2) }
   0x9   : > { %749 = vmatpush3.bf16.msra.mxu0 (!%p192_p2), %v746_v3  ;;  %786 = vmatpush3.bf16.msra.mxu1 (!%p192_p2), %v746_v3  ;;  %v325_v16 = vld [vmem:[%s1001_s3 + $0x40] sm:$0xff] (!%p192_p2)  ;;  %v328_v23 = vld [vmem:[%s1001_s3 + $0x58] sm:$0xff] (!%p192_p2)  ;;  %v330_v28 = vld [vmem:[%s1001_s3 + $0x68] sm:$0xff] (!%p192_p2) }
   0xa   : > { %751 = vmatprep.subr.bf16.mxu0 (!%p192_p2), %v750_v5  ;;  %779 = vmatprep.subr.bf16.mxu1 (!%p192_p2), %v750_v5  ;;  %v762_v21 = vpack.c.bf16 (!%p192_p2), %v326_v17, %v325_v16  ;;  %v766_v26 = vpack.c.bf16 (!%p192_p2), %v328_v23, %v327_v22  ;;  %v329_v27 = vld [vmem:[%s1001_s3 + $0x60] sm:$0xff] (!%p192_p2)  ;;  %v331_v35 = vld [vmem:[%s1001_s3 + $0x70] sm:$0xff] (!%p192_p2)  ;;  %v332_v36 = vld [vmem:[%s1001_s3 + $0x78] sm:$0xff] (!%p192_p2) }
   0xb   : > { %v770_v32 = vpack.c.bf16 (!%p192_p2), %v330_v28, %v329_v27  ;;  %v774_v44 = vpack.c.bf16 (!%p192_p2), %v332_v36, %v331_v35 }
   0xd   : > { %s1005_s26 = smov (!%p224_p3, %s649_s26), 63  ;;  %753 = vmatpush3.bf16.msra.mxu0 %v750_v5  ;;  %787 = vmatpush3.bf16.msra.mxu1 %v750_v5  ;;  %s1007_s19 = smov (!%p235_p4, %s846_s19), 3 }
   0xe   : > { %s650_s8 = sshll.u32 %s1005_s26, 3  ;;  %755 = vmatprep.subr.bf16.mxu0 %v754_v8  ;;  %780 = vmatprep.subr.bf16.mxu1 %v754_v8  ;;  %s653_s26 = sshll.u32 %s1007_s19, 3 }
   0xf   : > { %s888_s17 = scalar_lea.vmem %s998_s0, %s650_s8  ;;  %s238_s21 = scalar_lea.vmem %s1003_s5, %s653_s26 }
  0x10   : > { %v239_v12 = vld [vmem:[%s888_s17] sm:$0xff]  ;;  %v240_v30 = vld [vmem:[%s888_s17 + $0x8] sm:$0xff]  ;;  %v241_v33 = vld [vmem:[%s888_s17 + $0x10] sm:$0xff] }
  0x11   : > { %v262_v14 = vmul.f32 %v875_v9, %v239_v12  ;;  %v247_v19 = vld [vmem:[%s888_s17 + $0x40] sm:$0xff]  ;;  %757 = vmatpush3.bf16.msra.mxu0 %v754_v8  ;;  %788 = vmatpush3.bf16.msra.mxu1 %v754_v8  ;;  %v248_v31 = vld [vmem:[%s888_s17 + $0x48] sm:$0xff]  ;;  %v249_v34 = vld [vmem:[%s888_s17 + $0x50] sm:$0xff]  ;;  %v263_v37 = vmul.f32 %v875_v9, %v240_v30  ;;  %v264_v41 = vmul.f32 %v875_v9, %v241_v33 }
  0x12   : > { %759 = vmatprep.subr.bf16.mxu0 %v758_v15  ;;  %781 = vmatprep.subr.bf16.mxu1 %v758_v15  ;;  %v270_v24 = vmul.f32 %v875_v9, %v247_v19  ;;  %v242_v38 = vld [vmem:[%s888_s17 + $0x18] sm:$0xff]  ;;  %v243_v39 = vld [vmem:[%s888_s17 + $0x20] sm:$0xff]  ;;  %v271_v40 = vmul.f32 %v875_v9, %v248_v31  ;;  %v272_v42 = vmul.f32 %v875_v9, %v249_v34  ;;  %v244_v49 = vld [vmem:[%s888_s17 + $0x28] sm:$0xff] }
  0x13   : > { %v285_v18 = vadd.f32 %v894_v13, %v262_v14  ;;  %v250_v43 = vld [vmem:[%s888_s17 + $0x58] sm:$0xff]  ;;  %v251_v45 = vld [vmem:[%s888_s17 + $0x60] sm:$0xff]  ;;  %v265_v46 = vmul.f32 %v875_v9, %v242_v38  ;;  %v266_v47 = vmul.f32 %v875_v9, %v243_v39  ;;  %v286_v48 = vadd.f32 %v894_v13, %v263_v37  ;;  %v245_v50 = vld [vmem:[%s888_s17 + $0x30] sm:$0xff] }
  0x14   : > { %v293_v25 = vadd.f32 %v894_v13, %v270_v24  ;;  %v294_v51 = vadd.f32 %v894_v13, %v271_v40  ;;  %v273_v52 = vmul.f32 %v875_v9, %v250_v43  ;;  %v287_v53 = vadd.f32 %v894_v13, %v264_v41  ;;  %v252_v56 = vld [vmem:[%s888_s17 + $0x68] sm:$0xff]  ;;  %v253_v57 = vld [vmem:[%s888_s17 + $0x70] sm:$0xff]  ;;  %v246_v63 = vld [vmem:[%s888_s17 + $0x38] sm:$0xff] }
  0x15   : > { %v301_v20 = vmax.f32 %v285_v18, 0.0  ;;  %761 = vmatpush3.bf16.msra.mxu0 %v758_v15  ;;  %789 = vmatpush3.bf16.msra.mxu1 %v758_v15  ;;  %v295_v54 = vadd.f32 %v894_v13, %v272_v42  ;;  %v274_v55 = vmul.f32 %v875_v9, %v251_v45  ;;  %v288_v58 = vadd.f32 %v894_v13, %v265_v46  ;;  %v254_v7 = vld [vmem:[%s888_s17 + $0x78] sm:$0xff]  ;;  %s972_s17 = scalar_lea.vmem %s1002_s4, %s650_s8 }
  0x16   : > { %763 = vmatprep.subr.bf16.mxu0 %v762_v21  ;;  %782 = vmatprep.subr.bf16.mxu1 %v762_v21  ;;  %v309_v29 = vmax.f32 %v293_v25, 0.0  ;;  %v289_v59 = vadd.f32 %v894_v13, %v266_v47  ;;  %v267_v60 = vmul.f32 %v875_v9, %v244_v49  ;;  %v268_v61 = vmul.f32 %v875_v9, %v245_v50 }
  0x17   : > { %722 = vmatprep.mubr.f32.mxu0 %v301_v20  ;;  %v302_v62 = vmax.f32 %v286_v48, 0.0  ;;  %v310_v0 = vmax.f32 %v294_v51, 0.0  ;;  %v296_v1 = vadd.f32 %v894_v13, %v273_v52  ;;  %v275_v2 = vmul.f32 %v875_v9, %v252_v56 }
  0x18   : > { %734 = vmatprep.mubr.f32.mxu1 %v309_v29  ;;  %v303_v3 = vmax.f32 %v287_v53, 0.0  ;;  %v311_v4 = vmax.f32 %v295_v54, 0.0  ;;  %v297_v5 = vadd.f32 %v894_v13, %v274_v55  ;;  %v276_v6 = vmul.f32 %v875_v9, %v253_v57 }
  0x19   : > { %765 = vmatpush3.bf16.msra.mxu0 %v762_v21  ;;  %790 = vmatpush3.bf16.msra.mxu1 %v762_v21  ;;  %v290_v8 = vadd.f32 %v894_v13, %v267_v60  ;;  %v269_v10 = vmul.f32 %v875_v9, %v246_v63  ;;  %v304_v11 = vmax.f32 %v288_v58, 0.0  ;;  %v312_v12 = vmax.f32 %v296_v1, 0.0 }
  0x1a   : > { %767 = vmatprep.subr.bf16.mxu0 %v766_v26  ;;  %783 = vmatprep.subr.bf16.mxu1 %v766_v26  ;;  %v298_v14 = vadd.f32 %v894_v13, %v275_v2  ;;  %v277_v15 = vmul.f32 %v875_v9, %v254_v7  ;;  %v305_v16 = vmax.f32 %v289_v59, 0.0  ;;  %v291_v17 = vadd.f32 %v894_v13, %v268_v61 }
  0x1b   : > { %v313_v18 = vmax.f32 %v297_v5, 0.0  ;;  %v299_v19 = vadd.f32 %v894_v13, %v276_v6  ;;  %v306_v20 = vmax.f32 %v290_v8, 0.0  ;;  %v292_v21 = vadd.f32 %v894_v13, %v269_v10 }
  0x1c   : > { %v314_v22 = vmax.f32 %v298_v14, 0.0  ;;  %v300_v23 = vadd.f32 %v894_v13, %v277_v15  ;;  %v307_v24 = vmax.f32 %v291_v17, 0.0 }
  0x1d   : > { %769 = vmatpush3.bf16.msra.mxu0 %v766_v26  ;;  %791 = vmatpush3.bf16.msra.mxu1 %v766_v26  ;;  %v315_v9 = vmax.f32 %v299_v19, 0.0  ;;  %v308_v25 = vmax.f32 %v292_v21, 0.0 }
  0x1e   : > { %771 = vmatprep.subr.bf16.mxu0 %v770_v32  ;;  %784 = vmatprep.subr.bf16.mxu1 %v770_v32  ;;  %v316_v26 = vmax.f32 %v300_v23, 0.0 }
  0x21   : > { %773 = vmatpush3.bf16.msra.mxu0 %v770_v32  ;;  %792 = vmatpush3.bf16.msra.mxu1 %v770_v32 }
  0x22   : > { %775 = vmatprep.subr.bf16.mxu0 %v774_v44  ;;  %785 = vmatprep.subr.bf16.mxu1 %v774_v44 }
  0x25   : > { %777 = vmatpush3.bf16.msra.mxu0 %v774_v44  ;;  %793 = vmatpush3.bf16.msra.mxu1 %v774_v44 }
  0x28   : > { %723 = vmatmul.mubr.f32.vlgmr.msra.gmra.mrb[0].mxu0 %v302_v62  ;;  %735 = vmatmul.mubr.f32.vlgmr.msra.gmra.mrb[0].mxu1 %v310_v0 }
  0x29   : > { %725 = vmatprep.mubr.f32.mxu0 %v303_v3  ;;  %737 = vmatprep.mubr.f32.mxu1 %v311_v4 }
  0x2c   : > { %726 = vmatmul.mubr.f32.gmra.mrb[2].mxu0 %v304_v11  ;;  %738 = vmatmul.mubr.f32.gmra.mrb[2].mxu1 %v312_v12 }
  0x2d   : > { %728 = vmatprep.mubr.f32.mxu0 %v305_v16  ;;  %740 = vmatprep.mubr.f32.mxu1 %v313_v18 }
  0x30   : > { %729 = vmatmul.mubr.f32.gmra.mrb[4].mxu0 %v306_v20  ;;  %741 = vmatmul.mubr.f32.gmra.mrb[4].mxu1 %v314_v22 }
  0x31   : > { %731 = vmatprep.mubr.f32.mxu0 %v307_v24  ;;  %743 = vmatprep.mubr.f32.mxu1 %v315_v9 }
  0x34   : > { %732 = vmatmul.mubr.f32.gmra.mrb[6].mxu0 %v308_v25  ;;  %744 = vmatmul.mubr.f32.gmra.mrb[6].mxu1 %v316_v26 }
  0xfb   : > { %v724_v13 = vpop.f32.mrb[0].mxu0  ;;  %v736_v27 = vpop.f32.mrb[0].mxu1 }
  0xfc   : > { %479 = vst [vmem:[%s972_s17 + $0x8] sm:$0xff] %v724_v13  ;;  %v516_v28 = vmul.f32 %v724_v13, %v724_v13  ;;  %v399_v29 = vpop.f32.mrb[1].mxu0  ;;  %487 = vst [vmem:[%s972_s17 + $0x48] sm:$0xff] %v736_v27  ;;  %v439_v30 = vpop.f32.mrb[1].mxu1  ;;  %v524_v2 = vmul.f32 %v736_v27, %v736_v27 }
  0xfd   : > { %478 = vst [vmem:[%s972_s17] sm:$0xff] %v399_v29  ;;  %v494_v31 = vadd.f32 %v724_v13, %v399_v29  ;;  %v515_v32 = vmul.f32 %v399_v29, %v399_v29  ;;  %486 = vst [vmem:[%s972_s17 + $0x40] sm:$0xff] %v439_v30  ;;  %v523_v63 = vmul.f32 %v439_v30, %v439_v30 }
  0xff   : > { %v531_v33 = vadd.f32 %v516_v28, %v515_v32  ;;  %v727_v34 = vpop.f32.mrb[2].mxu0  ;;  %v739_v35 = vpop.f32.mrb[2].mxu1 }
 0x100   : > { %481 = vst [vmem:[%s972_s17 + $0x18] sm:$0xff] %v727_v34  ;;  %v409_v36 = vpop.f32.mrb[3].mxu0  ;;  %489 = vst [vmem:[%s972_s17 + $0x58] sm:$0xff] %v739_v35  ;;  %v449_v37 = vpop.f32.mrb[3].mxu1  ;;  %v518_v40 = vmul.f32 %v727_v34, %v727_v34  ;;  %v526_v8 = vmul.f32 %v739_v35, %v739_v35 }
 0x101   : > { %480 = vst [vmem:[%s972_s17 + $0x10] sm:$0xff] %v409_v36  ;;  %v495_v38 = vadd.f32 %v494_v31, %v409_v36  ;;  %v517_v39 = vmul.f32 %v409_v36, %v409_v36  ;;  %488 = vst [vmem:[%s972_s17 + $0x50] sm:$0xff] %v449_v37  ;;  %v525_v5 = vmul.f32 %v449_v37, %v449_v37 }
 0x103   : > { %v532_v41 = vadd.f32 %v531_v33, %v517_v39  ;;  %v730_v42 = vpop.f32.mrb[4].mxu0  ;;  %v496_v43 = vadd.f32 %v727_v34, %v495_v38  ;;  %v742_v44 = vpop.f32.mrb[4].mxu1 }
 0x104   : > { %483 = vst [vmem:[%s972_s17 + $0x28] sm:$0xff] %v730_v42  ;;  %v419_v45 = vpop.f32.mrb[5].mxu0  ;;  %491 = vst [vmem:[%s972_s17 + $0x68] sm:$0xff] %v742_v44  ;;  %v459_v46 = vpop.f32.mrb[5].mxu1  ;;  %v520_v50 = vmul.f32 %v730_v42, %v730_v42  ;;  %v528_v16 = vmul.f32 %v742_v44, %v742_v44 }
 0x105   : > { %482 = vst [vmem:[%s972_s17 + $0x20] sm:$0xff] %v419_v45  ;;  %v497_v47 = vadd.f32 %v496_v43, %v419_v45  ;;  %v519_v48 = vmul.f32 %v419_v45, %v419_v45  ;;  %v533_v49 = vadd.f32 %v532_v41, %v518_v40  ;;  %490 = vst [vmem:[%s972_s17 + $0x60] sm:$0xff] %v459_v46 }
 0x106   : > { %v527_v12 = vmul.f32 %v459_v46, %v459_v46 }
 0x107   : > { %v534_v51 = vadd.f32 %v533_v49, %v519_v48  ;;  %v733_v52 = vpop.f32.mrb[6].mxu0  ;;  %v498_v53 = vadd.f32 %v730_v42, %v497_v47  ;;  %v745_v54 = vpop.f32.mrb[6].mxu1 }
 0x108   : > { %485 = vst [vmem:[%s972_s17 + $0x38] sm:$0xff] %v733_v52  ;;  %v429_v55 = vpop.f32.mrb[7].mxu0  ;;  %493 = vst [vmem:[%s972_s17 + $0x78] sm:$0xff] %v745_v54  ;;  %v469_v56 = vpop.f32.mrb[7].mxu1  ;;  %v522_v60 = vmul.f32 %v733_v52, %v733_v52  ;;  %v530_v22 = vmul.f32 %v745_v54, %v745_v54 }
 0x109   : > { %484 = vst [vmem:[%s972_s17 + $0x30] sm:$0xff] %v429_v55  ;;  %v499_v57 = vadd.f32 %v498_v53, %v429_v55  ;;  %v521_v58 = vmul.f32 %v429_v55, %v429_v55  ;;  %v535_v59 = vadd.f32 %v534_v51, %v520_v50  ;;  %492 = vst [vmem:[%s972_s17 + $0x70] sm:$0xff] %v469_v56 }
 0x10a   : > { %v529_v19 = vmul.f32 %v469_v56, %v469_v56 }
 0x10b   : > { %v500_v61 = vadd.f32 %v733_v52, %v499_v57  ;;  %v536_v62 = vadd.f32 %v535_v59, %v521_v58 }
 0x10d   : > { %v537_v0 = vadd.f32 %v536_v62, %v522_v60  ;;  %v501_v1 = vadd.f32 %v500_v61, %v439_v30 }
 0x10f   : > { %v538_v3 = vadd.f32 %v537_v0, %v523_v63  ;;  %v502_v4 = vadd.f32 %v736_v27, %v501_v1 }
 0x111   : > { %v503_v6 = vadd.f32 %v502_v4, %v449_v37  ;;  %v539_v7 = vadd.f32 %v538_v3, %v524_v2 }
 0x113   : > { %v540_v10 = vadd.f32 %v539_v7, %v525_v5  ;;  %v504_v11 = vadd.f32 %v739_v35, %v503_v6 }
 0x115   : > { %v505_v14 = vadd.f32 %v504_v11, %v459_v46  ;;  %v541_v15 = vadd.f32 %v540_v10, %v526_v8 }
 0x117   : > { %v542_v17 = vadd.f32 %v541_v15, %v527_v12  ;;  %v506_v18 = vadd.f32 %v742_v44, %v505_v14 }
 0x119   : > { %v507_v20 = vadd.f32 %v506_v18, %v469_v56  ;;  %v543_v21 = vadd.f32 %v542_v17, %v528_v16 }
 0x11b   : > { %v508_v23 = vadd.f32 %v745_v54, %v507_v20  ;;  %v544_v24 = vadd.f32 %v543_v21, %v529_v19 }
 0x11d   : > { %v509_v9 = vrot.slane %v508_v23, 4  ;;  %v545_v25 = vadd.f32 %v544_v24, %v530_v22 }
 0x11f   : > { %v510_v26 = vadd.f32 %v509_v9, %v508_v23  ;;  %v546_v13 = vrot.slane %v545_v25, 4 }
 0x121   : > { %v511_v27 = vrot.slane %v510_v26, 2  ;;  %v547_v28 = vadd.f32 %v546_v13, %v545_v25 }
 0x123   : > { %v512_v29 = vadd.f32 %v511_v27, %v510_v26  ;;  %v548_v30 = vrot.slane %v547_v28, 2 }
 0x125   : > { %v513_v31 = vrot.slane %v512_v29, 1  ;;  %v549_v32 = vadd.f32 %v548_v30, %v547_v28 }
 0x127   : > { %v550_v33 = vrot.slane %v549_v32, 1  ;;  %v514_v34 = vadd.f32 %v513_v31, %v512_v29 }
 0x129   : > { %v551_v35 = vadd.f32 %v550_v33, %v549_v32 }
 0x12b   : > { %v553_v36 = vsel %vm552_vm0, %v514_v34, %v551_v35 }
 0x12c   : > { %v555_v37 = vsel %vm554_vm1, %v553_v36, 0.0 }
 0x12d   : > { %556 = vst [vmem:[%s238_s21] sm:$0xff] %v555_v37 }
 0x12e PF: > { %s16_s18 = sadd.s32 1, %s808_s18  }
 0x12f   : > { %p13_p5 = scmp.ge.s32.totalorder %s16_s18, 6  }
 0x131   :  { %15 = sbr.rel (!%p13_p5) target bundleno = 1 (0x1), region = 78 }

// kernel: bottleneck_forward.7
= control target key start
LH: loop header
LB: loop body
LE: loop exit
PB: predicated region body
PF: predicated region fallthrough
CT: control target
= control target key end

     0   :  { %s473_s15 = smov 0   ;;  %s558_s0 = inlined_call_operand.vmem [shape: f32[512,128], index: 0, kind: input, shape index: {}, may-alias: {0,4}]   ;;  %s559_s1 = inlined_call_operand.vmem [shape: f32[1,128], index: 1, kind: input, shape index: {}]   ;;  %s560_s2 = inlined_call_operand.vmem [shape: f32[1,128], index: 2, kind: input, shape index: {}]   ;;  %s561_s3 = inlined_call_operand.vmem [shape: f32[512,128], index: 3, kind: input, shape index: {}]   ;;  %s562_s4 = inlined_call_operand.vmem [shape: f32[512,128], index: 4, kind: output, shape index: {}, may-alias: {0,4}]  }
   0x1 LB: > { %s417_s16 = sadd.s32 4294967295, %s446_s15   ;;  %p421_p0 = scmp.ge.s32.totalorder %s446_s15, 1  ;;  %s446_s15 = sphi %s473_s15, %s14_s15  }
   0x2   : > { %p174_p1 = scmp.lt.s32.totalorder %s446_s15, 5 }
   0x4   : > { %p175_p2 = pnand %p421_p0, %p174_p1 }
   0x5   : > { %s422_s17 = sshll.u32 (!%p175_p2), %s417_s16, 4  ;;  %v428_v0 = vld [vmem:[%s559_s1] ss:$0 sm:$0xff] (!%p175_p2) }
   0x6   : > { %178 = sbr.rel (%p175_p2) target bundleno = 39 (0x27), region = 36  ;;  %p206_p3 = scmp.lt.s32.totalorder (!%p175_p2), %s422_s17, 63  ;;  %v429_v1 = vld [vmem:[%s560_s2] ss:$0 sm:$0xff] (!%p175_p2) }
   0xd   : > { %s564_s17 = smov (!%p206_p3, %s422_s17), 63 }
   0xe   : > { %s481_s18 = sshll.u32 %s564_s17, 3 }
   0xf   : > { %s490_s23 = scalar_lea.vmem %s558_s0, %s481_s18  ;;  %s505_s28 = scalar_lea.vmem %s561_s3, %s481_s18 }
  0x10   : > { %v223_v2 = vld [vmem:[%s490_s23] sm:$0xff]  ;;  %v224_v3 = vld [vmem:[%s490_s23 + $0x8] sm:$0xff]  ;;  %v225_v4 = vld [vmem:[%s490_s23 + $0x10] sm:$0xff]  ;;  %s537_s5 = scalar_lea.vmem %s562_s4, %s481_s18 }
  0x11   : > { %v226_v5 = vld [vmem:[%s490_s23 + $0x18] sm:$0xff]  ;;  %v227_v6 = vld [vmem:[%s490_s23 + $0x20] sm:$0xff]  ;;  %v228_v7 = vld [vmem:[%s490_s23 + $0x28] sm:$0xff]  ;;  %v246_v8 = vmul.f32 %v428_v0, %v223_v2  ;;  %v247_v9 = vmul.f32 %v428_v0, %v224_v3  ;;  %v248_v10 = vmul.f32 %v428_v0, %v225_v4 }
  0x12   : > { %v229_v11 = vld [vmem:[%s490_s23 + $0x30] sm:$0xff]  ;;  %v230_v12 = vld [vmem:[%s490_s23 + $0x38] sm:$0xff]  ;;  %v231_v13 = vld [vmem:[%s490_s23 + $0x40] sm:$0xff]  ;;  %v249_v14 = vmul.f32 %v428_v0, %v226_v5  ;;  %v250_v15 = vmul.f32 %v428_v0, %v227_v6  ;;  %v251_v16 = vmul.f32 %v428_v0, %v228_v7 }
  0x13   : > { %v232_v17 = vld [vmem:[%s490_s23 + $0x48] sm:$0xff]  ;;  %v233_v18 = vld [vmem:[%s490_s23 + $0x50] sm:$0xff]  ;;  %v234_v19 = vld [vmem:[%s490_s23 + $0x58] sm:$0xff]  ;;  %v252_v20 = vmul.f32 %v428_v0, %v229_v11  ;;  %v253_v21 = vmul.f32 %v428_v0, %v230_v12  ;;  %v254_v22 = vmul.f32 %v428_v0, %v231_v13  ;;  %v269_v23 = vadd.f32 %v429_v1, %v246_v8 }
  0x14   : > { %v235_v24 = vld [vmem:[%s490_s23 + $0x60] sm:$0xff]  ;;  %v236_v25 = vld [vmem:[%s490_s23 + $0x68] sm:$0xff]  ;;  %v237_v26 = vld [vmem:[%s490_s23 + $0x70] sm:$0xff]  ;;  %v255_v27 = vmul.f32 %v428_v0, %v232_v17  ;;  %v256_v28 = vmul.f32 %v428_v0, %v233_v18  ;;  %v257_v29 = vmul.f32 %v428_v0, %v234_v19  ;;  %v270_v30 = vadd.f32 %v429_v1, %v247_v9 }
  0x15   : > { %v238_v31 = vld [vmem:[%s490_s23 + $0x78] sm:$0xff]  ;;  %v258_v32 = vmul.f32 %v428_v0, %v235_v24  ;;  %v259_v33 = vmul.f32 %v428_v0, %v236_v25  ;;  %v260_v34 = vmul.f32 %v428_v0, %v237_v26  ;;  %v271_v35 = vadd.f32 %v429_v1, %v248_v10  ;;  %v285_v36 = vld [vmem:[%s505_s28] sm:$0xff]  ;;  %v286_v37 = vld [vmem:[%s505_s28 + $0x8] sm:$0xff] }
  0x16   : > { %v261_v38 = vmul.f32 %v428_v0, %v238_v31  ;;  %v272_v39 = vadd.f32 %v429_v1, %v249_v14  ;;  %v273_v40 = vadd.f32 %v429_v1, %v250_v15  ;;  %v274_v41 = vadd.f32 %v429_v1, %v251_v16  ;;  %v287_v42 = vld [vmem:[%s505_s28 + $0x10] sm:$0xff]  ;;  %v288_v43 = vld [vmem:[%s505_s28 + $0x18] sm:$0xff]  ;;  %v289_v44 = vld [vmem:[%s505_s28 + $0x20] sm:$0xff] }
  0x17   : > { %v275_v45 = vadd.f32 %v429_v1, %v252_v20  ;;  %v276_v46 = vadd.f32 %v429_v1, %v253_v21  ;;  %v277_v47 = vadd.f32 %v429_v1, %v254_v22  ;;  %v278_v48 = vadd.f32 %v429_v1, %v255_v27  ;;  %v290_v49 = vld [vmem:[%s505_s28 + $0x28] sm:$0xff]  ;;  %v291_v50 = vld [vmem:[%s505_s28 + $0x30] sm:$0xff]  ;;  %v292_v51 = vld [vmem:[%s505_s28 + $0x38] sm:$0xff] }
  0x18   : > { %v279_v52 = vadd.f32 %v429_v1, %v256_v28  ;;  %v280_v53 = vadd.f32 %v429_v1, %v257_v29  ;;  %v281_v54 = vadd.f32 %v429_v1, %v258_v32  ;;  %v282_v55 = vadd.f32 %v429_v1, %v259_v33  ;;  %v293_v56 = vld [vmem:[%s505_s28 + $0x40] sm:$0xff]  ;;  %v294_v57 = vld [vmem:[%s505_s28 + $0x48] sm:$0xff]  ;;  %v295_v58 = vld [vmem:[%s505_s28 + $0x50] sm:$0xff] }
  0x19   : > { %v283_v59 = vadd.f32 %v429_v1, %v260_v34  ;;  %v284_v60 = vadd.f32 %v429_v1, %v261_v38  ;;  %v296_v61 = vld [vmem:[%s505_s28 + $0x58] sm:$0xff]  ;;  %v297_v62 = vld [vmem:[%s505_s28 + $0x60] sm:$0xff]  ;;  %v298_v63 = vld [vmem:[%s505_s28 + $0x68] sm:$0xff]  ;;  %v301_v0 = vadd.f32 %v285_v36, %v269_v23  ;;  %v302_v2 = vadd.f32 %v286_v37, %v270_v30 }
  0x1a   : > { %v299_v3 = vld [vmem:[%s505_s28 + $0x70] sm:$0xff]  ;;  %v300_v4 = vld [vmem:[%s505_s28 + $0x78] sm:$0xff]  ;;  %v303_v5 = vadd.f32 %v287_v42, %v271_v35  ;;  %v304_v6 = vadd.f32 %v288_v43, %v272_v39  ;;  %v305_v7 = vadd.f32 %v289_v44, %v273_v40  ;;  %v306_v8 = vadd.f32 %v290_v49, %v274_v41 }
  0x1b   : > { %v307_v9 = vadd.f32 %v291_v50, %v275_v45  ;;  %v308_v10 = vadd.f32 %v292_v51, %v276_v46  ;;  %v309_v11 = vadd.f32 %v293_v56, %v277_v47  ;;  %v310_v12 = vadd.f32 %v294_v57, %v278_v48 }
  0x1c   : > { %v311_v1 = vadd.f32 %v295_v58, %v279_v52  ;;  %v312_v13 = vadd.f32 %v296_v61, %v280_v53  ;;  %v313_v14 = vadd.f32 %v297_v62, %v281_v54  ;;  %v314_v15 = vadd.f32 %v298_v63, %v282_v55 }
  0x1d   : > { %v315_v16 = vadd.f32 %v299_v3, %v283_v59  ;;  %v316_v17 = vadd.f32 %v300_v4, %v284_v60  ;;  %v317_v18 = vmax.f32 %v301_v0, 0.0  ;;  %v318_v19 = vmax.f32 %v302_v2, 0.0 }
  0x1e   : > { %v319_v20 = vmax.f32 %v303_v5, 0.0  ;;  %v320_v21 = vmax.f32 %v304_v6, 0.0  ;;  %v321_v22 = vmax.f32 %v305_v7, 0.0  ;;  %v322_v23 = vmax.f32 %v306_v8, 0.0 }
  0x1f   : > { %v323_v24 = vmax.f32 %v307_v9, 0.0  ;;  %v324_v25 = vmax.f32 %v308_v10, 0.0  ;;  %v325_v26 = vmax.f32 %v309_v11, 0.0  ;;  %v326_v27 = vmax.f32 %v310_v12, 0.0  ;;  %333 = vst [vmem:[%s537_s5] sm:$0xff] %v317_v18  ;;  %334 = vst [vmem:[%s537_s5 + $0x8] sm:$0xff] %v318_v19 }
  0x20   : > { %v327_v28 = vmax.f32 %v311_v1, 0.0  ;;  %v328_v29 = vmax.f32 %v312_v13, 0.0  ;;  %v329_v30 = vmax.f32 %v313_v14, 0.0  ;;  %v330_v31 = vmax.f32 %v314_v15, 0.0  ;;  %335 = vst [vmem:[%s537_s5 + $0x10] sm:$0xff] %v319_v20  ;;  %336 = vst [vmem:[%s537_s5 + $0x18] sm:$0xff] %v320_v21 }
  0x21   : > { %337 = vst [vmem:[%s537_s5 + $0x20] sm:$0xff] %v321_v22  ;;  %338 = vst [vmem:[%s537_s5 + $0x28] sm:$0xff] %v322_v23  ;;  %v331_v32 = vmax.f32 %v315_v16, 0.0  ;;  %v332_v33 = vmax.f32 %v316_v17, 0.0 }
  0x22   : > { %339 = vst [vmem:[%s537_s5 + $0x30] sm:$0xff] %v323_v24  ;;  %340 = vst [vmem:[%s537_s5 + $0x38] sm:$0xff] %v324_v25 }
  0x23   : > { %341 = vst [vmem:[%s537_s5 + $0x40] sm:$0xff] %v325_v26  ;;  %342 = vst [vmem:[%s537_s5 + $0x48] sm:$0xff] %v326_v27 }
  0x24   : > { %343 = vst [vmem:[%s537_s5 + $0x50] sm:$0xff] %v327_v28  ;;  %344 = vst [vmem:[%s537_s5 + $0x58] sm:$0xff] %v328_v29 }
  0x25   : > { %345 = vst [vmem:[%s537_s5 + $0x60] sm:$0xff] %v329_v30  ;;  %346 = vst [vmem:[%s537_s5 + $0x68] sm:$0xff] %v330_v31 }
  0x26   : > { %347 = vst [vmem:[%s537_s5 + $0x70] sm:$0xff] %v331_v32  ;;  %348 = vst [vmem:[%s537_s5 + $0x78] sm:$0xff] %v332_v33 }
  0x27 PF: > { %s14_s15 = sadd.s32 1, %s446_s15  }
  0x28   : > { %p11_p4 = scmp.ge.s32.totalorder %s14_s15, 6  }
  0x2a   :  { %13 = sbr.rel (!%p11_p4) target bundleno = 1 (0x1), region = 69 }

// kernel: bottleneck_forward.5
= control target key start
LH: loop header
LB: loop body
LE: loop exit
PB: predicated region body
PF: predicated region fallthrough
CT: control target
= control target key end

     0   :  { %s5443_s18 = smov 0   ;;  %s7121_s0 = inlined_call_operand.vmem [shape: f32[2,18,18,128], index: 0, kind: input, shape index: {}]   ;;  %s7122_s1 = inlined_call_operand.vmem [shape: f32[9,128,128], index: 1, kind: input, shape index: {}]   ;;  %s7123_s2 = inlined_call_operand.vmem [shape: f32[1,128], index: 2, kind: input, shape index: {}]   ;;  %s7124_s3 = inlined_call_operand.vmem [shape: f32[1,128], index: 3, kind: input, shape index: {}]   ;;  %s7125_s4 = inlined_call_operand.vmem [shape: f32[2,256,128], index: 4, kind: output, shape index: {0}]   ;;  %s7126_s5 = inlined_call_operand.vmem [shape: f32[2,8,128], index: 5, kind: output, shape index: {1}]  }
   0x1 LB: > { %s3492_s19 = sadd.s32 4294967295, %s5410_s18   ;;  %p3496_p0 = scmp.ge.s32.totalorder %s5410_s18, 1  ;;  %s5410_s18 = sphi %s5443_s18, %s16_s18  }
   0x2   : > { %p190_p1 = scmp.lt.s32.totalorder %s5410_s18, 3 }
   0x4   : > { %p191_p2 = pnand %p3496_p0, %p190_p1 }
   0x6   : > { %194 = sbr.rel (%p191_p2) target bundleno = 569 (0x239), region = 36 }
   0xd   : > { %v3503_v0 = vld [vmem:[%s7122_s1 + $0x80] sm:$0xff]  ;;  %v3504_v1 = vld [vmem:[%s7122_s1 + $0x88] sm:$0xff]  ;;  %p222_p3 = scmp.lt.s32.totalorder %s3492_s19, 1  ;;  %v3505_v5 = vld [vmem:[%s7122_s1 + $0x90] sm:$0xff]  ;;  %v7127_v7 = vmov 0.0   ;;  %v466_v9 = vlaneseq  ;;  %vm618_vm1 = vcmask 1046528  }
   0xe   : > { %v3582_v2 = vld [vmem:[%s7122_s1 + $0x200] sm:$0xff]  ;;  %v4832_v3 = vpack.c.bf16 %v3504_v1, %v3503_v0  ;;  %v3583_v4 = vld [vmem:[%s7122_s1 + $0x208] sm:$0xff]  ;;  %v3506_v6 = vld [vmem:[%s7122_s1 + $0x98] sm:$0xff]  ;;  %v5470_v8 = vrot.slane %v7127_v7, 1  ;;  %vm1198_vm3 = vcmask 1045504   ;;  %vm3401_vm4 = vcmask 1040384  }
   0xf   : > { %v5472_v10 = vpack.c.bf16 %v3583_v4, %v3582_v2  ;;  %v4836_v11 = vpack.c.bf16 %v3506_v6, %v3505_v5  ;;  %v3584_v12 = vld [vmem:[%s7122_s1 + $0x210] sm:$0xff]  ;;  %v3585_v13 = vld [vmem:[%s7122_s1 + $0x218] sm:$0xff]  ;;  %v3507_v14 = vld [vmem:[%s7122_s1 + $0xa0] sm:$0xff]  ;;  %s7370_s19 = smov (!%p222_p3, %s3492_s19), 1  ;;  %v5500_v20 = vshrl.u32 %v466_v9, 7  ;;  %vm3403_vm5 = vcmask 1041408  }
  0x10   : > { %7235 = vst [vmem:[#allocation2_spill] sm:$0xff] %v5470_v8  ;;  %4833 = vmatprep.subr.bf16.mxu1 %v4832_v3  ;;  %v5485_v15 = vpack.c.bf16 %v3585_v13, %v3584_v12  ;;  %v3508_v16 = vld [vmem:[%s7122_s1 + $0xa8] sm:$0xff]  ;;  %v3586_v17 = vld [vmem:[%s7122_s1 + $0x220] sm:$0xff]  ;;  %4144 = vmatprep.mubr.f32.mxu1 %v5470_v8  ;;  %s5392_s21 = smul.u32 432, %s7370_s19  ;;  %v3509_v22 = vld [vmem:[%s7122_s1 + $0xb0] sm:$0xff]  ;;  %s3679_s27 = sshll.u32 %s7370_s19, 8 }
  0x11   : > { %7236 = vst [vmem:[#allocation3_spill] sm:$0xff] %v5472_v10  ;;  %v3587_v18 = vld [vmem:[%s7122_s1 + $0x228] sm:$0xff]  ;;  %4961 = vmatprep.subr.bf16.mxu0 %v5472_v10  ;;  %4835 = vmatpush3.bf16.msra.mxu1 %v4832_v3  ;;  %v4840_v19 = vpack.c.bf16 %v3508_v16, %v3507_v14  ;;  %v3510_v23 = vld [vmem:[%s7122_s1 + $0xb8] sm:$0xff]  ;;  %v3588_v24 = vld [vmem:[%s7122_s1 + $0x230] sm:$0xff]  ;;  %v5548_v35 = vadd.s32 16, %v5500_v20  ;;  %vm470_vm0 = vcmp.ge.s32.totalorder %v5500_v20, 1  ;;  %s7074_s30 = scalar_lea.vmem %s7125_s4, %s3679_s27 }
  0x12   : > { %7237 = vst [vmem:[#allocation4_spill] sm:$0xff] %v5485_v15  ;;  %4963 = vmatpush3.bf16.msra.mxu0 %v5472_v10  ;;  %4837 = vmatprep.subr.bf16.mxu1 %v4836_v11  ;;  %v5503_v21 = vpack.c.bf16 %v3587_v18, %v3586_v17  ;;  %v3589_v25 = vld [vmem:[%s7122_s1 + $0x238] sm:$0xff]  ;;  %v3511_v26 = vld [vmem:[%s7122_s1 + $0xc0] sm:$0xff]  ;;  %v3512_v27 = vld [vmem:[%s7122_s1 + $0xc8] sm:$0xff]  ;;  %s5535_s17 = scalar_lea.vmem %s7121_s0, %s5392_s21  ;;  %v4844_v31 = vpack.c.bf16 %v3510_v23, %v3509_v22  ;;  %s3500_s6 = sshll.u32 %s7370_s19, 3 }
  0x13   : > { %4965 = vmatprep.subr.bf16.mxu0 %v5485_v15  ;;  %v3590_v28 = vld [vmem:[%s7122_s1 + $0x240] sm:$0xff]  ;;  %v3591_v29 = vld [vmem:[%s7122_s1 + $0x248] sm:$0xff]  ;;  %v3513_v30 = vld [vmem:[%s7122_s1 + $0xd0] sm:$0xff]  ;;  %v5551_v36 = vpack.c.bf16 %v3589_v25, %v3588_v24  ;;  %v4848_v43 = vpack.c.bf16 %v3512_v27, %v3511_v26  ;;  %vm481_vm2 = vcmp.le.s32.totalorder %v5548_v35, 16  ;;  %s235_s8 = scalar_lea.vmem %s7126_s5, %s3500_s6 }
  0x14   : > { %7238 = vst [vmem:[#allocation5_spill] sm:$0xff] %v5503_v21  ;;  %v3514_v32 = vld [vmem:[%s7122_s1 + $0xd8] sm:$0xff]  ;;  %v3592_v33 = vld [vmem:[%s7122_s1 + $0x250] sm:$0xff]  ;;  %v3515_v37 = vld [vmem:[%s7122_s1 + $0xe0] sm:$0xff]  ;;  %v5572_v44 = vpack.c.bf16 %v3591_v29, %v3590_v28 }
  0x15   : > { %4839 = vmatpush3.bf16.msra.mxu1 %v4836_v11  ;;  %v3593_v34 = vld [vmem:[%s7122_s1 + $0x258] sm:$0xff]  ;;  %7239 = vst [vmem:[#allocation6_spill] sm:$0xff] %v5551_v36  ;;  %v3516_v38 = vld [vmem:[%s7122_s1 + $0xe8] sm:$0xff]  ;;  %v5562_v39 = vld [vmem:[%s7123_s2] ss:$0 sm:$0xff]  ;;  %v5584_v50 = vpack.c.bf16 %v3514_v32, %v3513_v30 }
  0x16   : > { %4967 = vmatpush3.bf16.msra.mxu0 %v5485_v15  ;;  %4841 = vmatprep.subr.bf16.mxu1 %v4840_v19  ;;  %v5567_v40 = vld [vmem:[%s7124_s3] ss:$0 sm:$0xff]  ;;  %v241_v41 = vld [vmem:[%s5535_s17 + $0x18] sm:$0xff]  ;;  %7240 = vst [vmem:[#allocation7_spill] sm:$0xff] %v5572_v44  ;;  %v3595_v46 = vld [vmem:[%s7122_s1 + $0x268] sm:$0xff]  ;;  %v5586_v51 = vpack.c.bf16 %v3593_v34, %v3592_v33  ;;  %v5598_v56 = vpack.c.bf16 %v3516_v38, %v3515_v37 }
  0x17   : > { %4969 = vmatprep.subr.bf16.mxu0 %v5503_v21  ;;  %v242_v42 = vld [vmem:[%s5535_s17 + $0x20] sm:$0xff]  ;;  %v301_v47 = vmul.f32 %v5562_v39, %v241_v41  ;;  %v243_v49 = vld [vmem:[%s5535_s17 + $0x28] sm:$0x3]  ;;  %v3517_v52 = vld [vmem:[%s7122_s1 + $0xf0] sm:$0xff] }
  0x18   : > { %v3594_v45 = vld [vmem:[%s7122_s1 + $0x260] sm:$0xff]  ;;  %v302_v48 = vmul.f32 %v5562_v39, %v242_v42  ;;  %7241 = vst [vmem:[#allocation8_spill] sm:$0xff] %v5586_v51  ;;  %v3518_v53 = vld [vmem:[%s7122_s1 + $0xf8] sm:$0xff]  ;;  %v303_v54 = vmul.f32 %v5562_v39, %v243_v49  ;;  %v244_v55 = vld [vmem:[%s5535_s17 + $0x30] sm:$0xff] }
  0x19   : > { %4843 = vmatpush3.bf16.msra.mxu1 %v4840_v19  ;;  %v361_v57 = vadd.f32 %v5567_v40, %v301_v47  ;;  %v245_v59 = vld [vmem:[%s5535_s17 + $0x38] sm:$0xff]  ;;  %v304_v60 = vmul.f32 %v5562_v39, %v244_v55  ;;  %v246_v61 = vld [vmem:[%s5535_s17 + $0x40] sm:$0x3]  ;;  %v5605_v62 = vpack.c.bf16 %v3595_v46, %v3594_v45  ;;  %v247_v2 = vld [vmem:[%s5535_s17 + $0x48] sm:$0xff]  ;;  %v5612_v4 = vpack.c.bf16 %v3518_v53, %v3517_v52 }
  0x1a   : > { %4971 = vmatpush3.bf16.msra.mxu0 %v5503_v21  ;;  %4845 = vmatprep.subr.bf16.mxu1 %v4844_v31  ;;  %v362_v58 = vadd.f32 %v5567_v40, %v302_v48  ;;  %v363_v63 = vadd.f32 %v5567_v40, %v303_v54  ;;  %v305_v0 = vmul.f32 %v5562_v39, %v245_v59  ;;  %v248_v3 = vld [vmem:[%s5535_s17 + $0x50] sm:$0xff]  ;;  %v3597_v12 = vld [vmem:[%s7122_s1 + $0x278] sm:$0xff]  ;;  %v554_v22 = vld [vmem:[%s7122_s1] sm:$0xff] }
  0x1b   : > { %4973 = vmatprep.subr.bf16.mxu0 %v5551_v36  ;;  %7242 = vst [vmem:[#allocation9_spill] sm:$0xff] %v5605_v62  ;;  %v306_v1 = vmul.f32 %v5562_v39, %v246_v61  ;;  %v5614_v5 = vmax.f32 %v361_v57, 0.0  ;;  %v364_v9 = vadd.f32 %v5567_v40, %v304_v60  ;;  %v3596_v11 = vld [vmem:[%s7122_s1 + $0x270] sm:$0xff]  ;;  %v307_v17 = vmul.f32 %v5562_v39, %v247_v2  ;;  %v555_v23 = vld [vmem:[%s7122_s1 + $0x8] sm:$0xff]  ;;  %v3598_v28 = vld [vmem:[%s7122_s1 + $0x280] sm:$0xff] }
  0x1c   : > { %v5616_v6 = vmax.f32 %v362_v58, 0.0  ;;  %v417_v13 = vmax.f32 %v363_v63, 0.0  ;;  %v365_v14 = vadd.f32 %v5567_v40, %v305_v0  ;;  %v308_v25 = vmul.f32 %v5562_v39, %v248_v3  ;;  %v3599_v29 = vld [vmem:[%s7122_s1 + $0x288] sm:$0xff]  ;;  %v3600_v37 = vld [vmem:[%s7122_s1 + $0x290] sm:$0xff]  ;;  %v3601_v38 = vld [vmem:[%s7122_s1 + $0x298] sm:$0xff] }
  0x1d   : > { %4847 = vmatpush3.bf16.msra.mxu1 %v4844_v31  ;;  %7243 = vst [vmem:[#allocation10_spill] sm:$0xff] %v5614_v5  ;;  %v366_v16 = vadd.f32 %v5567_v40, %v306_v1  ;;  %v5633_v18 = vsel %vm470_vm0, %v5614_v5, 0.0  ;;  %v5642_v24 = vmax.f32 %v364_v9, 0.0  ;;  %v5658_v32 = vpack.c.bf16 %v3597_v12, %v3596_v11  ;;  %v249_v42 = vld [vmem:[%s5535_s17 + $0x58] sm:$0x3]  ;;  %v556_v48 = vld [vmem:[%s7122_s1 + $0x10] sm:$0xff] }
  0x1e   : > { %7244 = vst [vmem:[#allocation11_spill] sm:$0xff] %v5616_v6  ;;  %4975 = vmatpush3.bf16.msra.mxu0 %v5551_v36  ;;  %4849 = vmatprep.subr.bf16.mxu1 %v4848_v43  ;;  %v625_v19 = vrot.slane %v5616_v6, 1  ;;  %v624_v26 = vrot.slane %v5633_v18, 1  ;;  %v5648_v27 = vsel %vm481_vm2, %v417_v13, 0.0  ;;  %v5656_v30 = vmax.f32 %v365_v14, 0.0  ;;  %v557_v49 = vld [vmem:[%s7122_s1 + $0x18] sm:$0xff] }
  0x1f   : > { %4977 = vmatprep.subr.bf16.mxu0 %v5572_v44  ;;  %v420_v31 = vmax.f32 %v366_v16, 0.0  ;;  %7245 = vst [vmem:[#allocation12_spill] sm:$0xff] %v5658_v32  ;;  %v627_v33 = vrot.slane %v5648_v27, 1  ;;  %v5664_v34 = vsel %vm470_vm0, %v5642_v24, 0.0  ;;  %v367_v41 = vadd.f32 %v5567_v40, %v307_v17  ;;  %v250_v52 = vld [vmem:[%s5535_s17 + $0x60] sm:$0xff]  ;;  %v251_v58 = vld [vmem:[%s5535_s17 + $0x68] sm:$0xff] }
  0x20   : > { %v629_v45 = vrot.slane %v5664_v34, 1  ;;  %v630_v46 = vrot.slane %v5656_v30, 1  ;;  %v5694_v53 = vpack.c.bf16 %v555_v23, %v554_v22  ;;  %v368_v55 = vadd.f32 %v5567_v40, %v308_v25  ;;  %v252_v59 = vld [vmem:[%s5535_s17 + $0x70] sm:$0x3]  ;;  %v3602_v1 = vld [vmem:[%s7122_s1 + $0x2a0] sm:$0xff]  ;;  %v3603_v2 = vld [vmem:[%s7122_s1 + $0x2a8] sm:$0xff] }
  0x21   : > { %4851 = vmatpush3.bf16.msra.mxu1 %v4848_v43  ;;  %v5677_v43 = vsel %vm618_vm1, %v624_v26, %v625_v19  ;;  %v5683_v47 = vsel %vm481_vm2, %v420_v31, 0.0  ;;  %v5698_v57 = vmax.f32 %v367_v41, 0.0  ;;  %v5703_v60 = vsel %vm618_vm1, %v625_v19, %v627_v33  ;;  %v253_v3 = vld [vmem:[%s5535_s17 + $0x78] sm:$0xff]  ;;  %v254_v14 = vld [vmem:[%s5535_s17 + $0x80] sm:$0xff] }
  0x22   : > { %4979 = vmatpush3.bf16.msra.mxu0 %v5572_v44  ;;  %4853 = vmatprep.subr.bf16.mxu1 %v5584_v50  ;;  %v632_v54 = vrot.slane %v5683_v47, 1  ;;  %v5705_v61 = vpack.c.bf16 %v3599_v29, %v3598_v28  ;;  %v5707_v63 = vpack.c.bf16 %v3601_v38, %v3600_v37  ;;  %v309_v0 = vmul.f32 %v5562_v39, %v249_v42  ;;  %v255_v37 = vld [vmem:[%s5535_s17 + $0x88] sm:$0x3]  ;;  %v266_v10 = vld [vmem:[%s5535_s17 + $0xe0] sm:$0xff] }
  0x23   : > { %4981 = vmatprep.subr.bf16.mxu0 %v5586_v51  ;;  %4464 = vmatprep.mubr.f32.mxu0 %v5677_v43  ;;  %v5719_v9 = vsel %vm618_vm1, %v629_v45, %v630_v46  ;;  %v5721_v11 = vmax.f32 %v368_v55, 0.0  ;;  %v5723_v12 = vpack.c.bf16 %v557_v49, %v556_v48  ;;  %v310_v13 = vmul.f32 %v5562_v39, %v250_v52  ;;  %v3605_v52 = vld [vmem:[%s7122_s1 + $0x2b8] sm:$0xff] }
  0x24   : > { %7246 = vst [vmem:[#allocation13_spill] sm:$0xff] %v5719_v9  ;;  %v5732_v16 = vsel %vm470_vm0, %v5698_v57, 0.0  ;;  %v311_v17 = vmul.f32 %v5562_v39, %v251_v58  ;;  %v312_v19 = vmul.f32 %v5562_v39, %v252_v59  ;;  %v5739_v22 = vsel %vm618_vm1, %v630_v46, %v632_v54 }
  0x25   : > { %4855 = vmatpush3.bf16.msra.mxu1 %v5584_v50  ;;  %v369_v50 = vadd.f32 %v5567_v40, %v309_v0  ;;  %7247 = vst [vmem:[#allocation14_spill] sm:$0xff] %v5739_v22  ;;  %v5741_v23 = vpack.c.bf16 %v3603_v2, %v3602_v1  ;;  %v370_v25 = vadd.f32 %v5567_v40, %v310_v13  ;;  %v634_v38 = vrot.slane %v5732_v16, 1  ;;  %v558_v0 = vld [vmem:[%s7122_s1 + $0x20] sm:$0xff]  ;;  %v559_v1 = vld [vmem:[%s7122_s1 + $0x28] sm:$0xff] }
  0x26   : > { %4983 = vmatpush3.bf16.msra.mxu0 %v5586_v51  ;;  %4857 = vmatprep.subr.bf16.mxu1 %v5598_v56  ;;  %v313_v26 = vmul.f32 %v5562_v39, %v253_v3  ;;  %v371_v29 = vadd.f32 %v5567_v40, %v311_v17  ;;  %v372_v31 = vadd.f32 %v5567_v40, %v312_v19  ;;  %v635_v41 = vrot.slane %v5721_v11, 1  ;;  %v3606_v3 = vld [vmem:[%s7122_s1 + $0x2c0] sm:$0xff]  ;;  %v256_v19 = vld [vmem:[%s5535_s17 + $0x90] sm:$0xff] }
  0x27   : > { %4985 = vmatprep.subr.bf16.mxu0 %v5605_v62  ;;  %v423_v28 = vmax.f32 %v369_v50, 0.0  ;;  %v314_v33 = vmul.f32 %v5562_v39, %v254_v14  ;;  %v5752_v42 = vmax.f32 %v370_v25, 0.0  ;;  %v315_v2 = vmul.f32 %v5562_v39, %v255_v37  ;;  %v257_v25 = vld [vmem:[%s5535_s17 + $0x98] sm:$0xff]  ;;  %v258_v37 = vld [vmem:[%s5535_s17 + $0xa0] sm:$0x3] }
  0x28   : > { %v373_v45 = vadd.f32 %v5567_v40, %v313_v26  ;;  %v5761_v48 = vmax.f32 %v371_v29, 0.0  ;;  %v426_v49 = vmax.f32 %v372_v31, 0.0  ;;  %v5801_v26 = vsel %vm618_vm1, %v634_v38, %v635_v41  ;;  %v264_v51 = vld [vmem:[%s5535_s17 + $0xd0] sm:$0x3] }
  0x29   : > { %4859 = vmatpush3.bf16.msra.mxu1 %v5598_v56  ;;  %7248 = vst [vmem:[#allocation15_spill] sm:$0xff] %v5752_v42  ;;  %v5759_v46 = vsel %vm481_vm2, %v423_v28, 0.0  ;;  %v3604_v56 = vld [vmem:[%s7122_s1 + $0x2b0] sm:$0xff]  ;;  %v374_v54 = vadd.f32 %v5567_v40, %v314_v33  ;;  %v5775_v58 = vsel %vm470_vm0, %v5752_v42, 0.0  ;;  %7250 = vst [vmem:[#allocation17_spill] sm:$0xff] %v5801_v26  ;;  %v375_v31 = vadd.f32 %v5567_v40, %v315_v2  ;;  %v3607_v33 = vld [vmem:[%s7122_s1 + $0x2c8] sm:$0xff] }
  0x2a   : > { %4987 = vmatpush3.bf16.msra.mxu0 %v5605_v62  ;;  %4861 = vmatprep.subr.bf16.mxu1 %v5612_v4  ;;  %v637_v55 = vrot.slane %v5759_v46, 1  ;;  %v5777_v59 = vmax.f32 %v373_v45, 0.0  ;;  %v639_v13 = vrot.slane %v5775_v58, 1  ;;  %v640_v14 = vrot.slane %v5761_v48, 1  ;;  %v259_v45 = vld [vmem:[%s5535_s17 + $0xa8] sm:$0xff] }
  0x2b   : > { %4989 = vmatprep.subr.bf16.mxu0 %v5658_v32  ;;  %v5793_v50 = vsel %vm481_vm2, %v426_v49, 0.0  ;;  %v5795_v17 = vmax.f32 %v374_v54, 0.0  ;;  %v5803_v28 = vpack.c.bf16 %v3605_v52, %v3604_v56  ;;  %v5825_v56 = vpack.c.bf16 %v559_v1, %v558_v0  ;;  %v260_v52 = vld [vmem:[%s5535_s17 + $0xb0] sm:$0xff]  ;;  %v261_v1 = vld [vmem:[%s5535_s17 + $0xb8] sm:$0x3] }
  0x2c   : > { %7249 = vst [vmem:[#allocation16_spill] sm:$0xff] %v5777_v59  ;;  %v5808_v29 = vsel %vm470_vm0, %v5777_v59, 0.0  ;;  %v5822_v38 = vsel %vm618_vm1, %v639_v13, %v640_v14  ;;  %v642_v49 = vrot.slane %v5793_v50, 1  ;;  %v429_v2 = vmax.f32 %v375_v31, 0.0  ;;  %v276_v42 = vld [vmem:[%s5535_s17 + $0x130] sm:$0x3] }
  0x2d   : > { %4863 = vmatpush3.bf16.msra.mxu1 %v5612_v4  ;;  %v5819_v4 = vsel %vm618_vm1, %v635_v41, %v637_v55  ;;  %7252 = vst [vmem:[#allocation19_spill] sm:$0xff] %v5822_v38  ;;  %v644_v54 = vrot.slane %v5808_v29, 1  ;;  %v316_v7 = vmul.f32 %v5562_v39, %v256_v19  ;;  %v645_v41 = vrot.slane %v5795_v17, 1 }
  0x2e   : > { %4991 = vmatpush3.bf16.msra.mxu0 %v5658_v32  ;;  %4865 = vmatprep.subr.bf16.mxu1 %v5694_v53  ;;  %7251 = vst [vmem:[#allocation18_spill] sm:$0xff] %v5819_v4  ;;  %v317_v32 = vmul.f32 %v5562_v39, %v257_v25  ;;  %v5834_v55 = vpack.c.bf16 %v3607_v33, %v3606_v3  ;;  %v5843_v19 = vsel %vm481_vm2, %v429_v2, 0.0  ;;  %v3608_v3 = vld [vmem:[%s7122_s1 + $0x2d0] sm:$0xff]  ;;  %v3609_v33 = vld [vmem:[%s7122_s1 + $0x2d8] sm:$0xff]  ;;  %v1207_v21 = vrot.slane %v5648_v27, 2 }
  0x2f   : > { %4993 = vmatprep.subr.bf16.mxu0 %v5705_v61  ;;  %v318_v13 = vmul.f32 %v5562_v39, %v258_v37  ;;  %v319_v0 = vmul.f32 %v5562_v39, %v259_v45  ;;  %v376_v25 = vadd.f32 %v5567_v40, %v316_v7  ;;  %v320_v37 = vmul.f32 %v5562_v39, %v260_v52 }
  0x30   : > { %4145 = vmatmul.mubr.f32.vlgmr.msra.gmra.mrb[0].mxu1 %v5470_v8  ;;  %v377_v31 = vadd.f32 %v5567_v40, %v317_v32  ;;  %v647_v7 = vrot.slane %v5843_v19, 1 }
  0x31   : > { %4465 = vmatmul.mubr.f32.vlgmr.msra.gmra.mrb[0].mxu0 %v5703_v60  ;;  %4867 = vmatpush3.bf16.msra.mxu1 %v5694_v53  ;;  %v5857_v53 = vsel %vm618_vm1, %v640_v14, %v642_v49  ;;  %v378_v32 = vadd.f32 %v5567_v40, %v318_v13  ;;  %v379_v45 = vadd.f32 %v5567_v40, %v319_v0  ;;  %v5864_v2 = vmax.f32 %v376_v25, 0.0  ;;  %v262_v14 = vld [vmem:[%s5535_s17 + $0xc0] sm:$0xff] }
  0x32   : > { %4995 = vmatpush3.bf16.msra.mxu0 %v5705_v61  ;;  %4147 = vmatprep.mubr.f32.mxu1 %v5677_v43  ;;  %7253 = vst [vmem:[#allocation20_spill] sm:$0xff] %v5857_v53  ;;  %v5866_v52 = vmax.f32 %v377_v31, 0.0  ;;  %v380_v61 = vadd.f32 %v5567_v40, %v320_v37  ;;  %v321_v43 = vmul.f32 %v5562_v39, %v261_v1  ;;  %v560_v31 = vld [vmem:[%s7122_s1 + $0x30] sm:$0xff]  ;;  %v561_v1 = vld [vmem:[%s7122_s1 + $0x38] sm:$0xff]  ;;  %v3610_v37 = vld [vmem:[%s7122_s1 + $0x2e0] sm:$0xff] }
  0x33   : > { %4467 = vmatprep.mubr.f32.mxu0 %v5719_v9  ;;  %4997 = vmatprep.subr.bf16.mxu0 %v5707_v63  ;;  %7254 = vst [vmem:[#allocation21_spill] sm:$0xff] %v5864_v2  ;;  %v5874_v49 = vsel %vm618_vm1, %v644_v54, %v645_v41  ;;  %v432_v13 = vmax.f32 %v378_v32, 0.0  ;;  %v5876_v0 = vpack.c.bf16 %v3609_v33, %v3608_v3  ;;  %v5878_v25 = vmax.f32 %v379_v45, 0.0  ;;  %v3611_v32 = vld [vmem:[%s7122_s1 + $0x2e8] sm:$0xff] }
  0x34   : > { %4148 = vmatmul.mubr.f32.gmra.mrb[2].mxu1 %v5703_v60  ;;  %4869 = vmatprep.subr.bf16.mxu1 %v5723_v12  ;;  %7255 = vst [vmem:[#allocation22_spill] sm:$0xff] %v5874_v49  ;;  %v5891_v60 = vsel %vm470_vm0, %v5864_v2, 0.0  ;;  %v650_v54 = vrot.slane %v5866_v52, 1  ;;  %v5894_v3 = vmax.f32 %v380_v61, 0.0  ;;  %v381_v33 = vadd.f32 %v5567_v40, %v321_v43  ;;  %v263_v45 = vld [vmem:[%s5535_s17 + $0xc8] sm:$0xff] }
  0x35   : > { %7256 = vst [vmem:[#allocation23_spill] sm:$0xff] %v5878_v25  ;;  %4468 = vmatmul.mubr.f32.gmra.mrb[2].mxu0 %v5739_v22  ;;  %4150 = vmatprep.mubr.f32.mxu1 %v5719_v9  ;;  %v649_v8 = vrot.slane %v5891_v60, 1  ;;  %v5909_v61 = vsel %vm481_vm2, %v432_v13, 0.0  ;;  %v5914_v43 = vsel %vm470_vm0, %v5878_v25, 0.0  ;;  %v322_v62 = vmul.f32 %v5562_v39, %v262_v14 }
  0x36   : > { %4999 = vmatpush3.bf16.msra.mxu0 %v5707_v63  ;;  %4470 = vmatprep.mubr.f32.mxu0 %v5801_v26  ;;  %v5921_v63 = vsel %vm618_vm1, %v645_v41, %v647_v7  ;;  %v652_v44 = vrot.slane %v5909_v61, 1  ;;  %v4876_v36 = vpack.c.bf16 %v561_v1, %v560_v31  ;;  %v435_v13 = vmax.f32 %v381_v33, 0.0  ;;  %v3612_v41 = vld [vmem:[%s7122_s1 + $0x2f0] sm:$0xff]  ;;  %v563_v33 = vld [vmem:[%s7122_s1 + $0x48] sm:$0xff] }
  0x37   : > { %5001 = vmatprep.subr.bf16.mxu0 %v5741_v23  ;;  %4871 = vmatpush3.bf16.msra.mxu1 %v5723_v12  ;;  %7257 = vst [vmem:[#allocation24_spill] sm:$0xff] %v5921_v63  ;;  %v5927_v14 = vpack.c.bf16 %v3611_v32, %v3610_v37  ;;  %v323_v15 = vmul.f32 %v5562_v39, %v263_v45  ;;  %v654_v27 = vrot.slane %v5914_v43, 1  ;;  %v655_v7 = vrot.slane %v5894_v3, 1  ;;  %v265_v37 = vld [vmem:[%s5535_s17 + $0xd8] sm:$0xff] }
  0x38   : > { %4151 = vmatmul.mubr.f32.gmra.mrb[4].mxu1 %v5739_v22  ;;  %4873 = vmatprep.subr.bf16.mxu1 %v5825_v56  ;;  %v382_v12 = vadd.f32 %v5567_v40, %v322_v62  ;;  %v5940_v31 = vsel %vm481_vm2, %v435_v13, 0.0  ;;  %v324_v1 = vmul.f32 %v5562_v39, %v264_v51  ;;  %v562_v62 = vld [vmem:[%s7122_s1 + $0x40] sm:$0xff]  ;;  %v5953_v32 = vsel %vm618_vm1, %v649_v8, %v650_v54  ;;  %v3613_v13 = vld [vmem:[%s7122_s1 + $0x2f8] sm:$0xff]  ;;  %v3615_v8 = vld [vmem:[%s7122_s1 + $0x308] sm:$0xff] }
  0x39   : > { %4471 = vmatmul.mubr.f32.gmra.mrb[4].mxu0 %v5819_v4  ;;  %4153 = vmatprep.mubr.f32.mxu1 %v5801_v26  ;;  %7258 = vst [vmem:[#allocation25_spill] sm:$0xff] %v5953_v32  ;;  %v383_v45 = vadd.f32 %v5567_v40, %v323_v15  ;;  %v1204_v26 = vrot.slane %v5633_v18, 2  ;;  %v5971_v15 = vsel %vm618_vm1, %v650_v54, %v652_v44  ;;  %v1205_v22 = vrot.slane %v5616_v6, 2  ;;  %v267_v54 = vld [vmem:[%s5535_s17 + $0xe8] sm:$0x3] }
  0x3a   : > { %5003 = vmatpush3.bf16.msra.mxu0 %v5741_v23  ;;  %4473 = vmatprep.mubr.f32.mxu0 %v5822_v38  ;;  %v5956_v51 = vmax.f32 %v382_v12, 0.0  ;;  %v3614_v23 = vld [vmem:[%s7122_s1 + $0x300] sm:$0xff]  ;;  %7260 = vst [vmem:[#allocation27_spill] sm:$0xff] %v5971_v15  ;;  %v657_v12 = vrot.slane %v5940_v31, 1  ;;  %v384_v18 = vadd.f32 %v5567_v40, %v324_v1  ;;  %v325_v44 = vmul.f32 %v5562_v39, %v265_v37 }
  0x3b   : > { %5005 = vmatprep.subr.bf16.mxu0 %v5803_v28  ;;  %4875 = vmatpush3.bf16.msra.mxu1 %v5825_v56  ;;  %v5978_v9 = vmax.f32 %v383_v45, 0.0  ;;  %v4880_v56 = vpack.c.bf16 %v563_v33, %v562_v62  ;;  %v5990_v1 = vsel %vm618_vm1, %v654_v27, %v655_v7  ;;  %v5992_v45 = vpack.c.bf16 %v3613_v13, %v3612_v41 }
  0x3c   : > { %7259 = vst [vmem:[#allocation26_spill] sm:$0xff] %v5956_v51  ;;  %4154 = vmatmul.mubr.f32.gmra.mrb[6].mxu1 %v5819_v4  ;;  %4877 = vmatprep.subr.bf16.mxu1 %v4876_v36  ;;  %v5983_v25 = vsel %vm470_vm0, %v5956_v51, 0.0  ;;  %7261 = vst [vmem:[#allocation28_spill] sm:$0xff] %v5990_v1  ;;  %v438_v4 = vmax.f32 %v384_v18, 0.0  ;;  %v5994_v2 = vpack.c.bf16 %v3615_v8, %v3614_v23  ;;  %v268_v23 = vld [vmem:[%s5535_s17 + $0xf0] sm:$0xff]  ;;  %v1209_v18 = vrot.slane %v5664_v34, 2 }
  0x3d   : > { %4474 = vmatmul.mubr.f32.gmra.mrb[6].mxu0 %v5857_v53  ;;  %4156 = vmatprep.mubr.f32.mxu1 %v5822_v38  ;;  %v659_v62 = vrot.slane %v5983_v25, 1  ;;  %v660_v33 = vrot.slane %v5978_v9, 1  ;;  %v326_v37 = vmul.f32 %v5562_v39, %v266_v10  ;;  %v385_v27 = vadd.f32 %v5567_v40, %v325_v44 }
  0x3e   : > { %5007 = vmatpush3.bf16.msra.mxu0 %v5803_v28  ;;  %4476 = vmatprep.mubr.f32.mxu0 %v5874_v49  ;;  %v6004_v41 = vsel %vm618_vm1, %v655_v7, %v657_v12  ;;  %v6007_v28 = vsel %vm1198_vm3, %v1204_v26, %v1205_v22  ;;  %v327_v13 = vmul.f32 %v5562_v39, %v267_v54  ;;  %v6014_v8 = vsel %vm481_vm2, %v438_v4, 0.0  ;;  %v270_v26 = vld [vmem:[%s5535_s17 + $0x100] sm:$0x3] }
  0x3f   : > { %5009 = vmatprep.subr.bf16.mxu0 %v5834_v55  ;;  %7262 = vst [vmem:[#allocation29_spill] sm:$0xff] %v6004_v41  ;;  %4879 = vmatpush3.bf16.msra.mxu1 %v4876_v36  ;;  %7263 = vst [vmem:[#allocation30_spill] sm:$0xff] %v6007_v28  ;;  %v6017_v10 = vsel %vm1198_vm3, %v1205_v22, %v1207_v21  ;;  %v386_v7 = vadd.f32 %v5567_v40, %v326_v37  ;;  %v6020_v12 = vmax.f32 %v385_v27, 0.0  ;;  %v269_v36 = vld [vmem:[%s5535_s17 + $0xf8] sm:$0xff]  ;;  %v564_v21 = vld [vmem:[%s7122_s1 + $0x50] sm:$0xff] }
  0x40   : > { %4157 = vmatmul.mubr.f32.gmra.mrb[8].mxu1 %v5857_v53  ;;  %4881 = vmatprep.subr.bf16.mxu1 %v4880_v56  ;;  %7264 = vst [vmem:[#allocation31_spill] sm:$0xff] %v6017_v10  ;;  %v1210_v44 = vrot.slane %v5656_v30, 2  ;;  %v387_v4 = vadd.f32 %v5567_v40, %v327_v13  ;;  %v1212_v54 = vrot.slane %v5683_v47, 2  ;;  %v565_v22 = vld [vmem:[%s7122_s1 + $0x58] sm:$0xff]  ;;  %v6039_v34 = vsel %vm618_vm1, %v659_v62, %v660_v33 }
  0x41   : > { %7265 = vst [vmem:[#allocation32_spill] sm:$0xff] %v6020_v12  ;;  %4477 = vmatmul.mubr.f32.gmra.mrb[8].mxu0 %v5921_v63  ;;  %4159 = vmatprep.mubr.f32.mxu1 %v5874_v49  ;;  %7266 = vst [vmem:[#allocation33_spill] sm:$0xff] %v6039_v34  ;;  %v6041_v37 = vmax.f32 %v386_v7, 0.0  ;;  %v6046_v47 = vsel %vm470_vm0, %v6020_v12, 0.0  ;;  %v328_v27 = vmul.f32 %v5562_v39, %v268_v23  ;;  %v662_v13 = vrot.slane %v6014_v8, 1  ;;  %v271_v12 = vld [vmem:[%s5535_s17 + $0x108] sm:$0xff] }
  0x42   : > { %5011 = vmatpush3.bf16.msra.mxu0 %v5834_v55  ;;  %4479 = vmatprep.mubr.f32.mxu0 %v5953_v32  ;;  %v441_v55 = vmax.f32 %v387_v4, 0.0  ;;  %v329_v49 = vmul.f32 %v5562_v39, %v269_v36  ;;  %v1214_v62 = vrot.slane %v5732_v16, 2  ;;  %v664_v7 = vrot.slane %v6046_v47, 1 }
  0x43   : > { %7267 = vst [vmem:[#allocation34_spill] sm:$0xff] %v6041_v37  ;;  %5013 = vmatprep.subr.bf16.mxu0 %v5876_v0  ;;  %4883 = vmatpush3.bf16.msra.mxu1 %v4880_v56  ;;  %v388_v53 = vadd.f32 %v5567_v40, %v328_v27  ;;  %v330_v38 = vmul.f32 %v5562_v39, %v270_v26  ;;  %v665_v56 = vrot.slane %v6041_v37, 1  ;;  %v1215_v4 = vrot.slane %v5721_v11, 2  ;;  %v272_v27 = vld [vmem:[%s5535_s17 + $0x110] sm:$0xff] }
  0x44   : > { %4160 = vmatmul.mubr.f32.gmra.mrb[10].mxu1 %v5921_v63  ;;  %v4884_v23 = vpack.c.bf16 %v565_v22, %v564_v21  ;;  %v6063_v36 = vsel %vm481_vm2, %v441_v55, 0.0  ;;  %v389_v16 = vadd.f32 %v5567_v40, %v329_v49  ;;  %v6071_v26 = vsel %vm1198_vm3, %v1209_v18, %v1210_v44  ;;  %v273_v63 = vld [vmem:[%s5535_s17 + $0x118] sm:$0x3] }
  0x45   : > { %4480 = vmatmul.mubr.f32.gmra.mrb[10].mxu0 %v5971_v15  ;;  %4162 = vmatprep.mubr.f32.mxu1 %v5953_v32  ;;  %7268 = vst [vmem:[#allocation35_spill] sm:$0xff] %v6071_v26  ;;  %v6074_v21 = vsel %vm1198_vm3, %v1210_v44, %v1212_v54  ;;  %v6076_v22 = vmax.f32 %v388_v53, 0.0  ;;  %v390_v55 = vadd.f32 %v5567_v40, %v330_v38  ;;  %v667_v53 = vrot.slane %v6063_v36, 1  ;;  %v3616_v44 = vld [vmem:[%s7122_s1 + $0x310] sm:$0xff] }
  0x46   : > { %5015 = vmatpush3.bf16.msra.mxu0 %v5876_v0  ;;  %4482 = vmatprep.mubr.f32.mxu0 %v5990_v1  ;;  %v6081_v49 = vsel %vm618_vm1, %v660_v33, %v662_v13  ;;  %v6083_v32 = vmax.f32 %v389_v16, 0.0  ;;  %v1217_v0 = vrot.slane %v5759_v46, 2  ;;  %v331_v18 = vmul.f32 %v5562_v39, %v271_v12  ;;  %v3617_v46 = vld [vmem:[%s7122_s1 + $0x318] sm:$0xff] }
  0x47   : > { %7269 = vst [vmem:[#allocation36_spill] sm:$0xff] %v6076_v22  ;;  %5017 = vmatprep.subr.bf16.mxu0 %v5927_v14  ;;  %7270 = vst [vmem:[#allocation37_spill] sm:$0xff] %v6081_v49  ;;  %4885 = vmatprep.subr.bf16.mxu1 %v4884_v23  ;;  %v6093_v38 = vsel %vm470_vm0, %v6076_v22, 0.0  ;;  %v444_v33 = vmax.f32 %v390_v55, 0.0  ;;  %v332_v12 = vmul.f32 %v5562_v39, %v272_v27  ;;  %v274_v55 = vld [vmem:[%s5535_s17 + $0x120] sm:$0xff]  ;;  %v275_v22 = vld [vmem:[%s5535_s17 + $0x128] sm:$0xff] }
  0x48   : > { %4163 = vmatmul.mubr.f32.gmra.mrb[12].mxu1 %v5971_v15  ;;  %v6105_v54 = vsel %vm618_vm1, %v664_v7, %v665_v56  ;;  %v6108_v13 = vsel %vm1198_vm3, %v1214_v62, %v1215_v4  ;;  %v391_v16 = vadd.f32 %v5567_v40, %v331_v18  ;;  %v669_v15 = vrot.slane %v6093_v38, 1 }
  0x49   : > { %4483 = vmatmul.mubr.f32.gmra.mrb[12].mxu0 %v6004_v41  ;;  %4165 = vmatprep.mubr.f32.mxu1 %v5990_v1  ;;  %7271 = vst [vmem:[#allocation38_spill] sm:$0xff] %v6105_v54  ;;  %7272 = vst [vmem:[#allocation39_spill] sm:$0xff] %v6108_v13  ;;  %v670_v27 = vrot.slane %v6083_v32, 1  ;;  %v392_v1 = vadd.f32 %v5567_v40, %v332_v12  ;;  %v333_v7 = vmul.f32 %v5562_v39, %v273_v63 }
  0x4a   : > { %5019 = vmatpush3.bf16.msra.mxu0 %v5927_v14  ;;  %4485 = vmatprep.mubr.f32.mxu0 %v6039_v34  ;;  %v6122_v62 = vsel %vm481_vm2, %v444_v33, 0.0  ;;  %v6125_v14 = vsel %vm1198_vm3, %v1215_v4, %v1217_v0  ;;  %v6127_v18 = vpack.c.bf16 %v3617_v46, %v3616_v44  ;;  %v6129_v51 = vmax.f32 %v391_v16, 0.0  ;;  %v566_v0 = vld [vmem:[%s7122_s1 + $0x60] sm:$0xff] }
  0x4b   : > { %5021 = vmatprep.subr.bf16.mxu0 %v5992_v45  ;;  %7273 = vst [vmem:[#allocation40_spill] sm:$0xff] %v6125_v14  ;;  %4887 = vmatpush3.bf16.msra.mxu1 %v4884_v23  ;;  %v6133_v12 = vsel %vm618_vm1, %v665_v56, %v667_v53  ;;  %v6135_v63 = vmax.f32 %v392_v1, 0.0  ;;  %v393_v59 = vadd.f32 %v5567_v40, %v333_v7  ;;  %v1219_v4 = vrot.slane %v5775_v58, 2  ;;  %v567_v53 = vld [vmem:[%s7122_s1 + $0x68] sm:$0xff] }
  0x4c   : > { %4166 = vmatmul.mubr.f32.gmra.mrb[14].mxu1 %v6004_v41  ;;  %7274 = vst [vmem:[#allocation41_spill] sm:$0xff] %v6133_v12  ;;  %v334_v33 = vmul.f32 %v5562_v39, %v274_v55  ;;  %v6145_v23 = vsel %vm470_vm0, %v6129_v51, 0.0  ;;  %v1220_v1 = vrot.slane %v5761_v48, 2  ;;  %v335_v56 = vmul.f32 %v5562_v39, %v275_v22 }
  0x4d   : > { %4486 = vmatmul.mubr.f32.gmra.mrb[14].mxu0 %v6081_v49  ;;  %4168 = vmatprep.mubr.f32.mxu1 %v6039_v34  ;;  %v6159_v44 = vsel %vm618_vm1, %v669_v15, %v670_v27  ;;  %v672_v58 = vrot.slane %v6122_v62, 1  ;;  %v447_v46 = vmax.f32 %v393_v59, 0.0  ;;  %v674_v16 = vrot.slane %v6145_v23, 1  ;;  %v277_v34 = vld [vmem:[%s5535_s17 + $0x138] sm:$0xff] }
  0x4e   : > { %5023 = vmatpush3.bf16.msra.mxu0 %v5992_v45  ;;  %4544 = vmatprep.mubr.f32.mxu0 %v6007_v28  ;;  %7275 = vst [vmem:[#allocation42_spill] sm:$0xff] %v6159_v44  ;;  %v394_v22 = vadd.f32 %v5567_v40, %v334_v33  ;;  %v1222_v55 = vrot.slane %v5793_v50, 2  ;;  %v395_v7 = vadd.f32 %v5567_v40, %v335_v56  ;;  %v675_v15 = vrot.slane %v6135_v63, 1  ;;  %v3618_v50 = vld [vmem:[%s7122_s1 + $0x320] sm:$0xff] }
  0x4f   : > { %5025 = vmatprep.subr.bf16.mxu0 %v5994_v2  ;;  %v336_v45 = vmul.f32 %v5562_v39, %v276_v42  ;;  %v6173_v59 = vsel %vm481_vm2, %v447_v46, 0.0  ;;  %v4888_v41 = vpack.c.bf16 %v567_v53, %v566_v0  ;;  %v3619_v42 = vld [vmem:[%s7122_s1 + $0x328] sm:$0xff]  ;;  %v6186_v56 = vsel %vm1198_vm3, %v1219_v4, %v1220_v1 }
  0x50   : > { %4169 = vmatmul.mubr.f32.gmra.mrb[16].mxu1 %v6081_v49  ;;  %v6175_v33 = vmax.f32 %v394_v22, 0.0  ;;  %7277 = vst [vmem:[#allocation44_spill] sm:$0xff] %v6186_v56  ;;  %v6188_v46 = vmax.f32 %v395_v7, 0.0  ;;  %v1224_v0 = vrot.slane %v5808_v29, 2  ;;  %v278_v22 = vld [vmem:[%s5535_s17 + $0x140] sm:$0xff]  ;;  %v677_v49 = vrot.slane %v6173_v59, 1 }
  0x51   : > { %4545 = vmatmul.mubr.f32.vlgmr.msra.gmra.mrb[0].mxu0 %v6017_v10  ;;  %4171 = vmatprep.mubr.f32.mxu1 %v6105_v54  ;;  %v396_v53 = vadd.f32 %v5567_v40, %v336_v45  ;;  %v1225_v4 = vrot.slane %v5795_v17, 2  ;;  %v337_v7 = vmul.f32 %v5562_v39, %v277_v34  ;;  %v279_v29 = vld [vmem:[%s5535_s17 + $0x148] sm:$0x3]  ;;  %v6205_v45 = vsel %vm618_vm1, %v670_v27, %v672_v58  ;;  %v280_v58 = vld [vmem:[%s5535_s17 + $0x150] sm:$0xff] }
  0x52   : > { %7276 = vst [vmem:[#allocation43_spill] sm:$0xff] %v6175_v33  ;;  %7278 = vst [vmem:[#allocation45_spill] sm:$0xff] %v6188_v46  ;;  %5027 = vmatpush3.bf16.msra.mxu0 %v5994_v2  ;;  %4547 = vmatprep.mubr.f32.mxu0 %v6071_v26  ;;  %v6199_v54 = vsel %vm470_vm0, %v6175_v33, 0.0  ;;  %v1227_v26 = vrot.slane %v5843_v19, 2  ;;  %v5032_v10 = vpack.c.bf16 %v3619_v42, %v3618_v50  ;;  %v680_v50 = vrot.slane %v6188_v46, 1 }
  0x53   : > { %7279 = vst [vmem:[#allocation46_spill] sm:$0xff] %v6205_v45  ;;  %5029 = vmatprep.subr.bf16.mxu0 %v6127_v18  ;;  %v450_v2 = vmax.f32 %v396_v53, 0.0  ;;  %4889 = vmatprep.subr.bf16.mxu1 %v4888_v41  ;;  %v6211_v28 = vsel %vm618_vm1, %v674_v16, %v675_v15  ;;  %v6214_v33 = vsel %vm1198_vm3, %v1220_v1, %v1222_v55  ;;  %v679_v19 = vrot.slane %v6199_v54, 1 }
  0x54   : > { %4172 = vmatmul.mubr.f32.gmra.mrb[18].mxu1 %v6133_v12  ;;  %7280 = vst [vmem:[#allocation47_spill] sm:$0xff] %v6211_v28  ;;  %7281 = vst [vmem:[#allocation48_spill] sm:$0xff] %v6214_v33  ;;  %v338_v34 = vmul.f32 %v5562_v39, %v278_v22  ;;  %v397_v27 = vadd.f32 %v5567_v40, %v337_v7  ;;  %v339_v1 = vmul.f32 %v5562_v39, %v279_v29  ;;  %v281_v7 = vld [vmem:[%s5535_s17 + $0x158] sm:$0xff] }
  0x55   : > { %4548 = vmatmul.mubr.f32.gmra.mrb[2].mxu0 %v6074_v21  ;;  %4174 = vmatprep.mubr.f32.mxu1 %v6159_v44  ;;  %v6225_v16 = vsel %vm481_vm2, %v450_v2, 0.0  ;;  %v6231_v55 = vsel %vm618_vm1, %v675_v15, %v677_v49  ;;  %v6234_v42 = vsel %vm1198_vm3, %v1224_v0, %v1225_v4  ;;  %v6241_v2 = vsel %vm1198_vm3, %v1225_v4, %v1227_v26  ;;  %v282_v15 = vld [vmem:[%s5535_s17 + $0x160] sm:$0x3]  ;;  %v568_v0 = vld [vmem:[%s7122_s1 + $0x70] sm:$0xff] }
  0x56   : > { %4550 = vmatprep.mubr.f32.mxu0 %v6108_v13  ;;  %5031 = vmatpush3.bf16.msra.mxu0 %v6127_v18  ;;  %7282 = vst [vmem:[#allocation49_spill] sm:$0xff] %v6231_v55  ;;  %v398_v53 = vadd.f32 %v5567_v40, %v338_v34  ;;  %v6237_v22 = vmax.f32 %v397_v27, 0.0  ;;  %v1229_v29 = vrot.slane %v5891_v60, 2  ;;  %v399_v18 = vadd.f32 %v5567_v40, %v339_v1  ;;  %v569_v34 = vld [vmem:[%s7122_s1 + $0x78] sm:$0xff] }
  0x57   : > { %5033 = vmatprep.subr.bf16.mxu0 %v5032_v10  ;;  %4891 = vmatpush3.bf16.msra.mxu1 %v4888_v41  ;;  %v340_v49 = vmul.f32 %v5562_v39, %v280_v58  ;;  %v682_v26 = vrot.slane %v6225_v16, 1  ;;  %v1230_v4 = vrot.slane %v5866_v52, 2  ;;  %v6266_v27 = vsel %vm618_vm1, %v679_v19, %v680_v50  ;;  %v3620_v19 = vld [vmem:[%s7122_s1 + $0x330] sm:$0xff] }
  0x58   : > { %7283 = vst [vmem:[#allocation50_spill] sm:$0xff] %v6237_v22  ;;  %4175 = vmatmul.mubr.f32.gmra.mrb[20].mxu1 %v6205_v45  ;;  %v6255_v41 = vmax.f32 %v398_v53, 0.0  ;;  %v6260_v60 = vsel %vm470_vm0, %v6237_v22, 0.0  ;;  %7284 = vst [vmem:[#allocation51_spill] sm:$0xff] %v6266_v27  ;;  %v453_v58 = vmax.f32 %v399_v18, 0.0  ;;  %v341_v1 = vmul.f32 %v5562_v39, %v281_v7  ;;  %v3621_v7 = vld [vmem:[%s7122_s1 + $0x338] sm:$0xff] }
  0x59   : > { %4551 = vmatmul.mubr.f32.gmra.mrb[4].mxu0 %v6125_v14  ;;  %4177 = vmatprep.mubr.f32.mxu1 %v6211_v28  ;;  %v400_v53 = vadd.f32 %v5567_v40, %v340_v49  ;;  %v684_v45 = vrot.slane %v6260_v60, 1  ;;  %v342_v12 = vmul.f32 %v5562_v39, %v282_v15  ;;  %v4892_v28 = vpack.c.bf16 %v569_v34, %v568_v0  ;;  %v283_v15 = vld [vmem:[%s5535_s17 + $0x168] sm:$0xff] }
  0x5a   : > { %4553 = vmatprep.mubr.f32.mxu0 %v6186_v56  ;;  %5035 = vmatpush3.bf16.msra.mxu0 %v5032_v10  ;;  %v685_v44 = vrot.slane %v6255_v41, 1  ;;  %v6282_v18 = vsel %vm481_vm2, %v453_v58, 0.0  ;;  %v1232_v10 = vrot.slane %v5909_v61, 2  ;;  %v401_v49 = vadd.f32 %v5567_v40, %v341_v1  ;;  %v284_v61 = vld [vmem:[%s5535_s17 + $0x170] sm:$0xff] }
  0x5b   : > { %v6286_v56 = vmax.f32 %v400_v53, 0.0  ;;  %v6291_v0 = vsel %vm618_vm1, %v680_v50, %v682_v26  ;;  %v6294_v34 = vsel %vm1198_vm3, %v1229_v29, %v1230_v4  ;;  %v1234_v14 = vrot.slane %v5914_v43, 2  ;;  %4893 = vmatprep.subr.bf16.mxu1 %v4892_v28  ;;  %v285_v26 = vld [vmem:[%s5535_s17 + $0x178] sm:$0x3] }
  0x5c   : > { %4178 = vmatmul.mubr.f32.gmra.mrb[22].mxu1 %v6231_v55  ;;  %7285 = vst [vmem:[#allocation52_spill] sm:$0xff] %v6291_v0  ;;  %v402_v58 = vadd.f32 %v5567_v40, %v342_v12  ;;  %v687_v1 = vrot.slane %v6282_v18, 1  ;;  %v6302_v53 = vmax.f32 %v401_v49, 0.0  ;;  %v5036_v29 = vpack.c.bf16 %v3621_v7, %v3620_v19 }
  0x5d   : > { %4554 = vmatmul.mubr.f32.gmra.mrb[6].mxu0 %v6214_v33  ;;  %4180 = vmatprep.mubr.f32.mxu1 %v6266_v27  ;;  %v6307_v50 = vsel %vm470_vm0, %v6286_v56, 0.0  ;;  %v6312_v43 = vsel %vm618_vm1, %v684_v45, %v685_v44  ;;  %v343_v27 = vmul.f32 %v5562_v39, %v283_v15  ;;  %v6317_v49 = vsel %vm1198_vm3, %v1230_v4, %v1232_v10  ;;  %v3534_v10 = vld [vmem:[%s7122_s1 + $0x100] sm:$0xff]  ;;  %v3535_v15 = vld [vmem:[%s7122_s1 + $0x108] sm:$0xff] }
  0x5e   : > { %4556 = vmatprep.mubr.f32.mxu0 %v6234_v42  ;;  %7286 = vst [vmem:[#allocation53_spill] sm:$0xff] %v6312_v43  ;;  %v689_v12 = vrot.slane %v6307_v50, 1  ;;  %v456_v55 = vmax.f32 %v402_v58, 0.0  ;;  %4895 = vmatpush3.bf16.msra.mxu1 %v4892_v28  ;;  %v690_v33 = vrot.slane %v6302_v53, 1  ;;  %v1235_v13 = vrot.slane %v5894_v3, 2  ;;  %v3622_v58 = vld [vmem:[%s7122_s1 + $0x340] sm:$0xff] }
  0x5f   : > { %5037 = vmatprep.subr.bf16.mxu0 %v5036_v29  ;;  %v344_v19 = vmul.f32 %v5562_v39, %v284_v61  ;;  %v1237_v28 = vrot.slane %v5940_v31, 2  ;;  %v403_v7 = vadd.f32 %v5567_v40, %v343_v27  ;;  %v345_v4 = vmul.f32 %v5562_v39, %v285_v26  ;;  %v3623_v61 = vld [vmem:[%s7122_s1 + $0x348] sm:$0xff] }
  0x60   : > { %4181 = vmatmul.mubr.f32.gmra.mrb[24].mxu1 %v6291_v0  ;;  %v6325_v45 = vsel %vm481_vm2, %v456_v55, 0.0  ;;  %5039 = vmatpush3.bf16.msra.mxu0 %v5036_v29  ;;  %v6339_v55 = vsel %vm618_vm1, %v685_v44, %v687_v1  ;;  %v1239_v39 = vrot.slane %v5983_v25, 2  ;;  %v6352_v29 = vsel %vm618_vm1, %v689_v12, %v690_v33 }
  0x61   : > { %4557 = vmatmul.mubr.f32.gmra.mrb[8].mxu0 %v6241_v2  ;;  %4183 = vmatprep.mubr.f32.mxu1 %v6312_v43  ;;  %7287 = vst [vmem:[#allocation54_spill] sm:$0xff] %v6339_v55  ;;  %v692_v31 = vrot.slane %v6325_v45, 1  ;;  %v404_v27 = vadd.f32 %v5567_v40, %v344_v19  ;;  %7288 = vst [vmem:[#allocation55_spill] sm:$0xff] %v6352_v29  ;;  %v6354_v44 = vmax.f32 %v403_v7, 0.0  ;;  %v1240_v1 = vrot.slane %v5978_v9, 2 }
  0x62   : > { %4559 = vmatprep.mubr.f32.mxu0 %v6294_v34  ;;  %v405_v26 = vadd.f32 %v5567_v40, %v345_v4  ;;  %v6359_v25 = vsel %vm1198_vm3, %v1234_v14, %v1235_v13  ;;  %v4896_v43 = vpack.c.bf16 %v3535_v15, %v3534_v10  ;;  %v5040_v7 = vpack.c.bf16 %v3623_v61, %v3622_v58 }
  0x63   : > { %v6361_v19 = vmax.f32 %v404_v27, 0.0  ;;  %v6367_v0 = vsel %vm470_vm0, %v6354_v44, 0.0  ;;  %v6372_v40 = vsel %vm618_vm1, %v690_v33, %v692_v31  ;;  %v6378_v10 = vsel %vm1198_vm3, %v1235_v13, %v1237_v28  ;;  %v3624_v33 = vld [vmem:[%s7122_s1 + $0x350] sm:$0xff]  ;;  %v3625_v31 = vld [vmem:[%s7122_s1 + $0x358] sm:$0xff] }
  0x64   : > { %4184 = vmatmul.mubr.f32.gmra.mrb[26].mxu1 %v6339_v55  ;;  %v459_v12 = vmax.f32 %v405_v26, 0.0  ;;  %7290 = vst [vmem:[#allocation57_spill] sm:$0xff] %v6372_v40  ;;  %v694_v14 = vrot.slane %v6367_v0, 1  ;;  %v6381_v15 = vsel %vm1198_vm3, %v1239_v39, %v1240_v1  ;;  %v1242_v58 = vrot.slane %v6014_v8, 2  ;;  %4897 = vmatprep.subr.bf16.mxu1 %v4896_v43  ;;  %v3626_v8 = vld [vmem:[%s7122_s1 + $0x360] sm:$0xff]  ;;  %v3627_v26 = vld [vmem:[%s7122_s1 + $0x368] sm:$0xff] }
  0x65   : > { %7289 = vst [vmem:[#allocation56_spill] sm:$0xff] %v6361_v19  ;;  %4560 = vmatmul.mubr.f32.gmra.mrb[10].mxu0 %v6317_v49  ;;  %4186 = vmatprep.mubr.f32.mxu1 %v6352_v29  ;;  %v695_v4 = vrot.slane %v6361_v19, 1  ;;  %v1244_v39 = vrot.slane %v6046_v47, 2  ;;  %v1245_v61 = vrot.slane %v6041_v37, 2  ;;  %v1249_v29 = vrot.slane %v6093_v38, 2  ;;  %v3629_v38 = vld [vmem:[%s7122_s1 + $0x378] sm:$0xff] }
  0x66   : > { %4562 = vmatprep.mubr.f32.mxu0 %v6359_v25  ;;  %v6385_v27 = vsel %vm481_vm2, %v459_v12, 0.0  ;;  %5041 = vmatprep.subr.bf16.mxu0 %v5040_v7  ;;  %v5044_v12 = vpack.c.bf16 %v3625_v31, %v3624_v33  ;;  %v1250_v55 = vrot.slane %v6083_v32, 2  ;;  %v5048_v33 = vpack.c.bf16 %v3627_v26, %v3626_v8 }
  0x67   : > { %v6395_v13 = vsel %vm618_vm1, %v694_v14, %v695_v4  ;;  %v697_v28 = vrot.slane %v6385_v27, 1  ;;  %5043 = vmatpush3.bf16.msra.mxu0 %v5040_v7  ;;  %v6414_v7 = vsel %vm1198_vm3, %v1240_v1, %v1242_v58  ;;  %v1247_v14 = vrot.slane %v6063_v36, 2  ;;  %v3537_v1 = vld [vmem:[%s7122_s1 + $0x118] sm:$0xff]  ;;  %v3628_v36 = vld [vmem:[%s7122_s1 + $0x370] sm:$0xff] }
  0x68   : > { %7291 = vst [vmem:[#allocation58_spill] sm:$0xff] %v6395_v13  ;;  %4187 = vmatmul.mubr.f32.gmra.mrb[28].mxu1 %v6372_v40  ;;  %v6418_v40 = vsel %vm1198_vm3, %v1244_v39, %v1245_v61  ;;  %5045 = vmatprep.subr.bf16.mxu0 %v5044_v12  ;;  %v7293_v58 = vmov 0.0   ;;  %v1254_v39 = vrot.slane %v6145_v23, 2  ;;  %v6444_v8 = vsel %vm1198_vm3, %v1249_v29, %v1250_v55  ;;  %v3645_v23 = vld [vmem:[%s7122_s1 + $0x380] sm:$0xff]  ;;  %v3646_v29 = vld [vmem:[%s7122_s1 + $0x388] sm:$0xff] }
  0x69   : > { %4563 = vmatmul.mubr.f32.gmra.mrb[12].mxu0 %v6378_v10  ;;  %4189 = vmatprep.mubr.f32.mxu1 %v6395_v13  ;;  %v6410_v47 = vsel %vm618_vm1, %v695_v4, %v697_v28  ;;  %v3536_v4 = vld [vmem:[%s7122_s1 + $0x110] sm:$0xff]  ;;  %v6439_v31 = vsel %vm1198_vm3, %v1245_v61, %v1247_v14  ;;  %v1252_v28 = vrot.slane %v6122_v62, 2  ;;  %v1255_v26 = vrot.slane %v6135_v63, 2  ;;  %v3539_v62 = vld [vmem:[%s7122_s1 + $0x128] sm:$0xff]  ;;  %v286_v61 = vld [vmem:[%s5535_s17 + $0x180] sm:$0xff] }
  0x6a   : > { %7292 = vst [vmem:[#allocation59_spill] sm:$0xff] %v6410_v47  ;;  %4565 = vmatprep.mubr.f32.mxu0 %v6381_v15  ;;  %7294 = vst [vmem:[#allocation60_spill] sm:$0xff] %v6439_v31  ;;  %v5052_v13 = vpack.c.bf16 %v3629_v38, %v3628_v36  ;;  %v3540_v38 = vld [vmem:[%s7122_s1 + $0x130] sm:$0xff] }
  0x6b   : > { %5047 = vmatpush3.bf16.msra.mxu0 %v5044_v12  ;;  %v4900_v12 = vpack.c.bf16 %v3537_v1, %v3536_v4  ;;  %v6467_v14 = vsel %vm1198_vm3, %v1250_v55, %v1252_v28  ;;  %v1257_v4 = vrot.slane %v6173_v59, 2  ;;  %v1260_v1 = vrot.slane %v6188_v46, 2  ;;  %v287_v59 = vld [vmem:[%s5535_s17 + $0x188] sm:$0xff]  ;;  %v5402_v55 = vld [vmem:[%s7123_s2] ss:$0 sm:$0xff] }
  0x6c   : > { %4190 = vmatmul.mubr.f32.gmra.mrb[30].mxu1 %v6410_v47  ;;  %5049 = vmatprep.subr.bf16.mxu0 %v5048_v33  ;;  %v3538_v47 = vld [vmem:[%s7122_s1 + $0x120] sm:$0xff]  ;;  %7295 = vst [vmem:[#allocation61_spill] sm:$0xff] %v6467_v14  ;;  %v288_v28 = vld [vmem:[%s5535_s17 + $0x190] sm:$0x3] }
  0x6d   : > { %4566 = vmatmul.mubr.f32.gmra.mrb[14].mxu0 %v6414_v7  ;;  %4224 = vmatprep.mubr.f32.mxu1 %v7293_v58  ;;  %v4904_v36 = vpack.c.bf16 %v3539_v62, %v3538_v47  ;;  %v346_v47 = vmul.f32 %v5402_v55, %v286_v61  ;;  %v1262_v62 = vrot.slane %v6225_v16, 2  ;;  %v3542_v16 = vld [vmem:[%s7122_s1 + $0x140] sm:$0xff] }
  0x6e   : > { %4568 = vmatprep.mubr.f32.mxu0 %v6418_v40 }
  0x6f   : > { %5051 = vmatpush3.bf16.msra.mxu0 %v5048_v33  ;;  %v1259_v33 = vrot.slane %v6199_v54, 2  ;;  %v3541_v54 = vld [vmem:[%s7122_s1 + $0x138] sm:$0xff] }
  0x70   : > { %4225 = vmatmul.mubr.f32.vlgmr.msra.gmra.mrb[0].mxu1 %v7293_v58  ;;  %5053 = vmatprep.subr.bf16.mxu0 %v5052_v13  ;;  %v4908_v61 = vpack.c.bf16 %v3541_v54, %v3540_v38  ;;  %v1269_v38 = vrot.slane %v6307_v50, 2  ;;  %v1270_v54 = vrot.slane %v6302_v53, 2  ;;  %v3545_v50 = vld [vmem:[%s7122_s1 + $0x158] sm:$0xff] }
  0x71   : > { %4569 = vmatmul.mubr.f32.gmra.mrb[16].mxu0 %v6439_v31  ;;  %4899 = vmatpush3.bf16.msra.mxu1 %v4896_v43  ;;  %v6473_v43 = vsel %vm1198_vm3, %v1254_v39, %v1255_v26  ;;  %v6495_v39 = vsel %vm1198_vm3, %v1255_v26, %v1257_v4  ;;  %v5403_v26 = vld [vmem:[%s7124_s3] ss:$0 sm:$0xff]  ;;  %v6520_v4 = vsel %vm1198_vm3, %v1260_v1, %v1262_v62  ;;  %v1275_v62 = vrot.slane %v6361_v19, 2 }
  0x72   : > { %4227 = vmatprep.mubr.msk.f32.mxu1 %vm470_vm0, %v5614_v5  ;;  %4571 = vmatprep.mubr.f32.mxu0 %v6444_v8  ;;  %7296 = vst [vmem:[#allocation62_spill] sm:$0xff] %v6473_v43  ;;  %v6478_v5 = vpack.c.bf16 %v3646_v29, %v3645_v23  ;;  %v1264_v23 = vrot.slane %v6260_v60, 2  ;;  %v1265_v29 = vrot.slane %v6255_v41, 2  ;;  %v3543_v60 = vld [vmem:[%s7122_s1 + $0x148] sm:$0xff] }
  0x73   : > { %4901 = vmatprep.subr.bf16.mxu1 %v4900_v12  ;;  %5055 = vmatpush3.bf16.msra.mxu0 %v5052_v13  ;;  %v6498_v13 = vsel %vm1198_vm3, %v1259_v33, %v1260_v1  ;;  %v1267_v33 = vrot.slane %v6282_v18, 2  ;;  %v3544_v18 = vld [vmem:[%s7122_s1 + $0x150] sm:$0xff]  ;;  %v7299_v1 = vld [vmem:[#allocation15_spill] sm:$0xff] }
  0x74   : > { %4228 = vmatmul.mubr.f32.gmra.mrb[2].mxu1 %v5616_v6  ;;  %7297 = vst [vmem:[#allocation63_spill] sm:$0xff] %v6498_v13  ;;  %v347_v6 = vmul.f32 %v5402_v55, %v287_v59  ;;  %5057 = vmatprep.subr.bf16.mxu0 %v6478_v5  ;;  %v6526_v59 = vsel %vm1198_vm3, %v1264_v23, %v1265_v29 }
  0x75   : > { %4572 = vmatmul.mubr.f32.gmra.mrb[18].mxu0 %v6467_v14  ;;  %4230 = vmatprep.mubr.msk.f32.mxu1 %vm470_vm0, %v5642_v24  ;;  %v348_v14 = vmul.f32 %v5402_v55, %v288_v28  ;;  %v4912_v28 = vpack.c.bf16 %v3543_v60, %v3542_v16  ;;  %v6549_v23 = vsel %vm1198_vm3, %v1269_v38, %v1270_v54  ;;  %v1277_v38 = vrot.slane %v6385_v27, 2  ;;  %v3549_v27 = vld [vmem:[%s7122_s1 + $0x178] sm:$0xff] }
  0x76   : > { %4574 = vmatprep.mubr.f32.mxu0 %v6473_v43  ;;  %4903 = vmatpush3.bf16.msra.mxu1 %v4900_v12  ;;  %v406_v12 = vadd.f32 %v5403_v26, %v346_v47  ;;  %v407_v55 = vadd.f32 %v5403_v26, %v347_v6  ;;  %v6543_v6 = vsel %vm1198_vm3, %v1265_v29, %v1267_v33 }
  0x77   : > { %4905 = vmatprep.subr.bf16.mxu1 %v4904_v36  ;;  %v408_v47 = vadd.f32 %v5403_v26, %v348_v14  ;;  %v1272_v14 = vrot.slane %v6325_v45, 2  ;;  %v4916_v16 = vpack.c.bf16 %v3545_v50, %v3544_v18  ;;  %v3547_v45 = vld [vmem:[%s7122_s1 + $0x168] sm:$0xff]  ;;  %v6596_v35 = vsel %vm1198_vm3, %v1275_v62, %v1277_v38 }
  0x78   : > { %4231 = vmatmul.mubr.f32.gmra.mrb[4].mxu1 %v5656_v30  ;;  %v6551_v26 = vmax.f32 %v407_v55, 0.0 }
  0x79   : > { %4575 = vmatmul.mubr.f32.gmra.mrb[20].mxu0 %v6495_v39  ;;  %4233 = vmatprep.mubr.msk.f32.mxu1 %vm470_vm0, %v5698_v57  ;;  %v6571_v60 = vsel %vm1198_vm3, %v1270_v54, %v1272_v14  ;;  %v3548_v54 = vld [vmem:[%s7122_s1 + $0x170] sm:$0xff] }
  0x7a   : > { %4577 = vmatprep.mubr.f32.mxu0 %v6498_v13  ;;  %4907 = vmatpush3.bf16.msra.mxu1 %v4904_v36  ;;  %v6529_v13 = vmax.f32 %v406_v12, 0.0  ;;  %v1274_v36 = vrot.slane %v6367_v0, 2  ;;  %v462_v12 = vmax.f32 %v408_v47, 0.0  ;;  %v3546_v0 = vld [vmem:[%s7122_s1 + $0x160] sm:$0xff]  ;;  %v2144_v47 = vrot.slane %v6551_v26, 2 }
  0x7b   : > { %4909 = vmatprep.subr.bf16.mxu1 %v4908_v61  ;;  %v4920_v50 = vpack.c.bf16 %v3547_v45, %v3546_v0  ;;  %v3550_v0 = vld [vmem:[%s7122_s1 + $0x180] sm:$0xff]  ;;  %v3551_v45 = vld [vmem:[%s7122_s1 + $0x188] sm:$0xff] }
  0x7c   : > { %4234 = vmatmul.mubr.f32.gmra.mrb[6].mxu1 %v5721_v11  ;;  %7298 = vst [vmem:[#allocation64_spill] sm:$0xff] %v6529_v13  ;;  %v6557_v29 = vsel %vm470_vm0, %v6529_v13, 0.0  ;;  %v6574_v33 = vsel %vm1198_vm3, %v1274_v36, %v1275_v62  ;;  %v6581_v18 = vsel %vm481_vm2, %v462_v12, 0.0  ;;  %v4924_v12 = vpack.c.bf16 %v3549_v27, %v3548_v54  ;;  %v7303_v62 = vld [vmem:[#allocation23_spill] sm:$0xff]  ;;  %v3648_v54 = vld [vmem:[%s7122_s1 + $0x398] sm:$0xff]  ;;  %v7305_v27 = vld [vmem:[#allocation26_spill] sm:$0xff] }
  0x7d   : > { %4578 = vmatmul.mubr.f32.gmra.mrb[22].mxu0 %v6520_v4  ;;  %4236 = vmatprep.mubr.msk.f32.mxu1 %vm470_vm0, %v7299_v1  ;;  %v2143_v55 = vrot.slane %v6557_v29, 2  ;;  %v2146_v14 = vrot.slane %v6581_v18, 2  ;;  %v6617_v38 = vpack.c.bf16 %v3551_v45, %v3550_v0  ;;  %v7306_v0 = vld [vmem:[#allocation32_spill] sm:$0xff] }
  0x7e   : > { %4580 = vmatprep.mubr.f32.mxu0 %v6526_v59  ;;  %4911 = vmatpush3.bf16.msra.mxu1 %v4908_v61  ;;  %v7300_v61 = vld [vmem:[#allocation16_spill] sm:$0xff] }
  0x7f   : > { %4913 = vmatprep.subr.bf16.mxu1 %v4912_v28  ;;  %v6600_v36 = vsel %vm1198_vm3, %v2143_v55, %v2144_v47  ;;  %v3647_v55 = vld [vmem:[%s7122_s1 + $0x390] sm:$0xff] }
  0x80   : > { %4237 = vmatmul.mubr.f32.gmra.mrb[8].mxu1 %v5761_v48  ;;  %7302 = vst [vmem:[#allocation15_spill] sm:$0xff] %v6600_v36  ;;  %v3651_v45 = vld [vmem:[%s7122_s1 + $0x3b0] sm:$0xff] }
  0x81   : > { %4581 = vmatmul.mubr.f32.gmra.mrb[24].mxu0 %v6543_v6  ;;  %4239 = vmatprep.mubr.msk.f32.mxu1 %vm470_vm0, %v7300_v61 }
  0x82   : > { %4583 = vmatprep.mubr.f32.mxu0 %v6549_v23  ;;  %4915 = vmatpush3.bf16.msra.mxu1 %v4912_v28  ;;  %v7301_v28 = vld [vmem:[#allocation21_spill] sm:$0xff] }
  0x83   : > { %4917 = vmatprep.subr.bf16.mxu1 %v4916_v16 }
  0x84   : > { %4240 = vmatmul.mubr.f32.gmra.mrb[10].mxu1 %v5795_v17 }
  0x85   : > { %4584 = vmatmul.mubr.f32.gmra.mrb[26].mxu0 %v6571_v60  ;;  %4242 = vmatprep.mubr.msk.f32.mxu1 %vm470_vm0, %v7301_v28 }
  0x86   : > { %4586 = vmatprep.mubr.f32.mxu0 %v6574_v33  ;;  %4919 = vmatpush3.bf16.msra.mxu1 %v4916_v16  ;;  %v6615_v16 = vsel %vm1198_vm3, %v2144_v47, %v2146_v14  ;;  %v5060_v47 = vpack.c.bf16 %v3648_v54, %v3647_v55  ;;  %v3650_v14 = vld [vmem:[%s7122_s1 + $0x3a8] sm:$0xff]  ;;  %v3652_v55 = vld [vmem:[%s7122_s1 + $0x3b8] sm:$0xff]  ;;  %v7307_v54 = vld [vmem:[#allocation36_spill] sm:$0xff] }
  0x87   : > { %4921 = vmatprep.subr.bf16.mxu1 %v4920_v50  ;;  %7304 = vst [vmem:[#allocation16_spill] sm:$0xff] %v6615_v16  ;;  %v7366_v20 = vld [vmem:[#allocation15_spill] sm:$0xff] }
  0x88   : > { %4243 = vmatmul.mubr.f32.gmra.mrb[12].mxu1 %v5866_v52 }
  0x89   : > { %4587 = vmatmul.mubr.f32.gmra.mrb[28].mxu0 %v6596_v35  ;;  %4245 = vmatprep.mubr.msk.f32.mxu1 %vm470_vm0, %v7303_v62 }
  0x8a   : > { %4589 = vmatprep.mubr.f32.mxu0 %v6600_v36  ;;  %4923 = vmatpush3.bf16.msra.mxu1 %v4920_v50  ;;  %v3649_v50 = vld [vmem:[%s7122_s1 + $0x3a0] sm:$0xff]  ;;  %v3553_v36 = vld [vmem:[%s7122_s1 + $0x198] sm:$0xff] }
  0x8b   : > { %4925 = vmatprep.subr.bf16.mxu1 %v4924_v12 }
  0x8c   : > { %4246 = vmatmul.mubr.f32.gmra.mrb[14].mxu1 %v5894_v3 }
  0x8d   : > { %4590 = vmatmul.mubr.f32.gmra.mrb[30].mxu0 %v6615_v16  ;;  %4248 = vmatprep.mubr.msk.f32.mxu1 %vm470_vm0, %v7305_v27  ;;  %v7308_v16 = vld [vmem:[#allocation43_spill] sm:$0xff] }
  0x8e   : > { %4624 = vmatprep.mubr.msk.f32.mxu0 %vm470_vm0, %v5642_v24  ;;  %4927 = vmatpush3.bf16.msra.mxu1 %v4924_v12  ;;  %v5064_v12 = vpack.c.bf16 %v3650_v14, %v3649_v50  ;;  %v3653_v50 = vld [vmem:[%s7122_s1 + $0x3c0] sm:$0xff]  ;;  %v3654_v14 = vld [vmem:[%s7122_s1 + $0x3c8] sm:$0xff] }
  0x8f   : > { %4929 = vmatprep.subr.bf16.mxu1 %v6617_v38 }
  0x90   : > { %4249 = vmatmul.mubr.f32.gmra.mrb[16].mxu1 %v5978_v9 }
  0x91   : > { %4625 = vmatmul.mubr.f32.vlgmr.msra.gmra.mrb[0].mxu0 %v5656_v30  ;;  %4251 = vmatprep.mubr.msk.f32.mxu1 %vm470_vm0, %v7306_v0 }
  0x92   : > { %5059 = vmatpush3.bf16.msra.mxu0 %v6478_v5  ;;  %4627 = vmatprep.mubr.msk.f32.mxu0 %vm470_vm0, %v5698_v57  ;;  %v5068_v5 = vpack.c.bf16 %v3652_v55, %v3651_v45  ;;  %v3655_v45 = vld [vmem:[%s7122_s1 + $0x3d0] sm:$0xff]  ;;  %v3656_v55 = vld [vmem:[%s7122_s1 + $0x3d8] sm:$0xff] }
  0x93   : > { %5061 = vmatprep.subr.bf16.mxu0 %v5060_v47 }
  0x94   : > { %4252 = vmatmul.mubr.f32.gmra.mrb[18].mxu1 %v6041_v37 }
  0x95   : > { %4628 = vmatmul.mubr.f32.gmra.mrb[2].mxu0 %v5721_v11  ;;  %4254 = vmatprep.mubr.msk.f32.mxu1 %vm470_vm0, %v7307_v54 }
  0x96   : > { %4630 = vmatprep.mubr.msk.f32.mxu0 %vm470_vm0, %v7299_v1  ;;  %5063 = vmatpush3.bf16.msra.mxu0 %v5060_v47  ;;  %v5072_v47 = vpack.c.bf16 %v3654_v14, %v3653_v50  ;;  %v3657_v50 = vld [vmem:[%s7122_s1 + $0x3e0] sm:$0xff]  ;;  %v3658_v14 = vld [vmem:[%s7122_s1 + $0x3e8] sm:$0xff] }
  0x97   : > { %5065 = vmatprep.subr.bf16.mxu0 %v5064_v12 }
  0x98   : > { %4255 = vmatmul.mubr.f32.gmra.mrb[20].mxu1 %v6083_v32 }
  0x99   : > { %4631 = vmatmul.mubr.f32.gmra.mrb[4].mxu0 %v5761_v48  ;;  %4257 = vmatprep.mubr.msk.f32.mxu1 %vm470_vm0, %v6129_v51 }
  0x9a   : > { %4633 = vmatprep.mubr.msk.f32.mxu0 %vm470_vm0, %v7300_v61  ;;  %5067 = vmatpush3.bf16.msra.mxu0 %v5064_v12  ;;  %v5076_v12 = vpack.c.bf16 %v3656_v55, %v3655_v45  ;;  %v3659_v45 = vld [vmem:[%s7122_s1 + $0x3f0] sm:$0xff]  ;;  %v3660_v55 = vld [vmem:[%s7122_s1 + $0x3f8] sm:$0xff] }
  0x9b   : > { %5069 = vmatprep.subr.bf16.mxu0 %v5068_v5 }
  0x9c   : > { %4258 = vmatmul.mubr.f32.gmra.mrb[22].mxu1 %v6135_v63 }
  0x9d   : > { %4634 = vmatmul.mubr.f32.gmra.mrb[6].mxu0 %v5795_v17  ;;  %4260 = vmatprep.mubr.msk.f32.mxu1 %vm470_vm0, %v7308_v16 }
  0x9e   : > { %4636 = vmatprep.mubr.msk.f32.mxu0 %vm470_vm0, %v7301_v28  ;;  %5071 = vmatpush3.bf16.msra.mxu0 %v5068_v5  ;;  %v5080_v5 = vpack.c.bf16 %v3658_v14, %v3657_v50  ;;  %v3661_v50 = vld [vmem:[%s7122_s1 + $0x400] sm:$0xff]  ;;  %v3662_v14 = vld [vmem:[%s7122_s1 + $0x408] sm:$0xff] }
  0x9f   : > { %5073 = vmatprep.subr.bf16.mxu0 %v5072_v47 }
  0xa0   : > { %4261 = vmatmul.mubr.f32.gmra.mrb[24].mxu1 %v6188_v46 }
  0xa1   : > { %4637 = vmatmul.mubr.f32.gmra.mrb[8].mxu0 %v5866_v52  ;;  %4263 = vmatprep.mubr.msk.f32.mxu1 %vm470_vm0, %v6237_v22 }
  0xa2   : > { %4639 = vmatprep.mubr.msk.f32.mxu0 %vm470_vm0, %v7303_v62  ;;  %5075 = vmatpush3.bf16.msra.mxu0 %v5072_v47  ;;  %v5084_v47 = vpack.c.bf16 %v3660_v55, %v3659_v45  ;;  %v6736_v45 = vpack.c.bf16 %v3662_v14, %v3661_v50  ;;  %v3552_v55 = vld [vmem:[%s7122_s1 + $0x190] sm:$0xff]  ;;  %v3554_v50 = vld [vmem:[%s7122_s1 + $0x1a0] sm:$0xff]  ;;  %v3555_v14 = vld [vmem:[%s7122_s1 + $0x1a8] sm:$0xff] }
  0xa3   : > { %5077 = vmatprep.subr.bf16.mxu0 %v5076_v12 }
  0xa4   : > { %4264 = vmatmul.mubr.f32.gmra.mrb[26].mxu1 %v6255_v41 }
  0xa5   : > { %4640 = vmatmul.mubr.f32.gmra.mrb[10].mxu0 %v5894_v3  ;;  %4266 = vmatprep.mubr.msk.f32.mxu1 %vm470_vm0, %v6286_v56 }
  0xa6   : > { %4642 = vmatprep.mubr.msk.f32.mxu0 %vm470_vm0, %v7305_v27  ;;  %5079 = vmatpush3.bf16.msra.mxu0 %v5076_v12  ;;  %v6731_v12 = vrot.slane %v7293_v58, 2 }
  0xa7   : > { %5081 = vmatprep.subr.bf16.mxu0 %v5080_v5 }
  0xa8   : > { %4267 = vmatmul.mubr.f32.gmra.mrb[28].mxu1 %v6302_v53  ;;  %7309 = vst [vmem:[#allocation21_spill] sm:$0xff] %v6731_v12 }
  0xa9   : > { %4643 = vmatmul.mubr.f32.gmra.mrb[12].mxu0 %v5978_v9  ;;  %4269 = vmatprep.mubr.msk.f32.mxu1 %vm470_vm0, %v6354_v44 }
  0xaa   : > { %4645 = vmatprep.mubr.msk.f32.mxu0 %vm470_vm0, %v7306_v0  ;;  %5083 = vmatpush3.bf16.msra.mxu0 %v5080_v5  ;;  %v4932_v5 = vpack.c.bf16 %v3553_v36, %v3552_v55  ;;  %v4936_v36 = vpack.c.bf16 %v3555_v14, %v3554_v50  ;;  %v3556_v55 = vld [vmem:[%s7122_s1 + $0x1b0] sm:$0xff]  ;;  %v3558_v50 = vld [vmem:[%s7122_s1 + $0x1c0] sm:$0xff]  ;;  %v3559_v14 = vld [vmem:[%s7122_s1 + $0x1c8] sm:$0xff] }
  0xab   : > { %5085 = vmatprep.subr.bf16.mxu0 %v5084_v47 }
  0xac   : > { %4270 = vmatmul.mubr.f32.gmra.mrb[30].mxu1 %v6361_v19 }
  0xad   : > { %4646 = vmatmul.mubr.f32.gmra.mrb[14].mxu0 %v6041_v37  ;;  %4304 = vmatprep.mubr.f32.mxu1 %v6731_v12  ;;  %v7310_v37 = vld [vmem:[#allocation30_spill] sm:$0xff] }
  0xae   : > { %4648 = vmatprep.mubr.msk.f32.mxu0 %vm470_vm0, %v7307_v54  ;;  %5087 = vmatpush3.bf16.msra.mxu0 %v5084_v47  ;;  %v7311_v47 = vld [vmem:[#allocation31_spill] sm:$0xff] }
  0xaf   : > { %5089 = vmatprep.subr.bf16.mxu0 %v6736_v45 }
  0xb0   : > { %4305 = vmatmul.mubr.f32.vlgmr.msra.gmra.mrb[0].mxu1 %v6731_v12  ;;  %v3557_v12 = vld [vmem:[%s7122_s1 + $0x1b8] sm:$0xff] }
  0xb1   : > { %4649 = vmatmul.mubr.f32.gmra.mrb[16].mxu0 %v6083_v32  ;;  %4931 = vmatpush3.bf16.msra.mxu1 %v6617_v38  ;;  %v7312_v38 = vld [vmem:[#allocation35_spill] sm:$0xff] }
  0xb2   : > { %4307 = vmatprep.mubr.f32.mxu1 %v7310_v37  ;;  %4651 = vmatprep.mubr.msk.f32.mxu0 %vm470_vm0, %v6129_v51  ;;  %v4940_v37 = vpack.c.bf16 %v3557_v12, %v3556_v55  ;;  %v4944_v12 = vpack.c.bf16 %v3559_v14, %v3558_v50  ;;  %v3560_v55 = vld [vmem:[%s7122_s1 + $0x1d0] sm:$0xff]  ;;  %v3562_v14 = vld [vmem:[%s7122_s1 + $0x1e0] sm:$0xff] }
  0xb3   : > { %4933 = vmatprep.subr.bf16.mxu1 %v4932_v5  ;;  %v7316_v50 = vld [vmem:[#allocation48_spill] sm:$0xff] }
  0xb4   : > { %4308 = vmatmul.mubr.f32.gmra.mrb[2].mxu1 %v7311_v47  ;;  %v7313_v47 = vld [vmem:[#allocation39_spill] sm:$0xff] }
  0xb5   : > { %4652 = vmatmul.mubr.f32.gmra.mrb[18].mxu0 %v6135_v63  ;;  %4310 = vmatprep.mubr.f32.mxu1 %v7312_v38 }
  0xb6   : > { %4654 = vmatprep.mubr.msk.f32.mxu0 %vm470_vm0, %v7308_v16  ;;  %4935 = vmatpush3.bf16.msra.mxu1 %v4932_v5  ;;  %v7314_v5 = vld [vmem:[#allocation40_spill] sm:$0xff]  ;;  %v3561_v16 = vld [vmem:[%s7122_s1 + $0x1d8] sm:$0xff] }
  0xb7   : > { %4937 = vmatprep.subr.bf16.mxu1 %v4936_v36 }
  0xb8   : > { %4311 = vmatmul.mubr.f32.gmra.mrb[4].mxu1 %v6074_v21 }
  0xb9   : > { %4655 = vmatmul.mubr.f32.gmra.mrb[20].mxu0 %v6188_v46  ;;  %4313 = vmatprep.mubr.f32.mxu1 %v7313_v47  ;;  %v7315_v46 = vld [vmem:[#allocation44_spill] sm:$0xff] }
  0xba   : > { %4657 = vmatprep.mubr.msk.f32.mxu0 %vm470_vm0, %v6237_v22  ;;  %4939 = vmatpush3.bf16.msra.mxu1 %v4936_v36  ;;  %v4948_v36 = vpack.c.bf16 %v3561_v16, %v3560_v55  ;;  %v3563_v22 = vld [vmem:[%s7122_s1 + $0x1e8] sm:$0xff]  ;;  %v3565_v55 = vld [vmem:[%s7122_s1 + $0x1f8] sm:$0xff] }
  0xbb   : > { %4941 = vmatprep.subr.bf16.mxu1 %v4940_v37  ;;  %v4952_v16 = vpack.c.bf16 %v3563_v22, %v3562_v14  ;;  %v7317_v14 = vld [vmem:[#allocation13_spill] sm:$0xff] }
  0xbc   : > { %4314 = vmatmul.mubr.f32.gmra.mrb[6].mxu1 %v7314_v5 }
  0xbd   : > { %4658 = vmatmul.mubr.f32.gmra.mrb[22].mxu0 %v6255_v41  ;;  %4316 = vmatprep.mubr.f32.mxu1 %v7315_v46 }
  0xbe   : > { %4660 = vmatprep.mubr.msk.f32.mxu0 %vm470_vm0, %v6286_v56  ;;  %4943 = vmatpush3.bf16.msra.mxu1 %v4940_v37  ;;  %v3564_v37 = vld [vmem:[%s7122_s1 + $0x1f0] sm:$0xff] }
  0xbf   : > { %4945 = vmatprep.subr.bf16.mxu1 %v4944_v12  ;;  %v4956_v22 = vpack.c.bf16 %v3565_v55, %v3564_v37  ;;  %v3665_v55 = vld [vmem:[%s7122_s1 + $0x420] sm:$0xff] }
  0xc0   : > { %4317 = vmatmul.mubr.f32.gmra.mrb[8].mxu1 %v7316_v50 }
  0xc1   : > { %4661 = vmatmul.mubr.f32.gmra.mrb[24].mxu0 %v6302_v53  ;;  %4319 = vmatprep.mubr.f32.mxu1 %v6234_v42 }
  0xc2   : > { %4663 = vmatprep.mubr.msk.f32.mxu0 %vm470_vm0, %v6354_v44  ;;  %4947 = vmatpush3.bf16.msra.mxu1 %v4944_v12  ;;  %v3663_v12 = vld [vmem:[%s7122_s1 + $0x410] sm:$0xff] }
  0xc3   : > { %4949 = vmatprep.subr.bf16.mxu1 %v4948_v36 }
  0xc4   : > { %4320 = vmatmul.mubr.f32.gmra.mrb[10].mxu1 %v6241_v2 }
  0xc5   : > { %4664 = vmatmul.mubr.f32.gmra.mrb[26].mxu0 %v6361_v19  ;;  %4322 = vmatprep.mubr.f32.mxu1 %v6294_v34  ;;  %v7319_v19 = vld [vmem:[#allocation14_spill] sm:$0xff] }
  0xc6   : > { %4666 = vmatprep.mubr.msk.f32.mxu0 %vm470_vm0, %v6529_v13  ;;  %4951 = vmatpush3.bf16.msra.mxu1 %v4948_v36  ;;  %v3664_v36 = vld [vmem:[%s7122_s1 + $0x418] sm:$0xff]  ;;  %v3666_v13 = vld [vmem:[%s7122_s1 + $0x428] sm:$0xff] }
  0xc7   : > { %4953 = vmatprep.subr.bf16.mxu1 %v4952_v16  ;;  %v5092_v37 = vpack.c.bf16 %v3664_v36, %v3663_v12  ;;  %v3667_v12 = vld [vmem:[%s7122_s1 + $0x430] sm:$0xff]  ;;  %v3668_v36 = vld [vmem:[%s7122_s1 + $0x438] sm:$0xff] }
  0xc8   : > { %4323 = vmatmul.mubr.f32.gmra.mrb[12].mxu1 %v6317_v49 }
  0xc9   : > { %4667 = vmatmul.mubr.f32.gmra.mrb[28].mxu0 %v6551_v26  ;;  %4325 = vmatprep.mubr.f32.mxu1 %v6359_v25 }
  0xca   : > { %4669 = vmatprep.mubr.f32.mxu0 %v7293_v58  ;;  %4955 = vmatpush3.bf16.msra.mxu1 %v4952_v16  ;;  %v7318_v16 = vld [vmem:[#allocation3_spill] sm:$0xff] }
  0xcb   : > { %4957 = vmatprep.subr.bf16.mxu1 %v4956_v22 }
  0xcc   : > { %4326 = vmatmul.mubr.f32.gmra.mrb[14].mxu1 %v6378_v10 }
  0xcd   : > { %4670 = vmatmul.mubr.f32.gmra.mrb[30].mxu0 %v7293_v58  ;;  %4328 = vmatprep.mubr.f32.mxu1 %v6381_v15  ;;  %v7320_v58 = vld [vmem:[#allocation17_spill] sm:$0xff] }
  0xce   : > { %4704 = vmatprep.mubr.f32.mxu0 %v7317_v14  ;;  %4959 = vmatpush3.bf16.msra.mxu1 %v4956_v22  ;;  %v5096_v22 = vpack.c.bf16 %v3666_v13, %v3665_v55  ;;  %v7321_v14 = vld [vmem:[#allocation18_spill] sm:$0xff]  ;;  %v7323_v13 = vld [vmem:[#allocation61_spill] sm:$0xff] }
  0xcf   : > { %5120 = vmatprep.subr.bf16.mxu1 %v7318_v16  ;;  %v3669_v55 = vld [vmem:[%s7122_s1 + $0x440] sm:$0xff] }
  0xd0   : > { %4329 = vmatmul.mubr.f32.gmra.mrb[16].mxu1 %v6414_v7 }
  0xd1   : > { %4705 = vmatmul.mubr.f32.vlgmr.msra.gmra.mrb[0].mxu0 %v7319_v19  ;;  %4331 = vmatprep.mubr.f32.mxu1 %v6418_v40  ;;  %v7322_v19 = vld [vmem:[#allocation19_spill] sm:$0xff] }
  0xd2   : > { %5091 = vmatpush3.bf16.msra.mxu0 %v6736_v45  ;;  %4707 = vmatprep.mubr.f32.mxu0 %v7320_v58  ;;  %v5100_v45 = vpack.c.bf16 %v3668_v36, %v3667_v12  ;;  %v3670_v58 = vld [vmem:[%s7122_s1 + $0x448] sm:$0xff]  ;;  %v3671_v12 = vld [vmem:[%s7122_s1 + $0x450] sm:$0xff]  ;;  %v3672_v36 = vld [vmem:[%s7122_s1 + $0x458] sm:$0xff] }
  0xd3   : > { %5093 = vmatprep.subr.bf16.mxu0 %v5092_v37 }
  0xd4   : > { %4332 = vmatmul.mubr.f32.gmra.mrb[18].mxu1 %v6439_v31  ;;  %v7324_v31 = vld [vmem:[#allocation20_spill] sm:$0xff] }
  0xd5   : > { %4708 = vmatmul.mubr.f32.gmra.mrb[2].mxu0 %v7321_v14  ;;  %4334 = vmatprep.mubr.f32.mxu1 %v6444_v8  ;;  %v7325_v14 = vld [vmem:[#allocation22_spill] sm:$0xff] }
  0xd6   : > { %4710 = vmatprep.mubr.f32.mxu0 %v7322_v19  ;;  %5095 = vmatpush3.bf16.msra.mxu0 %v5092_v37  ;;  %v5104_v37 = vpack.c.bf16 %v3670_v58, %v3669_v55  ;;  %v7326_v19 = vld [vmem:[#allocation24_spill] sm:$0xff]  ;;  %v3673_v55 = vld [vmem:[%s7122_s1 + $0x460] sm:$0xff]  ;;  %v3674_v58 = vld [vmem:[%s7122_s1 + $0x468] sm:$0xff] }
  0xd7   : > { %5097 = vmatprep.subr.bf16.mxu0 %v5096_v22 }
  0xd8   : > { %4335 = vmatmul.mubr.f32.gmra.mrb[20].mxu1 %v7323_v13 }
  0xd9   : > { %4711 = vmatmul.mubr.f32.gmra.mrb[4].mxu0 %v7324_v31  ;;  %4337 = vmatprep.mubr.f32.mxu1 %v6473_v43  ;;  %v7327_v31 = vld [vmem:[#allocation63_spill] sm:$0xff]  ;;  %v7328_v43 = vld [vmem:[#allocation25_spill] sm:$0xff] }
  0xda   : > { %4713 = vmatprep.mubr.f32.mxu0 %v7325_v14  ;;  %5099 = vmatpush3.bf16.msra.mxu0 %v5096_v22  ;;  %v5108_v22 = vpack.c.bf16 %v3672_v36, %v3671_v12  ;;  %v7329_v14 = vld [vmem:[#allocation27_spill] sm:$0xff]  ;;  %v3676_v12 = vld [vmem:[%s7122_s1 + $0x478] sm:$0xff] }
  0xdb   : > { %5101 = vmatprep.subr.bf16.mxu0 %v5100_v45  ;;  %v7331_v36 = vld [vmem:[#allocation29_spill] sm:$0xff] }
  0xdc   : > { %4338 = vmatmul.mubr.f32.gmra.mrb[22].mxu1 %v6495_v39 }
  0xdd   : > { %4714 = vmatmul.mubr.f32.gmra.mrb[6].mxu0 %v7326_v19  ;;  %4340 = vmatprep.mubr.f32.mxu1 %v7327_v31  ;;  %v7330_v19 = vld [vmem:[#allocation28_spill] sm:$0xff] }
  0xde   : > { %4716 = vmatprep.mubr.f32.mxu0 %v7328_v43  ;;  %5103 = vmatpush3.bf16.msra.mxu0 %v5100_v45  ;;  %v5112_v43 = vpack.c.bf16 %v3674_v58, %v3673_v55  ;;  %v3675_v45 = vld [vmem:[%s7122_s1 + $0x470] sm:$0xff]  ;;  %v7333_v55 = vld [vmem:[#allocation37_spill] sm:$0xff]  ;;  %v7334_v58 = vld [vmem:[#allocation38_spill] sm:$0xff] }
  0xdf   : > { %5105 = vmatprep.subr.bf16.mxu0 %v5104_v37 }
  0xe0   : > { %4341 = vmatmul.mubr.f32.gmra.mrb[24].mxu1 %v6520_v4 }
  0xe1   : > { %4717 = vmatmul.mubr.f32.gmra.mrb[8].mxu0 %v7329_v14  ;;  %4343 = vmatprep.mubr.f32.mxu1 %v6526_v59  ;;  %v7332_v14 = vld [vmem:[#allocation33_spill] sm:$0xff] }
  0xe2   : > { %4719 = vmatprep.mubr.f32.mxu0 %v7330_v19  ;;  %5107 = vmatpush3.bf16.msra.mxu0 %v5104_v37  ;;  %v5116_v37 = vpack.c.bf16 %v3676_v12, %v3675_v45  ;;  %v7335_v19 = vld [vmem:[#allocation41_spill] sm:$0xff]  ;;  %v7338_v45 = vld [vmem:[#allocation11_spill] sm:$0xff]  ;;  %v7339_v12 = vld [vmem:[#allocation46_spill] sm:$0xff] }
  0xe3   : > { %5109 = vmatprep.subr.bf16.mxu0 %v5108_v22 }
  0xe4   : > { %4344 = vmatmul.mubr.f32.gmra.mrb[26].mxu1 %v6543_v6 }
  0xe5   : > { %4720 = vmatmul.mubr.f32.gmra.mrb[10].mxu0 %v7331_v36  ;;  %4346 = vmatprep.mubr.f32.mxu1 %v6549_v23  ;;  %v7336_v36 = vld [vmem:[#allocation10_spill] sm:$0xff] }
  0xe6   : > { %4722 = vmatprep.mubr.f32.mxu0 %v7332_v14  ;;  %5111 = vmatpush3.bf16.msra.mxu0 %v5108_v22  ;;  %v7337_v22 = vld [vmem:[#allocation42_spill] sm:$0xff]  ;;  %v7341_v14 = vld [vmem:[#allocation4_spill] sm:$0xff] }
  0xe7   : > { %5113 = vmatprep.subr.bf16.mxu0 %v5112_v43 }
  0xe8   : > { %4347 = vmatmul.mubr.f32.gmra.mrb[28].mxu1 %v6571_v60 }
  0xe9   : > { %4723 = vmatmul.mubr.f32.gmra.mrb[12].mxu0 %v7333_v55  ;;  %4349 = vmatprep.mubr.f32.mxu1 %v6574_v33  ;;  %v7342_v55 = vld [vmem:[#allocation49_spill] sm:$0xff] }
  0xea   : > { %4725 = vmatprep.mubr.f32.mxu0 %v7334_v58  ;;  %5115 = vmatpush3.bf16.msra.mxu0 %v5112_v43  ;;  %v7340_v43 = vld [vmem:[#allocation47_spill] sm:$0xff] }
  0xeb   : > { %5117 = vmatprep.subr.bf16.mxu0 %v5116_v37 }
  0xec   : > { %4350 = vmatmul.mubr.f32.gmra.mrb[30].mxu1 %v6596_v35 }
  0xed   : > { %4726 = vmatmul.mubr.f32.gmra.mrb[14].mxu0 %v7335_v19  ;;  %4384 = vmatprep.mubr.msk.f32.mxu1 %vm470_vm0, %v7336_v36  ;;  %v7347_v36 = vld [vmem:[#allocation6_spill] sm:$0xff] }
  0xee   : > { %4728 = vmatprep.mubr.f32.mxu0 %v7337_v22  ;;  %5119 = vmatpush3.bf16.msra.mxu0 %v5116_v37  ;;  %v7343_v37 = vld [vmem:[#allocation51_spill] sm:$0xff] }
  0xf0   : > { %4385 = vmatmul.mubr.f32.vlgmr.msra.gmra.mrb[0].mxu1 %v7338_v45  ;;  %v1863_v45 = vrot.slane %v6551_v26, 1 }
  0xf1   : > { %4729 = vmatmul.mubr.f32.gmra.mrb[16].mxu0 %v7339_v12  ;;  %5128 = vmatpush3.bf16.msra.mxu1 %v7318_v16  ;;  %v7344_v16 = vld [vmem:[#allocation5_spill] sm:$0xff] }
  0xf2   : > { %4387 = vmatprep.mubr.msk.f32.mxu1 %vm470_vm0, %v5642_v24  ;;  %4731 = vmatprep.mubr.f32.mxu0 %v7340_v43  ;;  %v7345_v24 = vld [vmem:[#allocation52_spill] sm:$0xff] }
  0xf3   : > { %5121 = vmatprep.subr.bf16.mxu1 %v7341_v14 }
  0xf4   : > { %4388 = vmatmul.mubr.f32.gmra.mrb[2].mxu1 %v5656_v30  ;;  %v7346_v30 = vld [vmem:[#allocation53_spill] sm:$0xff] }
  0xf5   : > { %4732 = vmatmul.mubr.f32.gmra.mrb[18].mxu0 %v7342_v55  ;;  %4390 = vmatprep.mubr.msk.f32.mxu1 %vm470_vm0, %v5698_v57  ;;  %v7348_v57 = vld [vmem:[#allocation54_spill] sm:$0xff] }
  0xf6   : > { %4734 = vmatprep.mubr.f32.mxu0 %v7343_v37  ;;  %5129 = vmatpush3.bf16.msra.mxu1 %v7341_v14  ;;  %v7350_v14 = vld [vmem:[#allocation7_spill] sm:$0xff] }
  0xf7   : > { %5122 = vmatprep.subr.bf16.mxu1 %v7344_v16 }
  0xf8   : > { %4391 = vmatmul.mubr.f32.gmra.mrb[4].mxu1 %v5721_v11  ;;  %v7349_v11 = vld [vmem:[#allocation55_spill] sm:$0xff] }
  0xf9   : > { %4735 = vmatmul.mubr.f32.gmra.mrb[20].mxu0 %v7345_v24  ;;  %4393 = vmatprep.mubr.msk.f32.mxu1 %vm470_vm0, %v7299_v1  ;;  %v1862_v1 = vrot.slane %v6557_v29, 1 }
  0xfa   : > { %4737 = vmatprep.mubr.f32.mxu0 %v7346_v30  ;;  %5130 = vmatpush3.bf16.msra.mxu1 %v7344_v16  ;;  %v7351_v16 = vld [vmem:[#allocation57_spill] sm:$0xff] }
  0xfb   : > { %5123 = vmatprep.subr.bf16.mxu1 %v7347_v36  ;;  %v6953_v29 = vsel %vm618_vm1, %v1862_v1, %v1863_v45 }
  0xfc   : > { %4394 = vmatmul.mubr.f32.gmra.mrb[6].mxu1 %v5761_v48  ;;  %v7352_v48 = vld [vmem:[#allocation58_spill] sm:$0xff] }
  0xfd   : > { %4738 = vmatmul.mubr.f32.gmra.mrb[22].mxu0 %v7348_v57  ;;  %4396 = vmatprep.mubr.msk.f32.mxu1 %vm470_vm0, %v7300_v61  ;;  %v1865_v61 = vrot.slane %v6581_v18, 1  ;;  %v7355_v18 = vld [vmem:[#allocation9_spill] sm:$0xff] }
  0xfe   : > { %4740 = vmatprep.mubr.f32.mxu0 %v7349_v11  ;;  %5131 = vmatpush3.bf16.msra.mxu1 %v7347_v36  ;;  %v7353_v36 = vld [vmem:[#allocation8_spill] sm:$0xff] }
  0xff   : > { %5124 = vmatprep.subr.bf16.mxu1 %v7350_v14 }
 0x100   : > { %4397 = vmatmul.mubr.f32.gmra.mrb[8].mxu1 %v5795_v17  ;;  %v7354_v17 = vld [vmem:[#allocation59_spill] sm:$0xff] }
 0x101   : > { %4741 = vmatmul.mubr.f32.gmra.mrb[24].mxu0 %v7351_v16  ;;  %4399 = vmatprep.mubr.msk.f32.mxu1 %vm470_vm0, %v7301_v28  ;;  %v6963_v28 = vsel %vm618_vm1, %v1863_v45, %v1865_v61 }
 0x102   : > { %4743 = vmatprep.mubr.f32.mxu0 %v7352_v48  ;;  %5132 = vmatpush3.bf16.msra.mxu1 %v7350_v14 }
 0x103   : > { %5125 = vmatprep.subr.bf16.mxu1 %v7353_v36 }
 0x104   : > { %4400 = vmatmul.mubr.f32.gmra.mrb[10].mxu1 %v5866_v52  ;;  %v7356_v52 = vld [vmem:[#allocation2_spill] sm:$0xff] }
 0x105   : > { %4744 = vmatmul.mubr.f32.gmra.mrb[26].mxu0 %v7354_v17  ;;  %4402 = vmatprep.mubr.msk.f32.mxu1 %vm470_vm0, %v7303_v62  ;;  %v7357_v62 = vld [vmem:[#allocation12_spill] sm:$0xff] }
 0x106   : > { %4746 = vmatprep.mubr.f32.mxu0 %v6953_v29  ;;  %5133 = vmatpush3.bf16.msra.mxu1 %v7353_v36 }
 0x107   : > { %5126 = vmatprep.subr.bf16.mxu1 %v7355_v18 }
 0x108   : > { %4403 = vmatmul.mubr.f32.gmra.mrb[12].mxu1 %v5894_v3  ;;  %v7358_v3 = vld [vmem:[#allocation34_spill] sm:$0xff] }
 0x109   : > { %4747 = vmatmul.mubr.f32.gmra.mrb[28].mxu0 %v6963_v28  ;;  %4405 = vmatprep.mubr.msk.f32.mxu1 %vm470_vm0, %v7305_v27 }
 0x10a   : > { %4749 = vmatprep.mubr.f32.mxu0 %v7356_v52  ;;  %5134 = vmatpush3.bf16.msra.mxu1 %v7355_v18 }
 0x10b   : > { %5127 = vmatprep.subr.bf16.mxu1 %v7357_v62 }
 0x10c   : > { %4406 = vmatmul.mubr.f32.gmra.mrb[14].mxu1 %v5978_v9  ;;  %v7359_v9 = vld [vmem:[#allocation43_spill] sm:$0xff] }
 0x10d   : > { %4750 = vmatmul.mubr.f32.gmra.mrb[30].mxu0 %v7356_v52  ;;  %4408 = vmatprep.mubr.msk.f32.mxu1 %vm470_vm0, %v7306_v0 }
 0x10e   : > { %4784 = vmatprep.mubr.f32.mxu0 %v7312_v38  ;;  %5135 = vmatpush3.bf16.msra.mxu1 %v7357_v62 }
 0x110   : > { %4409 = vmatmul.mubr.f32.gmra.mrb[16].mxu1 %v7358_v3 }
 0x111   : > { %4785 = vmatmul.mubr.f32.vlgmr.msra.gmra.mrb[0].mxu0 %v6074_v21  ;;  %4411 = vmatprep.mubr.msk.f32.mxu1 %vm470_vm0, %v7307_v54  ;;  %v7360_v21 = vld [vmem:[#allocation45_spill] sm:$0xff] }
 0x112   : > { %4787 = vmatprep.mubr.f32.mxu0 %v7313_v47 }
 0x114   : > { %4412 = vmatmul.mubr.f32.gmra.mrb[18].mxu1 %v6083_v32  ;;  %v7361_v32 = vld [vmem:[#allocation50_spill] sm:$0xff] }
 0x115   : > { %4788 = vmatmul.mubr.f32.gmra.mrb[2].mxu0 %v7314_v5  ;;  %4414 = vmatprep.mubr.msk.f32.mxu1 %vm470_vm0, %v6129_v51  ;;  %v7362_v51 = vld [vmem:[#allocation56_spill] sm:$0xff] }
 0x116   : > { %4790 = vmatprep.mubr.f32.mxu0 %v7315_v46  ;;  %v7365_v46 = vld [vmem:[#allocation62_spill] sm:$0xff] }
 0x118   : > { %4415 = vmatmul.mubr.f32.gmra.mrb[20].mxu1 %v6135_v63  ;;  %v7363_v63 = vld [vmem:[#allocation64_spill] sm:$0xff] }
 0x119   : > { %4791 = vmatmul.mubr.f32.gmra.mrb[4].mxu0 %v7316_v50  ;;  %4417 = vmatprep.mubr.msk.f32.mxu1 %vm470_vm0, %v7359_v9 }
 0x11a   : > { %4793 = vmatprep.mubr.f32.mxu0 %v6234_v42  ;;  %v7367_v42 = vld [vmem:[#allocation16_spill] sm:$0xff] }
 0x11c   : > { %4418 = vmatmul.mubr.f32.gmra.mrb[22].mxu1 %v7360_v21 }
 0x11d   : > { %4794 = vmatmul.mubr.f32.gmra.mrb[6].mxu0 %v6241_v2  ;;  %4420 = vmatprep.mubr.msk.f32.mxu1 %vm470_vm0, %v7361_v32  ;;  %v7368_v2 = vld [vmem:[#allocation21_spill] sm:$0xff] }
 0x11e   : > { %4796 = vmatprep.mubr.f32.mxu0 %v6294_v34 }
 0x120   : > { %4421 = vmatmul.mubr.f32.gmra.mrb[24].mxu1 %v6255_v41 }
 0x121   : > { %4797 = vmatmul.mubr.f32.gmra.mrb[8].mxu0 %v6317_v49  ;;  %4423 = vmatprep.mubr.msk.f32.mxu1 %vm470_vm0, %v6286_v56  ;;  %v7364_v56 = vld [vmem:[#allocation60_spill] sm:$0xff] }
 0x122   : > { %4799 = vmatprep.mubr.f32.mxu0 %v6359_v25 }
 0x124   : > { %4424 = vmatmul.mubr.f32.gmra.mrb[26].mxu1 %v6302_v53 }
 0x125   : > { %4800 = vmatmul.mubr.f32.gmra.mrb[10].mxu0 %v6378_v10  ;;  %4426 = vmatprep.mubr.msk.f32.mxu1 %vm470_vm0, %v6354_v44 }
 0x126   : > { %4802 = vmatprep.mubr.f32.mxu0 %v6381_v15 }
 0x128   : > { %4427 = vmatmul.mubr.f32.gmra.mrb[28].mxu1 %v7362_v51 }
 0x129   : > { %4803 = vmatmul.mubr.f32.gmra.mrb[12].mxu0 %v6414_v7  ;;  %4429 = vmatprep.mubr.msk.f32.mxu1 %vm470_vm0, %v7363_v63 }
 0x12a   : > { %4805 = vmatprep.mubr.f32.mxu0 %v6418_v40 }
 0x12c   : > { %4430 = vmatmul.mubr.f32.gmra.mrb[30].mxu1 %v6551_v26 }
 0x12d   : > { %4806 = vmatmul.mubr.f32.gmra.mrb[14].mxu0 %v7364_v56  ;;  %4488 = vmatprep.mubr.f32.mxu1 %v7334_v58 }
 0x12e   : > { %4808 = vmatprep.mubr.f32.mxu0 %v6444_v8 }
 0x130   : > { %4489 = vmatmul.mubr.f32.vlgmr.msra.gmra.mrb[16].mxu1 %v7335_v19 }
 0x131   : > { %4809 = vmatmul.mubr.f32.gmra.mrb[16].mxu0 %v7323_v13  ;;  %4491 = vmatprep.mubr.f32.mxu1 %v7337_v22 }
 0x132   : > { %4811 = vmatprep.mubr.f32.mxu0 %v7365_v46 }
 0x134   : > { %4492 = vmatmul.mubr.f32.gmra.mrb[18].mxu1 %v7339_v12 }
 0x135   : > { %4812 = vmatmul.mubr.f32.gmra.mrb[18].mxu0 %v6495_v39  ;;  %4494 = vmatprep.mubr.f32.mxu1 %v7340_v43 }
 0x136   : > { %4814 = vmatprep.mubr.f32.mxu0 %v7327_v31 }
 0x138   : > { %4495 = vmatmul.mubr.f32.gmra.mrb[20].mxu1 %v7342_v55 }
 0x139   : > { %4815 = vmatmul.mubr.f32.gmra.mrb[20].mxu0 %v6520_v4  ;;  %4497 = vmatprep.mubr.f32.mxu1 %v7343_v37 }
 0x13a   : > { %4817 = vmatprep.mubr.f32.mxu0 %v6526_v59 }
 0x13c   : > { %4498 = vmatmul.mubr.f32.gmra.mrb[22].mxu1 %v7345_v24 }
 0x13d   : > { %4818 = vmatmul.mubr.f32.gmra.mrb[22].mxu0 %v6543_v6  ;;  %4500 = vmatprep.mubr.f32.mxu1 %v7346_v30 }
 0x13e   : > { %4820 = vmatprep.mubr.f32.mxu0 %v6549_v23 }
 0x140   : > { %4501 = vmatmul.mubr.f32.gmra.mrb[24].mxu1 %v7348_v57 }
 0x141   : > { %4821 = vmatmul.mubr.f32.gmra.mrb[24].mxu0 %v6571_v60  ;;  %4503 = vmatprep.mubr.f32.mxu1 %v7349_v11 }
 0x142   : > { %4823 = vmatprep.mubr.f32.mxu0 %v6574_v33 }
 0x144   : > { %4504 = vmatmul.mubr.f32.gmra.mrb[26].mxu1 %v7351_v16 }
 0x145   : > { %4824 = vmatmul.mubr.f32.gmra.mrb[26].mxu0 %v6596_v35  ;;  %4506 = vmatprep.mubr.f32.mxu1 %v7352_v48 }
 0x146   : > { %4826 = vmatprep.mubr.f32.mxu0 %v7366_v20 }
 0x148   : > { %4507 = vmatmul.mubr.f32.gmra.mrb[28].mxu1 %v7354_v17 }
 0x149   : > { %4827 = vmatmul.mubr.f32.gmra.mrb[28].mxu0 %v7367_v42  ;;  %4509 = vmatprep.mubr.f32.mxu1 %v6953_v29 }
 0x14a   : > { %4829 = vmatprep.mubr.f32.mxu0 %v7368_v2 }
 0x14c   : > { %4510 = vmatmul.mubr.f32.gmra.mrb[30].mxu1 %v6963_v28 }
 0x14d   : > { %4830 = vmatmul.mubr.f32.gmra.mrb[30].mxu0 %v7368_v2 }
 0x1c3   : > { %v4386_v41 = vpop.f32.mrb[0].mxu1 }
 0x1c4   : > { %v1668_v34 = vpop.f32.mrb[1].mxu1 }
 0x1c7   : > { %v4389_v53 = vpop.f32.mrb[2].mxu1 }
 0x1c8   : > { %v1678_v49 = vpop.f32.mrb[3].mxu1 }
 0x1cb   : > { %v4392_v44 = vpop.f32.mrb[4].mxu1 }
 0x1cc   : > { %v1688_v25 = vpop.f32.mrb[5].mxu1 }
 0x1cf   : > { %v4395_v40 = vpop.f32.mrb[6].mxu1 }
 0x1d0   : > { %v1698_v10 = vpop.f32.mrb[7].mxu1 }
 0x1d3   : > { %v4398_v15 = vpop.f32.mrb[8].mxu1 }
 0x1d4   : > { %v1708_v7 = vpop.f32.mrb[9].mxu1 }
 0x1d7   : > { %v7058_v8 = vpop.f32.mrb[10].mxu1 }
 0x1d8   : > { %v7060_v39 = vpop.f32.mrb[11].mxu1 }
 0x1db   : > { %v7062_v4 = vpop.f32.mrb[12].mxu1 }
 0x1dc   : > { %v7064_v59 = vpop.f32.mrb[13].mxu1 }
 0x1df   : > { %v7066_v6 = vpop.f32.mrb[14].mxu1 }
 0x1e0   : > { %v7068_v23 = vpop.f32.mrb[15].mxu1 }
 0x1e4   : > { %v4786_v26 = vpop.f32.mrb[0].mxu0 }
 0x1e5   : > { %v5136_v60 = vadd.f32 %v4786_v26, %v4386_v41  ;;  %v3072_v33 = vpop.f32.mrb[1].mxu0 }
 0x1e6   : > { %v5137_v35 = vadd.f32 %v3072_v33, %v1668_v34 }
 0x1e7   : > { %3264 = vst [vmem:[%s7074_s30 + $0x8] sm:$0xff] %v5136_v60  ;;  %v3333_v27 = vmul.f32 %v5136_v60, %v5136_v60 }
 0x1e8   : > { %3263 = vst [vmem:[%s7074_s30] sm:$0xff] %v5137_v35  ;;  %v3295_v0 = vadd.f32 %v5137_v35, %v5136_v60  ;;  %v3332_v54 = vmul.f32 %v5137_v35, %v5137_v35  ;;  %v4789_v38 = vpop.f32.mrb[2].mxu0 }
 0x1e9   : > { %v5138_v47 = vadd.f32 %v4789_v38, %v4389_v53  ;;  %v3082_v5 = vpop.f32.mrb[3].mxu0 }
 0x1ea   : > { %v3364_v50 = vadd.f32 %v3333_v27, %v3332_v54  ;;  %v5139_v13 = vadd.f32 %v3082_v5, %v1678_v49 }
 0x1eb   : > { %3266 = vst [vmem:[%s7074_s30 + $0x18] sm:$0xff] %v5138_v47  ;;  %v3335_v43 = vmul.f32 %v5138_v47, %v5138_v47 }
 0x1ec   : > { %3265 = vst [vmem:[%s7074_s30 + $0x10] sm:$0xff] %v5139_v13  ;;  %v3296_v31 = vadd.f32 %v5139_v13, %v3295_v0  ;;  %v3334_v58 = vmul.f32 %v5139_v13, %v5139_v13  ;;  %v4792_v19 = vpop.f32.mrb[4].mxu0 }
 0x1ed   : > { %v5140_v22 = vadd.f32 %v4792_v19, %v4392_v44  ;;  %v3092_v12 = vpop.f32.mrb[5].mxu0 }
 0x1ee   : > { %v3365_v55 = vadd.f32 %v3364_v50, %v3334_v58  ;;  %v5141_v37 = vadd.f32 %v3092_v12, %v1688_v25  ;;  %v3297_v24 = vadd.f32 %v5138_v47, %v3296_v31 }
 0x1ef   : > { %3268 = vst [vmem:[%s7074_s30 + $0x28] sm:$0xff] %v5140_v22  ;;  %v3337_v16 = vmul.f32 %v5140_v22, %v5140_v22 }
 0x1f0   : > { %3267 = vst [vmem:[%s7074_s30 + $0x20] sm:$0xff] %v5141_v37  ;;  %v3298_v30 = vadd.f32 %v5141_v37, %v3297_v24  ;;  %v3336_v57 = vmul.f32 %v5141_v37, %v5141_v37  ;;  %v3366_v11 = vadd.f32 %v3365_v55, %v3335_v43  ;;  %v4795_v1 = vpop.f32.mrb[6].mxu0 }
 0x1f1   : > { %v5142_v45 = vadd.f32 %v4795_v1, %v4395_v40  ;;  %v3102_v14 = vpop.f32.mrb[7].mxu0 }
 0x1f2   : > { %v3367_v48 = vadd.f32 %v3366_v11, %v3336_v57  ;;  %v5143_v61 = vadd.f32 %v3102_v14, %v1698_v10  ;;  %v3299_v29 = vadd.f32 %v5140_v22, %v3298_v30 }
 0x1f3   : > { %3270 = vst [vmem:[%s7074_s30 + $0x38] sm:$0xff] %v5142_v45  ;;  %v3339_v3 = vmul.f32 %v5142_v45, %v5142_v45 }
 0x1f4   : > { %3269 = vst [vmem:[%s7074_s30 + $0x30] sm:$0xff] %v5143_v61  ;;  %v3300_v36 = vadd.f32 %v5143_v61, %v3299_v29  ;;  %v3338_v17 = vmul.f32 %v5143_v61, %v5143_v61  ;;  %v3368_v28 = vadd.f32 %v3367_v48, %v3337_v16  ;;  %v4798_v18 = vpop.f32.mrb[8].mxu0 }
 0x1f5   : > { %v5144_v52 = vadd.f32 %v4798_v18, %v4398_v15  ;;  %v3112_v62 = vpop.f32.mrb[9].mxu0 }
 0x1f6   : > { %v3369_v9 = vadd.f32 %v3368_v28, %v3338_v17  ;;  %v5145_v21 = vadd.f32 %v3112_v62, %v1708_v7  ;;  %v3301_v32 = vadd.f32 %v5142_v45, %v3300_v36 }
 0x1f7   : > { %3272 = vst [vmem:[%s7074_s30 + $0x48] sm:$0xff] %v5144_v52  ;;  %v3341_v2 = vmul.f32 %v5144_v52, %v5144_v52 }
 0x1f8   : > { %3271 = vst [vmem:[%s7074_s30 + $0x40] sm:$0xff] %v5145_v21  ;;  %v3302_v51 = vadd.f32 %v5145_v21, %v3301_v32  ;;  %v3340_v63 = vmul.f32 %v5145_v21, %v5145_v21  ;;  %v3370_v56 = vadd.f32 %v3369_v9, %v3339_v3  ;;  %v4801_v46 = vpop.f32.mrb[10].mxu0 }
 0x1f9   : > { %v5146_v20 = vadd.f32 %v4801_v46, %v7058_v8  ;;  %v3122_v42 = vpop.f32.mrb[11].mxu0 }
 0x1fa   : > { %v3371_v41 = vadd.f32 %v3370_v56, %v3340_v63  ;;  %v5147_v34 = vadd.f32 %v3122_v42, %v7060_v39  ;;  %v3303_v53 = vadd.f32 %v5144_v52, %v3302_v51 }
 0x1fb   : > { %3274 = vst [vmem:[%s7074_s30 + $0x58] sm:$0xff] %v5146_v20  ;;  %v3343_v7 = vmul.f32 %v5146_v20, %v5146_v20 }
 0x1fc   : > { %3273 = vst [vmem:[%s7074_s30 + $0x50] sm:$0xff] %v5147_v34  ;;  %v3304_v49 = vadd.f32 %v5147_v34, %v3303_v53  ;;  %v3342_v44 = vmul.f32 %v5147_v34, %v5147_v34  ;;  %v3372_v25 = vadd.f32 %v3371_v41, %v3341_v2  ;;  %v4804_v40 = vpop.f32.mrb[12].mxu0 }
 0x1fd   : > { %v5148_v10 = vadd.f32 %v4804_v40, %v7062_v4  ;;  %v3132_v15 = vpop.f32.mrb[13].mxu0 }
 0x1fe   : > { %v3373_v8 = vadd.f32 %v3372_v25, %v3342_v44  ;;  %v5149_v26 = vadd.f32 %v3132_v15, %v7064_v59  ;;  %v3305_v60 = vadd.f32 %v5146_v20, %v3304_v49 }
 0x1ff   : > { %3276 = vst [vmem:[%s7074_s30 + $0x68] sm:$0xff] %v5148_v10  ;;  %v3345_v38 = vmul.f32 %v5148_v10, %v5148_v10 }
 0x200   : > { %3275 = vst [vmem:[%s7074_s30 + $0x60] sm:$0xff] %v5149_v26  ;;  %v3306_v39 = vadd.f32 %v5149_v26, %v3305_v60  ;;  %v3344_v33 = vmul.f32 %v5149_v26, %v5149_v26  ;;  %v3374_v35 = vadd.f32 %v3373_v8, %v3343_v7  ;;  %v4807_v27 = vpop.f32.mrb[14].mxu0 }
 0x201   : > { %v5150_v0 = vadd.f32 %v4807_v27, %v7066_v6  ;;  %v3142_v54 = vpop.f32.mrb[15].mxu0 }
 0x202   : > { %v3375_v47 = vadd.f32 %v3374_v35, %v3344_v33  ;;  %v5151_v4 = vadd.f32 %v3142_v54, %v7068_v23  ;;  %v3307_v5 = vadd.f32 %v5148_v10, %v3306_v39 }
 0x203   : > { %3278 = vst [vmem:[%s7074_s30 + $0x78] sm:$0xff] %v5150_v0  ;;  %v4490_v59 = vpop.f32.mrb[16].mxu1  ;;  %v3347_v43 = vmul.f32 %v5150_v0, %v5150_v0 }
 0x204   : > { %3277 = vst [vmem:[%s7074_s30 + $0x70] sm:$0xff] %v5151_v4  ;;  %v3308_v50 = vadd.f32 %v5151_v4, %v3307_v5  ;;  %v3346_v13 = vmul.f32 %v5151_v4, %v5151_v4  ;;  %v3376_v31 = vadd.f32 %v3375_v47, %v3345_v38  ;;  %v4810_v58 = vpop.f32.mrb[16].mxu0  ;;  %v2032_v19 = vpop.f32.mrb[17].mxu1 }
 0x205   : > { %v5152_v22 = vadd.f32 %v4810_v58, %v4490_v59  ;;  %v3152_v12 = vpop.f32.mrb[17].mxu0 }
 0x206   : > { %v3377_v6 = vadd.f32 %v3376_v31, %v3346_v13  ;;  %v5153_v55 = vadd.f32 %v3152_v12, %v2032_v19  ;;  %v3309_v37 = vadd.f32 %v5150_v0, %v3308_v50 }
 0x207   : > { %3280 = vst [vmem:[%s7074_s30 + $0x88] sm:$0xff] %v5152_v22  ;;  %v4493_v23 = vpop.f32.mrb[18].mxu1  ;;  %v3349_v16 = vmul.f32 %v5152_v22, %v5152_v22 }
 0x208   : > { %3279 = vst [vmem:[%s7074_s30 + $0x80] sm:$0xff] %v5153_v55  ;;  %v3310_v24 = vadd.f32 %v5153_v55, %v3309_v37  ;;  %v3348_v30 = vmul.f32 %v5153_v55, %v5153_v55  ;;  %v3378_v57 = vadd.f32 %v3377_v6, %v3347_v43  ;;  %v4813_v11 = vpop.f32.mrb[18].mxu0  ;;  %v2042_v1 = vpop.f32.mrb[19].mxu1 }
 0x209   : > { %v5154_v45 = vadd.f32 %v4813_v11, %v4493_v23  ;;  %v3162_v14 = vpop.f32.mrb[19].mxu0 }
 0x20a   : > { %v3379_v48 = vadd.f32 %v3378_v57, %v3348_v30  ;;  %v5155_v61 = vadd.f32 %v3162_v14, %v2042_v1  ;;  %v3311_v29 = vadd.f32 %v5152_v22, %v3310_v24 }
 0x20b   : > { %3282 = vst [vmem:[%s7074_s30 + $0x98] sm:$0xff] %v5154_v45  ;;  %v4496_v36 = vpop.f32.mrb[20].mxu1  ;;  %v3351_v21 = vmul.f32 %v5154_v45, %v5154_v45 }
 0x20c   : > { %3281 = vst [vmem:[%s7074_s30 + $0x90] sm:$0xff] %v5155_v61  ;;  %v3312_v17 = vadd.f32 %v5155_v61, %v3311_v29  ;;  %v3350_v28 = vmul.f32 %v5155_v61, %v5155_v61  ;;  %v3380_v18 = vadd.f32 %v3379_v48, %v3349_v16  ;;  %v4816_v52 = vpop.f32.mrb[20].mxu0  ;;  %v2052_v62 = vpop.f32.mrb[21].mxu1 }
 0x20d   : > { %v5156_v3 = vadd.f32 %v4816_v52, %v4496_v36  ;;  %v3172_v9 = vpop.f32.mrb[21].mxu0 }
 0x20e   : > { %v3381_v32 = vadd.f32 %v3380_v18, %v3350_v28  ;;  %v5157_v51 = vadd.f32 %v3172_v9, %v2052_v62  ;;  %v3313_v63 = vadd.f32 %v5154_v45, %v3312_v17 }
 0x20f   : > { %3284 = vst [vmem:[%s7074_s30 + $0xa8] sm:$0xff] %v5156_v3  ;;  %v4499_v56 = vpop.f32.mrb[22].mxu1  ;;  %v3353_v49 = vmul.f32 %v5156_v3, %v5156_v3 }
 0x210   : > { %3283 = vst [vmem:[%s7074_s30 + $0xa0] sm:$0xff] %v5157_v51  ;;  %v3314_v46 = vadd.f32 %v5157_v51, %v3313_v63  ;;  %v3352_v20 = vmul.f32 %v5157_v51, %v5157_v51  ;;  %v3382_v42 = vadd.f32 %v3381_v32, %v3351_v21  ;;  %v4819_v2 = vpop.f32.mrb[22].mxu0  ;;  %v2062_v41 = vpop.f32.mrb[23].mxu1 }
 0x211   : > { %v5158_v34 = vadd.f32 %v4819_v2, %v4499_v56  ;;  %v3182_v53 = vpop.f32.mrb[23].mxu0 }
 0x212   : > { %v3383_v44 = vadd.f32 %v3382_v42, %v3352_v20  ;;  %v5159_v25 = vadd.f32 %v3182_v53, %v2062_v41  ;;  %v3315_v40 = vadd.f32 %v5156_v3, %v3314_v46 }
 0x213   : > { %3286 = vst [vmem:[%s7074_s30 + $0xb8] sm:$0xff] %v5158_v34  ;;  %v4502_v10 = vpop.f32.mrb[24].mxu1  ;;  %v3355_v35 = vmul.f32 %v5158_v34, %v5158_v34 }
 0x214   : > { %3285 = vst [vmem:[%s7074_s30 + $0xb0] sm:$0xff] %v5159_v25  ;;  %v3316_v15 = vadd.f32 %v5159_v25, %v3315_v40  ;;  %v3354_v7 = vmul.f32 %v5159_v25, %v5159_v25  ;;  %v3384_v8 = vadd.f32 %v3383_v44, %v3353_v49  ;;  %v4822_v26 = vpop.f32.mrb[24].mxu0  ;;  %v2072_v60 = vpop.f32.mrb[25].mxu1 }
 0x215   : > { %v5160_v39 = vadd.f32 %v4822_v26, %v4502_v10  ;;  %v3192_v33 = vpop.f32.mrb[25].mxu0 }
 0x216   : > { %v3385_v27 = vadd.f32 %v3384_v8, %v3354_v7  ;;  %v5161_v0 = vadd.f32 %v3192_v33, %v2072_v60  ;;  %v3317_v54 = vadd.f32 %v5158_v34, %v3316_v15 }
 0x217   : > { %3288 = vst [vmem:[%s7074_s30 + $0xc8] sm:$0xff] %v5160_v39  ;;  %v4505_v38 = vpop.f32.mrb[26].mxu1  ;;  %v3357_v58 = vmul.f32 %v5160_v39, %v5160_v39 }
 0x218   : > { %3287 = vst [vmem:[%s7074_s30 + $0xc0] sm:$0xff] %v5161_v0  ;;  %v3318_v47 = vadd.f32 %v5161_v0, %v3317_v54  ;;  %v3356_v4 = vmul.f32 %v5161_v0, %v5161_v0  ;;  %v3386_v5 = vadd.f32 %v3385_v27, %v3355_v35  ;;  %v4825_v59 = vpop.f32.mrb[26].mxu0  ;;  %v2082_v50 = vpop.f32.mrb[27].mxu1 }
 0x219   : > { %v5162_v13 = vadd.f32 %v4825_v59, %v4505_v38  ;;  %v3202_v31 = vpop.f32.mrb[27].mxu0 }
 0x21a   : > { %v3387_v19 = vadd.f32 %v3386_v5, %v3356_v4  ;;  %v5163_v22 = vadd.f32 %v3202_v31, %v2082_v50  ;;  %v3319_v12 = vadd.f32 %v5160_v39, %v3318_v47 }
 0x21b   : > { %3290 = vst [vmem:[%s7074_s30 + $0xd8] sm:$0xff] %v5162_v13  ;;  %v4508_v43 = vpop.f32.mrb[28].mxu1  ;;  %v3359_v11 = vmul.f32 %v5162_v13, %v5162_v13 }
 0x21c   : > { %3289 = vst [vmem:[%s7074_s30 + $0xd0] sm:$0xff] %v5163_v22  ;;  %v3320_v6 = vadd.f32 %v5163_v22, %v3319_v12  ;;  %v3358_v55 = vmul.f32 %v5163_v22, %v5163_v22  ;;  %v3388_v37 = vadd.f32 %v3387_v19, %v3357_v58  ;;  %v4828_v23 = vpop.f32.mrb[28].mxu0  ;;  %v2092_v24 = vpop.f32.mrb[29].mxu1 }
 0x21d   : > { %v5164_v30 = vadd.f32 %v4828_v23, %v4508_v43  ;;  %v3212_v57 = vpop.f32.mrb[29].mxu0 }
 0x21e   : > { %v3389_v1 = vadd.f32 %v3388_v37, %v3358_v55  ;;  %v5165_v45 = vadd.f32 %v3212_v57, %v2092_v24  ;;  %v3321_v14 = vadd.f32 %v5162_v13, %v3320_v6 }
 0x21f   : > { %3292 = vst [vmem:[%s7074_s30 + $0xe8] sm:$0xff] %v5164_v30  ;;  %v4511_v16 = vpop.f32.mrb[30].mxu1  ;;  %v3361_v52 = vmul.f32 %v5164_v30, %v5164_v30 }
 0x220   : > { %3291 = vst [vmem:[%s7074_s30 + $0xe0] sm:$0xff] %v5165_v45  ;;  %v3322_v48 = vadd.f32 %v5165_v45, %v3321_v14  ;;  %v3360_v61 = vmul.f32 %v5165_v45, %v5165_v45  ;;  %v3390_v29 = vadd.f32 %v3389_v1, %v3359_v11  ;;  %v4831_v36 = vpop.f32.mrb[30].mxu0  ;;  %v2102_v17 = vpop.f32.mrb[31].mxu1 }
 0x221   : > { %v5166_v28 = vadd.f32 %v4831_v36, %v4511_v16  ;;  %v3222_v18 = vpop.f32.mrb[31].mxu0 }
 0x222   : > { %v3391_v62 = vadd.f32 %v3390_v29, %v3360_v61  ;;  %v5167_v3 = vadd.f32 %v3222_v18, %v2102_v17  ;;  %v3323_v9 = vadd.f32 %v5164_v30, %v3322_v48 }
 0x223   : > { %3294 = vst [vmem:[%s7074_s30 + $0xf8] sm:$0xff] %v5166_v28  ;;  %v3363_v63 = vmul.f32 %v5166_v28, %v5166_v28 }
 0x224   : > { %3293 = vst [vmem:[%s7074_s30 + $0xf0] sm:$0xff] %v5167_v3  ;;  %v3324_v21 = vadd.f32 %v5167_v3, %v3323_v9  ;;  %v3362_v32 = vmul.f32 %v5167_v3, %v5167_v3  ;;  %v3392_v51 = vadd.f32 %v3391_v62, %v3361_v52 }
 0x226   : > { %v3325_v56 = vadd.f32 %v5166_v28, %v3324_v21  ;;  %v3393_v46 = vadd.f32 %v3392_v51, %v3362_v32 }
 0x228   : > { %v3326_v20 = vrot.slane %v3325_v56, 4  ;;  %v3394_v42 = vadd.f32 %v3393_v46, %v3363_v63 }
 0x22a   : > { %v3327_v2 = vadd.f32 %v3326_v20, %v3325_v56  ;;  %v3395_v41 = vrot.slane %v3394_v42, 4 }
 0x22c   : > { %v3328_v34 = vrot.slane %v3327_v2, 2  ;;  %v3396_v53 = vadd.f32 %v3395_v41, %v3394_v42 }
 0x22e   : > { %v3329_v49 = vadd.f32 %v3328_v34, %v3327_v2  ;;  %v3397_v44 = vrot.slane %v3396_v53, 2 }
 0x230   : > { %v3330_v25 = vrot.slane %v3329_v49, 1  ;;  %v3398_v40 = vadd.f32 %v3397_v44, %v3396_v53 }
 0x232   : > { %v3399_v10 = vrot.slane %v3398_v40, 1  ;;  %v3331_v15 = vadd.f32 %v3330_v25, %v3329_v49 }
 0x234   : > { %v3400_v7 = vadd.f32 %v3399_v10, %v3398_v40 }
 0x236   : > { %v3402_v8 = vsel %vm3401_vm4, %v3331_v15, %v3400_v7 }
 0x237   : > { %v3404_v26 = vsel %vm3403_vm5, %v3402_v8, 0.0 }
 0x238   : > { %3405 = vst [vmem:[%s235_s8] sm:$0xff] %v3404_v26 }
 0x239 PF: > { %s16_s18 = sadd.s32 1, %s5410_s18  }
 0x23a   : > { %p13_p4 = scmp.ge.s32.totalorder %s16_s18, 4  }
 0x23c   :  { %15 = sbr.rel (!%p13_p4) target bundleno = 1 (0x1), region = 86 }

</bundles_post_ra>
